<compile_context>
chip_gen: v6e
topology: v6e:2x2x1
jax: 0.10.0
libtpu: 0.0.40
codegen_flags: <defaults>
</compile_context>

<pallas_src>
import functools

import jax
import jax.numpy as jnp
from jax.experimental import pallas as pl
from jax.experimental.pallas import tpu as pltpu


def _round_up(x, m):
    return (x + m - 1) // m * m


# With C_mid >= this, per-tap K already fills the MXU: skip the materialized
# im2col panel and run 9 accumulating matmuls instead.
_PANEL_CMID_MAX = 128


def _yolo_kernel(x_ref, mask_ref, w1_ref, s1_ref, b1_ref,
                 w2_ref, s2_ref, b2_ref, w3_ref, b3_ref,
                 o_ref, *scratch, W, HW, Nb, halo, use_panel):
    """Nb images per grid step.

    x_ref   : (Nb, C_in_p,  HW_p) bf16   lane-dense, channels-first
    o_ref   : (Nb, C_out_p, HW_p) f32
    mask_ref: (3, HW_p) bf16   rows = [col != 0, col != W-1, flat < HW]
    w2_ref  : (C_in_p, 9*C_mid_p) bf16 if use_panel else (9, C_in_p, C_mid_p)
    scratch : [line_scr] + ([panel_scr] if use_panel else [stage_scr, h2_scr])
    """
    HW_p = o_ref.shape[-1]
    C_mid_p = w1_ref.shape[0]
    line_scr = scratch[0]

    def leaky(h):                                     # nn.LeakyReLU(0.1)
        return jnp.where(h > 0, h, 0.1 * h)

    # Zero only the (W+1)-wide halos, once per grid step; the h1 store below
    # never touches them, so they stay zero across the Nb inner images.
    halo_zeros = jnp.zeros((C_mid_p, halo), line_scr.dtype)
    line_scr[:, pl.ds(0, halo)] = halo_zeros
    line_scr[:, pl.ds(halo + HW_p, halo)] = halo_zeros

    # 3x3 edge masks, broadcast ONCE outside the 9-tap loop (JAX does not CSE
    # broadcast_in_dim); kept in bf16 so masked taps stay bf16 end-to-end.
    m_left = jnp.broadcast_to(mask_ref[pl.ds(0, 1), :], (C_mid_p, HW_p))
    m_right = jnp.broadcast_to(mask_ref[pl.ds(1, 1), :], (C_mid_p, HW_p))
    pad_spatial = HW_p != HW
    if pad_spatial:
        valid = mask_ref[pl.ds(2, 1), :]              # (1, HW_p) lane-pad kill

    taps = tuple((dh, dw) for dh in (-1, 0, 1) for dw in (-1, 0, 1))

    for i in range(Nb):                               # weights stay resident
        # ---- Stage 1: Conv2d(k=1, bias=False) + folded BN + LeakyReLU -----
        h1 = jnp.dot(w1_ref[...], x_ref[i], preferred_element_type=jnp.float32)
        h1 = leaky(h1 * s1_ref[...] + b1_ref[...])
        if pad_spatial:
            h1 = h1 * valid                           # keep lane padding zero
        line_scr[:, pl.ds(halo, HW_p)] = h1.astype(line_scr.dtype)

        # ---- Stage 2: Conv2d(k=3, pad=1, bias=False) + folded BN + LReLU --
        if use_panel:
            # Small C_mid: build a bf16 im2col panel, ONE fused matmul.
            panel_scr = scratch[1]
            for t, (dh, dw) in enumerate(taps):
                tap = line_scr[:, pl.ds(halo + dh * W + dw, HW_p)]
                if dw == -1:
                    tap = tap * m_left
                elif dw == 1:
                    tap = tap * m_right
                panel_scr[pl.ds(t * C_mid_p, C_mid_p), :] = tap
            h2 = jnp.dot(w2_ref[...], panel_scr[...],
                         preferred_element_type=jnp.float32)
        else:
            # Large C_mid: no panel; 9 accumulating matmuls, only the masked
            # dw=+/-1 taps staged through one small bf16 buffer.
            stage_scr, h2_scr = scratch[1], scratch[2]
            h2_scr[...] = jnp.zeros_like(h2_scr)
            for t, (dh, dw) in enumerate(taps):
                tap = line_scr[:, pl.ds(halo + dh * W + dw, HW_p)]
                if dw == 0:
                    rhs = tap
                else:
                    stage_scr[...] = tap * (m_left if dw == -1 else m_right)
                    rhs = stage_scr[...]
                h2_scr[...] += jnp.dot(w2_ref[t], rhs,
                                       preferred_element_type=jnp.float32)
            h2 = h2_scr[...]
        h2 = leaky(h2 * s2_ref[...] + b2_ref[...])

        # ---- Output head: Conv2d(k=1) with bias ----------------------------
        out = jnp.dot(w3_ref[...], h2.astype(jnp.bfloat16),
                      preferred_element_type=jnp.float32)
        o_ref[i] = (out + b3_ref[...]).astype(o_ref.dtype)


def yolo_detection_block(x_nchw, kp):
    """PyTorch-convention entry: x (N, C_in, H, W) f32 -> (N, C_out, H, W) f32."""
    N, C_in, H, W = x_nchw.shape
    HW = H * W
    HW_p = _round_up(HW, 128)                 # lane-dense stores, no vst.msk
    halo = W + 1                              # minimal zero halo for 3x3 taps

    C_mid_p, C_in_p = kp["w1"].shape
    C_out_p = kp["w3"].shape[0]
    C_out = kp["c_out"]
    assert C_in <= C_in_p
    use_panel = C_mid_p < _PANEL_CMID_MAX

    # Small batch block per grid step: amortizes per-step pipeline overhead and
    # reuses resident weights; the batch grid axis stays "parallel".
    Nb = next(d for d in (4, 2, 1) if N % d == 0)

    # Lane-dense layout (N, C, HW), zero-padded to (C_in_p, HW_p).
    x_flat = x_nchw.reshape(N, C_in, HW).astype(jnp.bfloat16)
    x_flat = jnp.pad(x_flat, ((0, 0), (0, C_in_p - C_in), (0, HW_p - HW)))

    # Edge / lane-pad masks (bf16, 0/1 exact): [col != 0, col != W-1, flat < HW].
    col = jnp.arange(HW_p, dtype=jnp.int32) % W
    idx = jnp.arange(HW_p, dtype=jnp.int32)
    mask = jnp.stack([col != 0, col != W - 1, idx < HW]).astype(jnp.bfloat16)

    if use_panel:   # (9, Ci, Cm) -> (Ci, 9*Cm), matching the panel row order
        w2 = jnp.transpose(kp["w2"], (1, 0, 2)).reshape(C_in_p, 9 * C_mid_p)
    else:
        w2 = kp["w2"]

    scratch_shapes = [pltpu.VMEM((C_mid_p, HW_p + 2 * halo), jnp.bfloat16)]
    if use_panel:
        scratch_shapes.append(pltpu.VMEM((9 * C_mid_p, HW_p), jnp.bfloat16))
    else:
        scratch_shapes.append(pltpu.VMEM((C_mid_p, HW_p), jnp.bfloat16))  # masked-tap stage
        scratch_shapes.append(pltpu.VMEM((C_in_p, HW_p), jnp.float32))    # h2 accumulator

    # Per-generation VMEM budget: ~3/4 of the queried per-core capacity
    # (v7x: 64 MiB -> 48 MiB; v5e/v6e: 128 MiB -> 96 MiB cap).
    try:
        cap = int(getattr(pltpu.get_tpu_info(), "vmem_capacity_bytes",
                          128 * 1024 * 1024))
    except Exception:
        cap = 128 * 1024 * 1024
    vmem_limit = min(cap * 3 // 4, 96 * 1024 * 1024)

    kernel = functools.partial(_yolo_kernel, W=W, HW=HW, Nb=Nb, halo=halo,
                               use_panel=use_panel)
    args = (x_flat, mask, kp["w1"], kp["s1"], kp["b1"],
            w2, kp["s2"], kp["b2"], kp["w3"], kp["b3"])

    def build(weight_mode):
        def const_spec(a):
            nd = a.ndim
            return pl.BlockSpec(a.shape, lambda n, _nd=nd: (0,) * _nd,
                                pipeline_mode=weight_mode)
        grid_spec = pltpu.PrefetchScalarGridSpec(
            num_scalar_prefetch=0,
            grid=(N // Nb,),
            in_specs=[pl.BlockSpec((Nb, C_in_p, HW_p), lambda n: (n, 0, 0))]
                     + [const_spec(a) for a in args[1:]],
            out_specs=pl.BlockSpec((Nb, C_out_p, HW_p), lambda n: (n, 0, 0)),
            scratch_shapes=scratch_shapes)
        return pl.pallas_call(
            kernel,
            out_shape=jax.ShapeDtypeStruct((N, C_out_p, HW_p), jnp.float32),
            grid_spec=grid_spec,
            compiler_params=pltpu.CompilerParams(
                dimension_semantics=("parallel",),
                vmem_limit_bytes=vmem_limit))

    try:
        # Grid-invariant inputs (weights/masks) single-buffered: constant
        # index maps, so double-buffering them only wastes VMEM.
        out_flat = build(pl.Buffered(1))(*args)
    except Exception:
        # TODO(synk): drop this fallback once Buffered(1) single-buffering is
        # available everywhere; default (double) buffering is still correct.
        out_flat = build(None)(*args)

    return out_flat[:, :C_out, :HW].reshape(N, C_out, H, W)


# ----------------------------- parameters ----------------------------------

def make_module_params(key, c_in, c_mid, num_classes):
    """Parameters in PyTorch layout (OIHW conv weights, raw BN stats)."""
    c_out = 3 * (5 + num_classes)
    ks = jax.random.split(key, 12)
    p = {}
    p["conv1_w"] = 0.2 * jax.random.normal(ks[0], (c_mid, c_in, 1, 1), jnp.float32)
    p["bn1_gamma"] = 1.0 + 0.1 * jax.random.normal(ks[1], (c_mid,), jnp.float32)
    p["bn1_beta"] = 0.1 * jax.random.normal(ks[2], (c_mid,), jnp.float32)
    p["bn1_mean"] = 0.1 * jax.random.normal(ks[3], (c_mid,), jnp.float32)
    p["bn1_var"] = jax.nn.softplus(jax.random.normal(ks[4], (c_mid,), jnp.float32)) + 0.5
    p["conv2_w"] = 0.2 * jax.random.normal(ks[5], (c_in, c_mid, 3, 3), jnp.float32)
    p["bn2_gamma"] = 1.0 + 0.1 * jax.random.normal(ks[6], (c_in,), jnp.float32)
    p["bn2_beta"] = 0.1 * jax.random.normal(ks[7], (c_in,), jnp.float32)
    p["bn2_mean"] = 0.1 * jax.random.normal(ks[8], (c_in,), jnp.float32)
    p["bn2_var"] = jax.nn.softplus(jax.random.normal(ks[9], (c_in,), jnp.float32)) + 0.5
    p["conv3_w"] = 0.2 * jax.random.normal(ks[10], (c_out, c_in, 1, 1), jnp.float32)
    p["conv3_b"] = 0.1 * jax.random.normal(ks[11], (c_out,), jnp.float32)
    return p


def _fold_bn(gamma, beta, mean, var, eps=1e-5):
    scale = gamma / jnp.sqrt(var + eps)
    return scale, beta - mean * scale


def prepare_kernel_params(p, eps=1e-5):
    """Fold eval-mode BN, zero-pad channels to MXU/sublane-friendly sizes, and
    reshape to kernel layouts (bf16 conv weights, f32 scale/bias columns)."""
    c_mid, c_in = p["conv1_w"].shape[:2]
    c_out = p["conv3_w"].shape[0]
    c_in_p = _round_up(c_in, 8)       # f32 sublane multiple
    c_mid_p = _round_up(c_mid, 16)    # bf16 sublane-pack multiple
    c_out_p = _round_up(c_out, 8)

    def pad2(a, r, c):
        return jnp.pad(a, ((0, r - a.shape[0]), (0, c - a.shape[1])))

    def padcol(v, n):
        return jnp.pad(v, (0, n - v.shape[0])).reshape(n, 1)

    w1 = pad2(p["conv1_w"][:, :, 0, 0], c_mid_p, c_in_p).astype(jnp.bfloat16)
    s1, b1 = _fold_bn(p["bn1_gamma"], p["bn1_beta"], p["bn1_mean"], p["bn1_var"], eps)
    # OIHW (c_in, c_mid, 3, 3) -> (kh, kw, c_in, c_mid) -> (9, c_in_p, c_mid_p)
    w2 = jnp.transpose(p["conv2_w"], (2, 3, 0, 1)).reshape(9, c_in, c_mid)
    w2 = jnp.pad(w2, ((0, 0), (0, c_in_p - c_in), (0, c_mid_p - c_mid)))
    w2 = w2.astype(jnp.bfloat16)
    s2, b2 = _fold_bn(p["bn2_gamma"], p["bn2_beta"], p["bn2_mean"], p["bn2_var"], eps)
    w3 = pad2(p["conv3_w"][:, :, 0, 0], c_out_p, c_in_p).astype(jnp.bfloat16)
    return dict(
        w1=w1, s1=padcol(s1, c_mid_p), b1=padcol(b1, c_mid_p),
        w2=w2, s2=padcol(s2, c_in_p), b2=padcol(b2, c_in_p),
        w3=w3, b3=padcol(p["conv3_b"], c_out_p), c_out=c_out)


# ------------------------------ reference ----------------------------------

def reference_nchw(x, p, eps=1e-5):
    """Pure-JAX/XLA reference with the same bf16-input / f32-accum precision."""
    dn = ('NCHW', 'OIHW', 'NCHW')

    def conv(h, w, padding):
        return jax.lax.conv_general_dilated(
            h.astype(jnp.bfloat16), w.astype(jnp.bfloat16), (1, 1), padding,
            dimension_numbers=dn, preferred_element_type=jnp.float32)

    def bn(h, g, b, m, v):
        s = g / jnp.sqrt(v + eps)
        return h * s[None, :, None, None] + (b - m * s)[None, :, None, None]

    def leaky(h):
        return jnp.where(h > 0, h, 0.1 * h)

    h = leaky(bn(conv(x, p["conv1_w"], 'VALID'),
                 p["bn1_gamma"], p["bn1_beta"], p["bn1_mean"], p["bn1_var"]))
    h = leaky(bn(conv(h, p["conv2_w"], ((1, 1), (1, 1))),
                 p["bn2_gamma"], p["bn2_beta"], p["bn2_mean"], p["bn2_var"]))
    h = conv(h, p["conv3_w"], 'VALID')
    return h + p["conv3_b"][None, :, None, None]


# --------------------------------- main -------------------------------------

if __name__ == "__main__":
    def run_case(key, n, c_in, c_mid, h, w, num_classes, tol):
        c_out = 3 * (5 + num_classes)
        k_x, k_p = jax.random.split(key)
        x = jax.random.normal(k_x, (n, c_in, h, w), jnp.float32)
        mparams = make_module_params(k_p, c_in, c_mid, num_classes)
        kp = prepare_kernel_params(mparams)
        y = jax.block_until_ready(yolo_detection_block(x, kp))
        y_ref = jax.block_until_ready(reference_nchw(x, mparams))
        assert y.shape == (n, c_out, h, w), y.shape
        err = float(jnp.max(jnp.abs(y - y_ref)))
        assert err < tol, (y.shape, err)

    key = jax.random.PRNGKey(0)
    k_a, k_b = jax.random.split(key)
    # Toy config (module test shapes): fused bf16 im2col-panel path,
    # 16x16 -> HW already lane-aligned.
    run_case(k_a, n=2, c_in=4, c_mid=8, h=16, w=16, num_classes=3, tol=5e-3)
    # Wider-mid config: panel-free accumulating-matmul path, 13x13 head with
    # lane padding 169 -> 256 and C_out padding 21 -> 24.  Slightly looser tol
    # covers isolated bf16 double-rounding differences vs the XLA reference.
    run_case(k_b, n=2, c_in=16, c_mid=128, h=13, w=13, num_classes=2, tol=3e-2)
    print("KERNEL_OK")
</pallas_src>

<mosaic_0001>
module attributes {stable_mosaic.version = 11 : i64} {
  func.func @_yolo_kernel(%arg0: i32, %arg1: memref<2x8x256xbf16, #tpu.memory_space<vmem>>, %arg2: memref<3x256xbf16, #tpu.memory_space<vmem>>, %arg3: memref<16x8xbf16, #tpu.memory_space<vmem>>, %arg4: memref<16x1xf32, #tpu.memory_space<vmem>>, %arg5: memref<16x1xf32, #tpu.memory_space<vmem>>, %arg6: memref<8x144xbf16, #tpu.memory_space<vmem>>, %arg7: memref<8x1xf32, #tpu.memory_space<vmem>>, %arg8: memref<8x1xf32, #tpu.memory_space<vmem>>, %arg9: memref<24x8xbf16, #tpu.memory_space<vmem>>, %arg10: memref<24x1xf32, #tpu.memory_space<vmem>>, %arg11: memref<2x24x256xf32, #tpu.memory_space<vmem>>, %arg12: memref<16x290xbf16, #tpu.memory_space<vmem>>, %arg13: memref<144x256xbf16, #tpu.memory_space<vmem>>) attributes {dimension_semantics = [#tpu.dimension_semantics<parallel>], iteration_bounds = array<i64: 1>, scalar_prefetch = 0 : i64, scratch_operands = 2 : i64, tpu.core_type = #tpu.core_type<tc>, window_params = [{transform_indices = @transform_0, window_bounds = array<i64: 2, 8, 256>}, {pipeline_mode = #tpu.pipeline_mode<synchronous>, transform_indices = @transform_1, window_bounds = array<i64: 3, 256>}, {pipeline_mode = #tpu.pipeline_mode<synchronous>, transform_indices = @transform_2, window_bounds = array<i64: 16, 8>}, {pipeline_mode = #tpu.pipeline_mode<synchronous>, transform_indices = @transform_3, window_bounds = array<i64: 16, 1>}, {pipeline_mode = #tpu.pipeline_mode<synchronous>, transform_indices = @transform_4, window_bounds = array<i64: 16, 1>}, {pipeline_mode = #tpu.pipeline_mode<synchronous>, transform_indices = @transform_5, window_bounds = array<i64: 8, 144>}, {pipeline_mode = #tpu.pipeline_mode<synchronous>, transform_indices = @transform_6, window_bounds = array<i64: 8, 1>}, {pipeline_mode = #tpu.pipeline_mode<synchronous>, transform_indices = @transform_7, window_bounds = array<i64: 8, 1>}, {pipeline_mode = #tpu.pipeline_mode<synchronous>, transform_indices = @transform_8, window_bounds = array<i64: 24, 8>}, {pipeline_mode = #tpu.pipeline_mode<synchronous>, transform_indices = @transform_9, window_bounds = array<i64: 24, 1>}, {transform_indices = @transform_10, window_bounds = array<i64: 2, 24, 256>}]} {
    %cst = arith.constant 0.000000e+00 : bf16
    %0 = vector.broadcast %cst : bf16 to vector<16x17xbf16>
    %c0 = arith.constant 0 : index
    %c0_0 = arith.constant 0 : index
    %1 = vector.load %arg12[%c0, %c0_0] : memref<16x290xbf16, #tpu.memory_space<vmem>>, vector<16x17xbf16>
    tpu.vector_store %arg12[%c0, %c0_0], %0 {strides = array<i32>} : memref<16x290xbf16, #tpu.memory_space<vmem>>, vector<16x17xbf16>,
    %c0_1 = arith.constant 0 : index
    %c273 = arith.constant 273 : index
    %2 = vector.load %arg12[%c0_1, %c273] : memref<16x290xbf16, #tpu.memory_space<vmem>>, vector<16x17xbf16>
    tpu.vector_store %arg12[%c0_1, %c273], %0 {strides = array<i32>} : memref<16x290xbf16, #tpu.memory_space<vmem>>, vector<16x17xbf16>,
    %c0_2 = arith.constant 0 : index
    %c0_3 = arith.constant 0 : index
    %3 = vector.load %arg2[%c0_2, %c0_3] : memref<3x256xbf16, #tpu.memory_space<vmem>>, vector<1x256xbf16>
    %4 = vector.shape_cast %3 : vector<1x256xbf16> to vector<1x256xbf16>
    %5 = vector.broadcast %4 : vector<1x256xbf16> to vector<16x256xbf16>
    %c1 = arith.constant 1 : index
    %c0_4 = arith.constant 0 : index
    %6 = vector.load %arg2[%c1, %c0_4] : memref<3x256xbf16, #tpu.memory_space<vmem>>, vector<1x256xbf16>
    %7 = vector.shape_cast %6 : vector<1x256xbf16> to vector<1x256xbf16>
    %8 = vector.broadcast %7 : vector<1x256xbf16> to vector<16x256xbf16>
    %c0_5 = arith.constant 0 : index
    %c0_6 = arith.constant 0 : index
    %9 = vector.load %arg3[%c0_5, %c0_6] : memref<16x8xbf16, #tpu.memory_space<vmem>>, vector<16x8xbf16>
    %c0_7 = arith.constant 0 : index
    %c0_8 = arith.constant 0 : index
    %c0_9 = arith.constant 0 : index
    %10 = vector.load %arg1[%c0_7, %c0_8, %c0_9] : memref<2x8x256xbf16, #tpu.memory_space<vmem>>, vector<1x8x256xbf16>
    %11 = vector.shape_cast %10 : vector<1x8x256xbf16> to vector<8x256xbf16>
    %cst_10 = arith.constant dense<0.000000e+00> : vector<16x256xf32>
    %12 = tpu.matmul %9, %11, %cst_10 {dimension_numbers = #tpu.dot_dimension_numbers<[1], [0], [0], [1], [0, 0, 1, 1], [], []>} : vector<16x8xbf16>, vector<8x256xbf16>, vector<16x256xf32> -> vector<16x256xf32>
    %c0_11 = arith.constant 0 : index
    %c0_12 = arith.constant 0 : index
    %13 = vector.load %arg4[%c0_11, %c0_12] : memref<16x1xf32, #tpu.memory_space<vmem>>, vector<16x1xf32>
    %14 = vector.broadcast %13 : vector<16x1xf32> to vector<16x256xf32>
    %15 = arith.mulf %12, %14 : vector<16x256xf32>
    %c0_13 = arith.constant 0 : index
    %c0_14 = arith.constant 0 : index
    %16 = vector.load %arg5[%c0_13, %c0_14] : memref<16x1xf32, #tpu.memory_space<vmem>>, vector<16x1xf32>
    %17 = vector.broadcast %16 : vector<16x1xf32> to vector<16x256xf32>
    %18 = arith.addf %15, %17 : vector<16x256xf32>
    %cst_15 = arith.constant 0.000000e+00 : f32
    %19 = vector.broadcast %cst_15 : f32 to vector<16x256xf32>
    %20 = arith.cmpf ogt, %18, %19 : vector<16x256xf32>
    %cst_16 = arith.constant 1.000000e-01 : f32
    %21 = vector.broadcast %cst_16 : f32 to vector<16x256xf32>
    %22 = arith.mulf %21, %18 : vector<16x256xf32>
    %23 = arith.select %20, %18, %22 : vector<16x256xi1>, vector<16x256xf32>
    %24 = arith.truncf %23 : vector<16x256xf32> to vector<16x256xbf16>
    %c0_17 = arith.constant 0 : index
    %c17 = arith.constant 17 : index
    %25 = vector.load %arg12[%c0_17, %c17] : memref<16x290xbf16, #tpu.memory_space<vmem>>, vector<16x256xbf16>
    tpu.vector_store %arg12[%c0_17, %c17], %24 {strides = array<i32>} : memref<16x290xbf16, #tpu.memory_space<vmem>>, vector<16x256xbf16>,
    %c0_18 = arith.constant 0 : index
    %c0_19 = arith.constant 0 : index
    %26 = vector.load %arg12[%c0_18, %c0_19] : memref<16x290xbf16, #tpu.memory_space<vmem>>, vector<16x256xbf16>
    %27 = arith.mulf %26, %5 : vector<16x256xbf16>
    %c0_20 = arith.constant 0 : index
    %c0_21 = arith.constant 0 : index
    %28 = vector.load %arg13[%c0_20, %c0_21] : memref<144x256xbf16, #tpu.memory_space<vmem>>, vector<16x256xbf16>
    tpu.vector_store %arg13[%c0_20, %c0_21], %27 {strides = array<i32>} : memref<144x256xbf16, #tpu.memory_space<vmem>>, vector<16x256xbf16>,
    %c0_22 = arith.constant 0 : index
    %c1_23 = arith.constant 1 : index
    %29 = vector.load %arg12[%c0_22, %c1_23] : memref<16x290xbf16, #tpu.memory_space<vmem>>, vector<16x256xbf16>
    %c16 = arith.constant 16 : index
    %c0_24 = arith.constant 0 : index
    %30 = vector.load %arg13[%c16, %c0_24] : memref<144x256xbf16, #tpu.memory_space<vmem>>, vector<16x256xbf16>
    tpu.vector_store %arg13[%c16, %c0_24], %29 {strides = array<i32>} : memref<144x256xbf16, #tpu.memory_space<vmem>>, vector<16x256xbf16>,
    %c0_25 = arith.constant 0 : index
    %c2 = arith.constant 2 : index
    %31 = vector.load %arg12[%c0_25, %c2] : memref<16x290xbf16, #tpu.memory_space<vmem>>, vector<16x256xbf16>
    %32 = arith.mulf %31, %8 : vector<16x256xbf16>
    %c32 = arith.constant 32 : index
    %c0_26 = arith.constant 0 : index
    %33 = vector.load %arg13[%c32, %c0_26] : memref<144x256xbf16, #tpu.memory_space<vmem>>, vector<16x256xbf16>
    tpu.vector_store %arg13[%c32, %c0_26], %32 {strides = array<i32>} : memref<144x256xbf16, #tpu.memory_space<vmem>>, vector<16x256xbf16>,
    %c0_27 = arith.constant 0 : index
    %c16_28 = arith.constant 16 : index
    %34 = vector.load %arg12[%c0_27, %c16_28] : memref<16x290xbf16, #tpu.memory_space<vmem>>, vector<16x256xbf16>
    %35 = arith.mulf %34, %5 : vector<16x256xbf16>
    %c48 = arith.constant 48 : index
    %c0_29 = arith.constant 0 : index
    %36 = vector.load %arg13[%c48, %c0_29] : memref<144x256xbf16, #tpu.memory_space<vmem>>, vector<16x256xbf16>
    tpu.vector_store %arg13[%c48, %c0_29], %35 {strides = array<i32>} : memref<144x256xbf16, #tpu.memory_space<vmem>>, vector<16x256xbf16>,
    %c0_30 = arith.constant 0 : index
    %c17_31 = arith.constant 17 : index
    %37 = vector.load %arg12[%c0_30, %c17_31] : memref<16x290xbf16, #tpu.memory_space<vmem>>, vector<16x256xbf16>
    %c64 = arith.constant 64 : index
    %c0_32 = arith.constant 0 : index
    %38 = vector.load %arg13[%c64, %c0_32] : memref<144x256xbf16, #tpu.memory_space<vmem>>, vector<16x256xbf16>
    tpu.vector_store %arg13[%c64, %c0_32], %37 {strides = array<i32>} : memref<144x256xbf16, #tpu.memory_space<vmem>>, vector<16x256xbf16>,
    %c0_33 = arith.constant 0 : index
    %c18 = arith.constant 18 : index
    %39 = vector.load %arg12[%c0_33, %c18] : memref<16x290xbf16, #tpu.memory_space<vmem>>, vector<16x256xbf16>
    %40 = arith.mulf %39, %8 : vector<16x256xbf16>
    %c80 = arith.constant 80 : index
    %c0_34 = arith.constant 0 : index
    %41 = vector.load %arg13[%c80, %c0_34] : memref<144x256xbf16, #tpu.memory_space<vmem>>, vector<16x256xbf16>
    tpu.vector_store %arg13[%c80, %c0_34], %40 {strides = array<i32>} : memref<144x256xbf16, #tpu.memory_space<vmem>>, vector<16x256xbf16>,
    %c0_35 = arith.constant 0 : index
    %c32_36 = arith.constant 32 : index
    %42 = vector.load %arg12[%c0_35, %c32_36] : memref<16x290xbf16, #tpu.memory_space<vmem>>, vector<16x256xbf16>
    %43 = arith.mulf %42, %5 : vector<16x256xbf16>
    %c96 = arith.constant 96 : index
    %c0_37 = arith.constant 0 : index
    %44 = vector.load %arg13[%c96, %c0_37] : memref<144x256xbf16, #tpu.memory_space<vmem>>, vector<16x256xbf16>
    tpu.vector_store %arg13[%c96, %c0_37], %43 {strides = array<i32>} : memref<144x256xbf16, #tpu.memory_space<vmem>>, vector<16x256xbf16>,
    %c0_38 = arith.constant 0 : index
    %c33 = arith.constant 33 : index
    %45 = vector.load %arg12[%c0_38, %c33] : memref<16x290xbf16, #tpu.memory_space<vmem>>, vector<16x256xbf16>
    %c112 = arith.constant 112 : index
    %c0_39 = arith.constant 0 : index
    %46 = vector.load %arg13[%c112, %c0_39] : memref<144x256xbf16, #tpu.memory_space<vmem>>, vector<16x256xbf16>
    tpu.vector_store %arg13[%c112, %c0_39], %45 {strides = array<i32>} : memref<144x256xbf16, #tpu.memory_space<vmem>>, vector<16x256xbf16>,
    %c0_40 = arith.constant 0 : index
    %c34 = arith.constant 34 : index
    %47 = vector.load %arg12[%c0_40, %c34] : memref<16x290xbf16, #tpu.memory_space<vmem>>, vector<16x256xbf16>
    %48 = arith.mulf %47, %8 : vector<16x256xbf16>
    %c128 = arith.constant 128 : index
    %c0_41 = arith.constant 0 : index
    %49 = vector.load %arg13[%c128, %c0_41] : memref<144x256xbf16, #tpu.memory_space<vmem>>, vector<16x256xbf16>
    tpu.vector_store %arg13[%c128, %c0_41], %48 {strides = array<i32>} : memref<144x256xbf16, #tpu.memory_space<vmem>>, vector<16x256xbf16>,
    %c0_42 = arith.constant 0 : index
    %c0_43 = arith.constant 0 : index
    %50 = vector.load %arg6[%c0_42, %c0_43] : memref<8x144xbf16, #tpu.memory_space<vmem>>, vector<8x144xbf16>
    %c0_44 = arith.constant 0 : index
    %c0_45 = arith.constant 0 : index
    %51 = vector.load %arg13[%c0_44, %c0_45] : memref<144x256xbf16, #tpu.memory_space<vmem>>, vector<144x256xbf16>
    %cst_46 = arith.constant dense<0.000000e+00> : vector<8x256xf32>
    %52 = tpu.matmul %50, %51, %cst_46 {dimension_numbers = #tpu.dot_dimension_numbers<[1], [0], [0], [1], [0, 0, 1, 1], [], []>} : vector<8x144xbf16>, vector<144x256xbf16>, vector<8x256xf32> -> vector<8x256xf32>
    %c0_47 = arith.constant 0 : index
    %c0_48 = arith.constant 0 : index
    %53 = vector.load %arg7[%c0_47, %c0_48] : memref<8x1xf32, #tpu.memory_space<vmem>>, vector<8x1xf32>
    %54 = vector.broadcast %53 : vector<8x1xf32> to vector<8x256xf32>
    %55 = arith.mulf %52, %54 : vector<8x256xf32>
    %c0_49 = arith.constant 0 : index
    %c0_50 = arith.constant 0 : index
    %56 = vector.load %arg8[%c0_49, %c0_50] : memref<8x1xf32, #tpu.memory_space<vmem>>, vector<8x1xf32>
    %57 = vector.broadcast %56 : vector<8x1xf32> to vector<8x256xf32>
    %58 = arith.addf %55, %57 : vector<8x256xf32>
    %cst_51 = arith.constant 0.000000e+00 : f32
    %59 = vector.broadcast %cst_51 : f32 to vector<8x256xf32>
    %60 = arith.cmpf ogt, %58, %59 : vector<8x256xf32>
    %cst_52 = arith.constant 1.000000e-01 : f32
    %61 = vector.broadcast %cst_52 : f32 to vector<8x256xf32>
    %62 = arith.mulf %61, %58 : vector<8x256xf32>
    %63 = arith.select %60, %58, %62 : vector<8x256xi1>, vector<8x256xf32>
    %c0_53 = arith.constant 0 : index
    %c0_54 = arith.constant 0 : index
    %64 = vector.load %arg9[%c0_53, %c0_54] : memref<24x8xbf16, #tpu.memory_space<vmem>>, vector<24x8xbf16>
    %65 = arith.truncf %63 : vector<8x256xf32> to vector<8x256xbf16>
    %cst_55 = arith.constant dense<0.000000e+00> : vector<24x256xf32>
    %66 = tpu.matmul %64, %65, %cst_55 {dimension_numbers = #tpu.dot_dimension_numbers<[1], [0], [0], [1], [0, 0, 1, 1], [], []>} : vector<24x8xbf16>, vector<8x256xbf16>, vector<24x256xf32> -> vector<24x256xf32>
    %c0_56 = arith.constant 0 : index
    %c0_57 = arith.constant 0 : index
    %67 = vector.load %arg10[%c0_56, %c0_57] : memref<24x1xf32, #tpu.memory_space<vmem>>, vector<24x1xf32>
    %68 = vector.broadcast %67 : vector<24x1xf32> to vector<24x256xf32>
    %69 = arith.addf %66, %68 : vector<24x256xf32>
    %c0_58 = arith.constant 0 : index
    %c0_59 = arith.constant 0 : index
    %c0_60 = arith.constant 0 : index
    %70 = vector.load %arg11[%c0_58, %c0_59, %c0_60] : memref<2x24x256xf32, #tpu.memory_space<vmem>>, vector<1x24x256xf32>
    %71 = vector.shape_cast %70 : vector<1x24x256xf32> to vector<24x256xf32>
    %72 = vector.shape_cast %69 : vector<24x256xf32> to vector<1x24x256xf32>
    tpu.vector_store %arg11[%c0_58, %c0_59, %c0_60], %72 {strides = array<i32>} : memref<2x24x256xf32, #tpu.memory_space<vmem>>, vector<1x24x256xf32>,
    %c0_61 = arith.constant 0 : index
    %c0_62 = arith.constant 0 : index
    %73 = vector.load %arg3[%c0_61, %c0_62] : memref<16x8xbf16, #tpu.memory_space<vmem>>, vector<16x8xbf16>
    %c1_63 = arith.constant 1 : index
    %c0_64 = arith.constant 0 : index
    %c0_65 = arith.constant 0 : index
    %74 = vector.load %arg1[%c1_63, %c0_64, %c0_65] : memref<2x8x256xbf16, #tpu.memory_space<vmem>>, vector<1x8x256xbf16>
    %75 = vector.shape_cast %74 : vector<1x8x256xbf16> to vector<8x256xbf16>
    %cst_66 = arith.constant dense<0.000000e+00> : vector<16x256xf32>
    %76 = tpu.matmul %73, %75, %cst_66 {dimension_numbers = #tpu.dot_dimension_numbers<[1], [0], [0], [1], [0, 0, 1, 1], [], []>} : vector<16x8xbf16>, vector<8x256xbf16>, vector<16x256xf32> -> vector<16x256xf32>
    %c0_67 = arith.constant 0 : index
    %c0_68 = arith.constant 0 : index
    %77 = vector.load %arg4[%c0_67, %c0_68] : memref<16x1xf32, #tpu.memory_space<vmem>>, vector<16x1xf32>
    %78 = vector.broadcast %77 : vector<16x1xf32> to vector<16x256xf32>
    %79 = arith.mulf %76, %78 : vector<16x256xf32>
    %c0_69 = arith.constant 0 : index
    %c0_70 = arith.constant 0 : index
    %80 = vector.load %arg5[%c0_69, %c0_70] : memref<16x1xf32, #tpu.memory_space<vmem>>, vector<16x1xf32>
    %81 = vector.broadcast %80 : vector<16x1xf32> to vector<16x256xf32>
    %82 = arith.addf %79, %81 : vector<16x256xf32>
    %cst_71 = arith.constant 0.000000e+00 : f32
    %83 = vector.broadcast %cst_71 : f32 to vector<16x256xf32>
    %84 = arith.cmpf ogt, %82, %83 : vector<16x256xf32>
    %cst_72 = arith.constant 1.000000e-01 : f32
    %85 = vector.broadcast %cst_72 : f32 to vector<16x256xf32>
    %86 = arith.mulf %85, %82 : vector<16x256xf32>
    %87 = arith.select %84, %82, %86 : vector<16x256xi1>, vector<16x256xf32>
    %88 = arith.truncf %87 : vector<16x256xf32> to vector<16x256xbf16>
    %c0_73 = arith.constant 0 : index
    %c17_74 = arith.constant 17 : index
    %89 = vector.load %arg12[%c0_73, %c17_74] : memref<16x290xbf16, #tpu.memory_space<vmem>>, vector<16x256xbf16>
    tpu.vector_store %arg12[%c0_73, %c17_74], %88 {strides = array<i32>} : memref<16x290xbf16, #tpu.memory_space<vmem>>, vector<16x256xbf16>,
    %c0_75 = arith.constant 0 : index
    %c0_76 = arith.constant 0 : index
    %90 = vector.load %arg12[%c0_75, %c0_76] : memref<16x290xbf16, #tpu.memory_space<vmem>>, vector<16x256xbf16>
    %91 = arith.mulf %90, %5 : vector<16x256xbf16>
    %c0_77 = arith.constant 0 : index
    %c0_78 = arith.constant 0 : index
    %92 = vector.load %arg13[%c0_77, %c0_78] : memref<144x256xbf16, #tpu.memory_space<vmem>>, vector<16x256xbf16>
    tpu.vector_store %arg13[%c0_77, %c0_78], %91 {strides = array<i32>} : memref<144x256xbf16, #tpu.memory_space<vmem>>, vector<16x256xbf16>,
    %c0_79 = arith.constant 0 : index
    %c1_80 = arith.constant 1 : index
    %93 = vector.load %arg12[%c0_79, %c1_80] : memref<16x290xbf16, #tpu.memory_space<vmem>>, vector<16x256xbf16>
    %c16_81 = arith.constant 16 : index
    %c0_82 = arith.constant 0 : index
    %94 = vector.load %arg13[%c16_81, %c0_82] : memref<144x256xbf16, #tpu.memory_space<vmem>>, vector<16x256xbf16>
    tpu.vector_store %arg13[%c16_81, %c0_82], %93 {strides = array<i32>} : memref<144x256xbf16, #tpu.memory_space<vmem>>, vector<16x256xbf16>,
    %c0_83 = arith.constant 0 : index
    %c2_84 = arith.constant 2 : index
    %95 = vector.load %arg12[%c0_83, %c2_84] : memref<16x290xbf16, #tpu.memory_space<vmem>>, vector<16x256xbf16>
    %96 = arith.mulf %95, %8 : vector<16x256xbf16>
    %c32_85 = arith.constant 32 : index
    %c0_86 = arith.constant 0 : index
    %97 = vector.load %arg13[%c32_85, %c0_86] : memref<144x256xbf16, #tpu.memory_space<vmem>>, vector<16x256xbf16>
    tpu.vector_store %arg13[%c32_85, %c0_86], %96 {strides = array<i32>} : memref<144x256xbf16, #tpu.memory_space<vmem>>, vector<16x256xbf16>,
    %c0_87 = arith.constant 0 : index
    %c16_88 = arith.constant 16 : index
    %98 = vector.load %arg12[%c0_87, %c16_88] : memref<16x290xbf16, #tpu.memory_space<vmem>>, vector<16x256xbf16>
    %99 = arith.mulf %98, %5 : vector<16x256xbf16>
    %c48_89 = arith.constant 48 : index
    %c0_90 = arith.constant 0 : index
    %100 = vector.load %arg13[%c48_89, %c0_90] : memref<144x256xbf16, #tpu.memory_space<vmem>>, vector<16x256xbf16>
    tpu.vector_store %arg13[%c48_89, %c0_90], %99 {strides = array<i32>} : memref<144x256xbf16, #tpu.memory_space<vmem>>, vector<16x256xbf16>,
    %c0_91 = arith.constant 0 : index
    %c17_92 = arith.constant 17 : index
    %101 = vector.load %arg12[%c0_91, %c17_92] : memref<16x290xbf16, #tpu.memory_space<vmem>>, vector<16x256xbf16>
    %c64_93 = arith.constant 64 : index
    %c0_94 = arith.constant 0 : index
    %102 = vector.load %arg13[%c64_93, %c0_94] : memref<144x256xbf16, #tpu.memory_space<vmem>>, vector<16x256xbf16>
    tpu.vector_store %arg13[%c64_93, %c0_94], %101 {strides = array<i32>} : memref<144x256xbf16, #tpu.memory_space<vmem>>, vector<16x256xbf16>,
    %c0_95 = arith.constant 0 : index
    %c18_96 = arith.constant 18 : index
    %103 = vector.load %arg12[%c0_95, %c18_96] : memref<16x290xbf16, #tpu.memory_space<vmem>>, vector<16x256xbf16>
    %104 = arith.mulf %103, %8 : vector<16x256xbf16>
    %c80_97 = arith.constant 80 : index
    %c0_98 = arith.constant 0 : index
    %105 = vector.load %arg13[%c80_97, %c0_98] : memref<144x256xbf16, #tpu.memory_space<vmem>>, vector<16x256xbf16>
    tpu.vector_store %arg13[%c80_97, %c0_98], %104 {strides = array<i32>} : memref<144x256xbf16, #tpu.memory_space<vmem>>, vector<16x256xbf16>,
    %c0_99 = arith.constant 0 : index
    %c32_100 = arith.constant 32 : index
    %106 = vector.load %arg12[%c0_99, %c32_100] : memref<16x290xbf16, #tpu.memory_space<vmem>>, vector<16x256xbf16>
    %107 = arith.mulf %106, %5 : vector<16x256xbf16>
    %c96_101 = arith.constant 96 : index
    %c0_102 = arith.constant 0 : index
    %108 = vector.load %arg13[%c96_101, %c0_102] : memref<144x256xbf16, #tpu.memory_space<vmem>>, vector<16x256xbf16>
    tpu.vector_store %arg13[%c96_101, %c0_102], %107 {strides = array<i32>} : memref<144x256xbf16, #tpu.memory_space<vmem>>, vector<16x256xbf16>,
    %c0_103 = arith.constant 0 : index
    %c33_104 = arith.constant 33 : index
    %109 = vector.load %arg12[%c0_103, %c33_104] : memref<16x290xbf16, #tpu.memory_space<vmem>>, vector<16x256xbf16>
    %c112_105 = arith.constant 112 : index
    %c0_106 = arith.constant 0 : index
    %110 = vector.load %arg13[%c112_105, %c0_106] : memref<144x256xbf16, #tpu.memory_space<vmem>>, vector<16x256xbf16>
    tpu.vector_store %arg13[%c112_105, %c0_106], %109 {strides = array<i32>} : memref<144x256xbf16, #tpu.memory_space<vmem>>, vector<16x256xbf16>,
    %c0_107 = arith.constant 0 : index
    %c34_108 = arith.constant 34 : index
    %111 = vector.load %arg12[%c0_107, %c34_108] : memref<16x290xbf16, #tpu.memory_space<vmem>>, vector<16x256xbf16>
    %112 = arith.mulf %111, %8 : vector<16x256xbf16>
    %c128_109 = arith.constant 128 : index
    %c0_110 = arith.constant 0 : index
    %113 = vector.load %arg13[%c128_109, %c0_110] : memref<144x256xbf16, #tpu.memory_space<vmem>>, vector<16x256xbf16>
    tpu.vector_store %arg13[%c128_109, %c0_110], %112 {strides = array<i32>} : memref<144x256xbf16, #tpu.memory_space<vmem>>, vector<16x256xbf16>,
    %c0_111 = arith.constant 0 : index
    %c0_112 = arith.constant 0 : index
    %114 = vector.load %arg6[%c0_111, %c0_112] : memref<8x144xbf16, #tpu.memory_space<vmem>>, vector<8x144xbf16>
    %c0_113 = arith.constant 0 : index
    %c0_114 = arith.constant 0 : index
    %115 = vector.load %arg13[%c0_113, %c0_114] : memref<144x256xbf16, #tpu.memory_space<vmem>>, vector<144x256xbf16>
    %cst_115 = arith.constant dense<0.000000e+00> : vector<8x256xf32>
    %116 = tpu.matmul %114, %115, %cst_115 {dimension_numbers = #tpu.dot_dimension_numbers<[1], [0], [0], [1], [0, 0, 1, 1], [], []>} : vector<8x144xbf16>, vector<144x256xbf16>, vector<8x256xf32> -> vector<8x256xf32>
    %c0_116 = arith.constant 0 : index
    %c0_117 = arith.constant 0 : index
    %117 = vector.load %arg7[%c0_116, %c0_117] : memref<8x1xf32, #tpu.memory_space<vmem>>, vector<8x1xf32>
    %118 = vector.broadcast %117 : vector<8x1xf32> to vector<8x256xf32>
    %119 = arith.mulf %116, %118 : vector<8x256xf32>
    %c0_118 = arith.constant 0 : index
    %c0_119 = arith.constant 0 : index
    %120 = vector.load %arg8[%c0_118, %c0_119] : memref<8x1xf32, #tpu.memory_space<vmem>>, vector<8x1xf32>
    %121 = vector.broadcast %120 : vector<8x1xf32> to vector<8x256xf32>
    %122 = arith.addf %119, %121 : vector<8x256xf32>
    %cst_120 = arith.constant 0.000000e+00 : f32
    %123 = vector.broadcast %cst_120 : f32 to vector<8x256xf32>
    %124 = arith.cmpf ogt, %122, %123 : vector<8x256xf32>
    %cst_121 = arith.constant 1.000000e-01 : f32
    %125 = vector.broadcast %cst_121 : f32 to vector<8x256xf32>
    %126 = arith.mulf %125, %122 : vector<8x256xf32>
    %127 = arith.select %124, %122, %126 : vector<8x256xi1>, vector<8x256xf32>
    %c0_122 = arith.constant 0 : index
    %c0_123 = arith.constant 0 : index
    %128 = vector.load %arg9[%c0_122, %c0_123] : memref<24x8xbf16, #tpu.memory_space<vmem>>, vector<24x8xbf16>
    %129 = arith.truncf %127 : vector<8x256xf32> to vector<8x256xbf16>
    %cst_124 = arith.constant dense<0.000000e+00> : vector<24x256xf32>
    %130 = tpu.matmul %128, %129, %cst_124 {dimension_numbers = #tpu.dot_dimension_numbers<[1], [0], [0], [1], [0, 0, 1, 1], [], []>} : vector<24x8xbf16>, vector<8x256xbf16>, vector<24x256xf32> -> vector<24x256xf32>
    %c0_125 = arith.constant 0 : index
    %c0_126 = arith.constant 0 : index
    %131 = vector.load %arg10[%c0_125, %c0_126] : memref<24x1xf32, #tpu.memory_space<vmem>>, vector<24x1xf32>
    %132 = vector.broadcast %131 : vector<24x1xf32> to vector<24x256xf32>
    %133 = arith.addf %130, %132 : vector<24x256xf32>
    %c1_127 = arith.constant 1 : index
    %c0_128 = arith.constant 0 : index
    %c0_129 = arith.constant 0 : index
    %134 = vector.load %arg11[%c1_127, %c0_128, %c0_129] : memref<2x24x256xf32, #tpu.memory_space<vmem>>, vector<1x24x256xf32>
    %135 = vector.shape_cast %134 : vector<1x24x256xf32> to vector<24x256xf32>
    %136 = vector.shape_cast %133 : vector<24x256xf32> to vector<1x24x256xf32>
    tpu.vector_store %arg11[%c1_127, %c0_128, %c0_129], %136 {strides = array<i32>} : memref<2x24x256xf32, #tpu.memory_space<vmem>>, vector<1x24x256xf32>,
    return
  }
  func.func @transform_0(%arg0: i32) -> (i32, i32, i32) {
    %c0_i32 = arith.constant 0 : i32
    %c0_i32_0 = arith.constant 0 : i32
    %c0_i32_1 = arith.constant 0 : i32
    return %arg0, %c0_i32, %c0_i32_0 : i32, i32, i32
  }
  func.func @transform_1(%arg0: i32) -> (i32, i32) {
    %c0_i32 = arith.constant 0 : i32
    %c0_i32_0 = arith.constant 0 : i32
    %c0_i32_1 = arith.constant 0 : i32
    return %c0_i32, %c0_i32_0 : i32, i32
  }
  func.func @transform_2(%arg0: i32) -> (i32, i32) {
    %c0_i32 = arith.constant 0 : i32
    %c0_i32_0 = arith.constant 0 : i32
    %c0_i32_1 = arith.constant 0 : i32
    return %c0_i32, %c0_i32_0 : i32, i32
  }
  func.func @transform_3(%arg0: i32) -> (i32, i32) {
    %c0_i32 = arith.constant 0 : i32
    %c0_i32_0 = arith.constant 0 : i32
    %c0_i32_1 = arith.constant 0 : i32
    return %c0_i32, %c0_i32_0 : i32, i32
  }
  func.func @transform_4(%arg0: i32) -> (i32, i32) {
    %c0_i32 = arith.constant 0 : i32
    %c0_i32_0 = arith.constant 0 : i32
    %c0_i32_1 = arith.constant 0 : i32
    return %c0_i32, %c0_i32_0 : i32, i32
  }
  func.func @transform_5(%arg0: i32) -> (i32, i32) {
    %c0_i32 = arith.constant 0 : i32
    %c0_i32_0 = arith.constant 0 : i32
    %c0_i32_1 = arith.constant 0 : i32
    return %c0_i32, %c0_i32_0 : i32, i32
  }
  func.func @transform_6(%arg0: i32) -> (i32, i32) {
    %c0_i32 = arith.constant 0 : i32
    %c0_i32_0 = arith.constant 0 : i32
    %c0_i32_1 = arith.constant 0 : i32
    return %c0_i32, %c0_i32_0 : i32, i32
  }
  func.func @transform_7(%arg0: i32) -> (i32, i32) {
    %c0_i32 = arith.constant 0 : i32
    %c0_i32_0 = arith.constant 0 : i32
    %c0_i32_1 = arith.constant 0 : i32
    return %c0_i32, %c0_i32_0 : i32, i32
  }
  func.func @transform_8(%arg0: i32) -> (i32, i32) {
    %c0_i32 = arith.constant 0 : i32
    %c0_i32_0 = arith.constant 0 : i32
    %c0_i32_1 = arith.constant 0 : i32
    return %c0_i32, %c0_i32_0 : i32, i32
  }
  func.func @transform_9(%arg0: i32) -> (i32, i32) {
    %c0_i32 = arith.constant 0 : i32
    %c0_i32_0 = arith.constant 0 : i32
    %c0_i32_1 = arith.constant 0 : i32
    return %c0_i32, %c0_i32_0 : i32, i32
  }
  func.func @transform_10(%arg0: i32) -> (i32, i32, i32) {
    %c0_i32 = arith.constant 0 : i32
    %c0_i32_0 = arith.constant 0 : i32
    %c0_i32_1 = arith.constant 0 : i32
    return %arg0, %c0_i32, %c0_i32_0 : i32, i32, i32
  }
}

module attributes {stable_mosaic.version = 11 : i64} {
  func.func @_yolo_kernel(%arg0: i32, %arg1: memref<2x8x256xbf16, #tpu.memory_space<vmem>>, %arg2: memref<3x256xbf16, #tpu.memory_space<vmem>>, %arg3: memref<16x8xbf16, #tpu.memory_space<vmem>>, %arg4: memref<16x1xf32, #tpu.memory_space<vmem>>, %arg5: memref<16x1xf32, #tpu.memory_space<vmem>>, %arg6: memref<8x144xbf16, #tpu.memory_space<vmem>>, %arg7: memref<8x1xf32, #tpu.memory_space<vmem>>, %arg8: memref<8x1xf32, #tpu.memory_space<vmem>>, %arg9: memref<24x8xbf16, #tpu.memory_space<vmem>>, %arg10: memref<24x1xf32, #tpu.memory_space<vmem>>, %arg11: memref<2x24x256xf32, #tpu.memory_space<vmem>>, %arg12: memref<16x290xbf16, #tpu.memory_space<vmem>>, %arg13: memref<144x256xbf16, #tpu.memory_space<vmem>>) attributes {dimension_semantics = [#tpu.dimension_semantics<parallel>], iteration_bounds = array<i64: 1>, scalar_prefetch = 0 : i64, scratch_operands = 2 : i64, tpu.core_type = #tpu.core_type<tc>, window_params = [{transform_indices = @transform_0, window_bounds = array<i64: 2, 8, 256>}, {pipeline_mode = #tpu.pipeline_mode<synchronous>, transform_indices = @transform_1, window_bounds = array<i64: 3, 256>}, {pipeline_mode = #tpu.pipeline_mode<synchronous>, transform_indices = @transform_2, window_bounds = array<i64: 16, 8>}, {pipeline_mode = #tpu.pipeline_mode<synchronous>, transform_indices = @transform_3, window_bounds = array<i64: 16, 1>}, {pipeline_mode = #tpu.pipeline_mode<synchronous>, transform_indices = @transform_4, window_bounds = array<i64: 16, 1>}, {pipeline_mode = #tpu.pipeline_mode<synchronous>, transform_indices = @transform_5, window_bounds = array<i64: 8, 144>}, {pipeline_mode = #tpu.pipeline_mode<synchronous>, transform_indices = @transform_6, window_bounds = array<i64: 8, 1>}, {pipeline_mode = #tpu.pipeline_mode<synchronous>, transform_indices = @transform_7, window_bounds = array<i64: 8, 1>}, {pipeline_mode = #tpu.pipeline_mode<synchronous>, transform_indices = @transform_8, window_bounds = array<i64: 24, 8>}, {pipeline_mode = #tpu.pipeline_mode<synchronous>, transform_indices = @transform_9, window_bounds = array<i64: 24, 1>}, {transform_indices = @transform_10, window_bounds = array<i64: 2, 24, 256>}]} {
    %cst = arith.constant 0.000000e+00 : bf16
    %0 = vector.broadcast %cst : bf16 to vector<16x17xbf16>
    %c0 = arith.constant 0 : index
    %c0_0 = arith.constant 0 : index
    %1 = vector.load %arg12[%c0, %c0_0] : memref<16x290xbf16, #tpu.memory_space<vmem>>, vector<16x17xbf16>
    tpu.vector_store %arg12[%c0, %c0_0], %0 {strides = array<i32>} : memref<16x290xbf16, #tpu.memory_space<vmem>>, vector<16x17xbf16>,
    %c0_1 = arith.constant 0 : index
    %c273 = arith.constant 273 : index
    %2 = vector.load %arg12[%c0_1, %c273] : memref<16x290xbf16, #tpu.memory_space<vmem>>, vector<16x17xbf16>
    tpu.vector_store %arg12[%c0_1, %c273], %0 {strides = array<i32>} : memref<16x290xbf16, #tpu.memory_space<vmem>>, vector<16x17xbf16>,
    %c0_2 = arith.constant 0 : index
    %c0_3 = arith.constant 0 : index
    %3 = vector.load %arg2[%c0_2, %c0_3] : memref<3x256xbf16, #tpu.memory_space<vmem>>, vector<1x256xbf16>
    %4 = vector.shape_cast %3 : vector<1x256xbf16> to vector<1x256xbf16>
    %5 = vector.broadcast %4 : vector<1x256xbf16> to vector<16x256xbf16>
    %c1 = arith.constant 1 : index
    %c0_4 = arith.constant 0 : index
    %6 = vector.load %arg2[%c1, %c0_4] : memref<3x256xbf16, #tpu.memory_space<vmem>>, vector<1x256xbf16>
    %7 = vector.shape_cast %6 : vector<1x256xbf16> to vector<1x256xbf16>
    %8 = vector.broadcast %7 : vector<1x256xbf16> to vector<16x256xbf16>
    %c0_5 = arith.constant 0 : index
    %c0_6 = arith.constant 0 : index
    %9 = vector.load %arg3[%c0_5, %c0_6] : memref<16x8xbf16, #tpu.memory_space<vmem>>, vector<16x8xbf16>
    %c0_7 = arith.constant 0 : index
    %c0_8 = arith.constant 0 : index
    %c0_9 = arith.constant 0 : index
    %10 = vector.load %arg1[%c0_7, %c0_8, %c0_9] : memref<2x8x256xbf16, #tpu.memory_space<vmem>>, vector<1x8x256xbf16>
    %11 = vector.shape_cast %10 : vector<1x8x256xbf16> to vector<8x256xbf16>
    %cst_10 = arith.constant dense<0.000000e+00> : vector<16x256xf32>
    %12 = tpu.matmul %9, %11, %cst_10 {dimension_numbers = #tpu.dot_dimension_numbers<[1], [0], [0], [1], [0, 0, 1, 1], [], []>} : vector<16x8xbf16>, vector<8x256xbf16>, vector<16x256xf32> -> vector<16x256xf32>
    %c0_11 = arith.constant 0 : index
    %c0_12 = arith.constant 0 : index
    %13 = vector.load %arg4[%c0_11, %c0_12] : memref<16x1xf32, #tpu.memory_space<vmem>>, vector<16x1xf32>
    %14 = vector.broadcast %13 : vector<16x1xf32> to vector<16x256xf32>
    %15 = arith.mulf %12, %14 : vector<16x256xf32>
    %c0_13 = arith.constant 0 : index
    %c0_14 = arith.constant 0 : index
    %16 = vector.load %arg5[%c0_13, %c0_14] : memref<16x1xf32, #tpu.memory_space<vmem>>, vector<16x1xf32>
    %17 = vector.broadcast %16 : vector<16x1xf32> to vector<16x256xf32>
    %18 = arith.addf %15, %17 : vector<16x256xf32>
    %cst_15 = arith.constant 0.000000e+00 : f32
    %19 = vector.broadcast %cst_15 : f32 to vector<16x256xf32>
    %20 = arith.cmpf ogt, %18, %19 : vector<16x256xf32>
    %cst_16 = arith.constant 1.000000e-01 : f32
    %21 = vector.broadcast %cst_16 : f32 to vector<16x256xf32>
    %22 = arith.mulf %21, %18 : vector<16x256xf32>
    %23 = arith.select %20, %18, %22 : vector<16x256xi1>, vector<16x256xf32>
    %24 = arith.truncf %23 : vector<16x256xf32> to vector<16x256xbf16>
    %c0_17 = arith.constant 0 : index
    %c17 = arith.constant 17 : index
    %25 = vector.load %arg12[%c0_17, %c17] : memref<16x290xbf16, #tpu.memory_space<vmem>>, vector<16x256xbf16>
    tpu.vector_store %arg12[%c0_17, %c17], %24 {strides = array<i32>} : memref<16x290xbf16, #tpu.memory_space<vmem>>, vector<16x256xbf16>,
    %c0_18 = arith.constant 0 : index
    %c0_19 = arith.constant 0 : index
    %26 = vector.load %arg12[%c0_18, %c0_19] : memref<16x290xbf16, #tpu.memory_space<vmem>>, vector<16x256xbf16>
    %27 = arith.mulf %26, %5 : vector<16x256xbf16>
    %c0_20 = arith.constant 0 : index
    %c0_21 = arith.constant 0 : index
    %28 = vector.load %arg13[%c0_20, %c0_21] : memref<144x256xbf16, #tpu.memory_space<vmem>>, vector<16x256xbf16>
    tpu.vector_store %arg13[%c0_20, %c0_21], %27 {strides = array<i32>} : memref<144x256xbf16, #tpu.memory_space<vmem>>, vector<16x256xbf16>,
    %c0_22 = arith.constant 0 : index
    %c1_23 = arith.constant 1 : index
    %29 = vector.load %arg12[%c0_22, %c1_23] : memref<16x290xbf16, #tpu.memory_space<vmem>>, vector<16x256xbf16>
    %c16 = arith.constant 16 : index
    %c0_24 = arith.constant 0 : index
    %30 = vector.load %arg13[%c16, %c0_24] : memref<144x256xbf16, #tpu.memory_space<vmem>>, vector<16x256xbf16>
    tpu.vector_store %arg13[%c16, %c0_24], %29 {strides = array<i32>} : memref<144x256xbf16, #tpu.memory_space<vmem>>, vector<16x256xbf16>,
    %c0_25 = arith.constant 0 : index
    %c2 = arith.constant 2 : index
    %31 = vector.load %arg12[%c0_25, %c2] : memref<16x290xbf16, #tpu.memory_space<vmem>>, vector<16x256xbf16>
    %32 = arith.mulf %31, %8 : vector<16x256xbf16>
    %c32 = arith.constant 32 : index
    %c0_26 = arith.constant 0 : index
    %33 = vector.load %arg13[%c32, %c0_26] : memref<144x256xbf16, #tpu.memory_space<vmem>>, vector<16x256xbf16>
    tpu.vector_store %arg13[%c32, %c0_26], %32 {strides = array<i32>} : memref<144x256xbf16, #tpu.memory_space<vmem>>, vector<16x256xbf16>,
    %c0_27 = arith.constant 0 : index
    %c16_28 = arith.constant 16 : index
    %34 = vector.load %arg12[%c0_27, %c16_28] : memref<16x290xbf16, #tpu.memory_space<vmem>>, vector<16x256xbf16>
    %35 = arith.mulf %34, %5 : vector<16x256xbf16>
    %c48 = arith.constant 48 : index
    %c0_29 = arith.constant 0 : index
    %36 = vector.load %arg13[%c48, %c0_29] : memref<144x256xbf16, #tpu.memory_space<vmem>>, vector<16x256xbf16>
    tpu.vector_store %arg13[%c48, %c0_29], %35 {strides = array<i32>} : memref<144x256xbf16, #tpu.memory_space<vmem>>, vector<16x256xbf16>,
    %c0_30 = arith.constant 0 : index
    %c17_31 = arith.constant 17 : index
    %37 = vector.load %arg12[%c0_30, %c17_31] : memref<16x290xbf16, #tpu.memory_space<vmem>>, vector<16x256xbf16>
    %c64 = arith.constant 64 : index
    %c0_32 = arith.constant 0 : index
    %38 = vector.load %arg13[%c64, %c0_32] : memref<144x256xbf16, #tpu.memory_space<vmem>>, vector<16x256xbf16>
    tpu.vector_store %arg13[%c64, %c0_32], %37 {strides = array<i32>} : memref<144x256xbf16, #tpu.memory_space<vmem>>, vector<16x256xbf16>,
    %c0_33 = arith.constant 0 : index
    %c18 = arith.constant 18 : index
    %39 = vector.load %arg12[%c0_33, %c18] : memref<16x290xbf16, #tpu.memory_space<vmem>>, vector<16x256xbf16>
    %40 = arith.mulf %39, %8 : vector<16x256xbf16>
    %c80 = arith.constant 80 : index
    %c0_34 = arith.constant 0 : index
    %41 = vector.load %arg13[%c80, %c0_34] : memref<144x256xbf16, #tpu.memory_space<vmem>>, vector<16x256xbf16>
    tpu.vector_store %arg13[%c80, %c0_34], %40 {strides = array<i32>} : memref<144x256xbf16, #tpu.memory_space<vmem>>, vector<16x256xbf16>,
    %c0_35 = arith.constant 0 : index
    %c32_36 = arith.constant 32 : index
    %42 = vector.load %arg12[%c0_35, %c32_36] : memref<16x290xbf16, #tpu.memory_space<vmem>>, vector<16x256xbf16>
    %43 = arith.mulf %42, %5 : vector<16x256xbf16>
    %c96 = arith.constant 96 : index
    %c0_37 = arith.constant 0 : index
    %44 = vector.load %arg13[%c96, %c0_37] : memref<144x256xbf16, #tpu.memory_space<vmem>>, vector<16x256xbf16>
    tpu.vector_store %arg13[%c96, %c0_37], %43 {strides = array<i32>} : memref<144x256xbf16, #tpu.memory_space<vmem>>, vector<16x256xbf16>,
    %c0_38 = arith.constant 0 : index
    %c33 = arith.constant 33 : index
    %45 = vector.load %arg12[%c0_38, %c33] : memref<16x290xbf16, #tpu.memory_space<vmem>>, vector<16x256xbf16>
    %c112 = arith.constant 112 : index
    %c0_39 = arith.constant 0 : index
    %46 = vector.load %arg13[%c112, %c0_39] : memref<144x256xbf16, #tpu.memory_space<vmem>>, vector<16x256xbf16>
    tpu.vector_store %arg13[%c112, %c0_39], %45 {strides = array<i32>} : memref<144x256xbf16, #tpu.memory_space<vmem>>, vector<16x256xbf16>,
    %c0_40 = arith.constant 0 : index
    %c34 = arith.constant 34 : index
    %47 = vector.load %arg12[%c0_40, %c34] : memref<16x290xbf16, #tpu.memory_space<vmem>>, vector<16x256xbf16>
    %48 = arith.mulf %47, %8 : vector<16x256xbf16>
    %c128 = arith.constant 128 : index
    %c0_41 = arith.constant 0 : index
    %49 = vector.load %arg13[%c128, %c0_41] : memref<144x256xbf16, #tpu.memory_space<vmem>>, vector<16x256xbf16>
    tpu.vector_store %arg13[%c128, %c0_41], %48 {strides = array<i32>} : memref<144x256xbf16, #tpu.memory_space<vmem>>, vector<16x256xbf16>,
    %c0_42 = arith.constant 0 : index
    %c0_43 = arith.constant 0 : index
    %50 = vector.load %arg6[%c0_42, %c0_43] : memref<8x144xbf16, #tpu.memory_space<vmem>>, vector<8x144xbf16>
    %c0_44 = arith.constant 0 : index
    %c0_45 = arith.constant 0 : index
    %51 = vector.load %arg13[%c0_44, %c0_45] : memref<144x256xbf16, #tpu.memory_space<vmem>>, vector<144x256xbf16>
    %cst_46 = arith.constant dense<0.000000e+00> : vector<8x256xf32>
    %52 = tpu.matmul %50, %51, %cst_46 {dimension_numbers = #tpu.dot_dimension_numbers<[1], [0], [0], [1], [0, 0, 1, 1], [], []>} : vector<8x144xbf16>, vector<144x256xbf16>, vector<8x256xf32> -> vector<8x256xf32>
    %c0_47 = arith.constant 0 : index
    %c0_48 = arith.constant 0 : index
    %53 = vector.load %arg7[%c0_47, %c0_48] : memref<8x1xf32, #tpu.memory_space<vmem>>, vector<8x1xf32>
    %54 = vector.broadcast %53 : vector<8x1xf32> to vector<8x256xf32>
    %55 = arith.mulf %52, %54 : vector<8x256xf32>
    %c0_49 = arith.constant 0 : index
    %c0_50 = arith.constant 0 : index
    %56 = vector.load %arg8[%c0_49, %c0_50] : memref<8x1xf32, #tpu.memory_space<vmem>>, vector<8x1xf32>
    %57 = vector.broadcast %56 : vector<8x1xf32> to vector<8x256xf32>
    %58 = arith.addf %55, %57 : vector<8x256xf32>
    %cst_51 = arith.constant 0.000000e+00 : f32
    %59 = vector.broadcast %cst_51 : f32 to vector<8x256xf32>
    %60 = arith.cmpf ogt, %58, %59 : vector<8x256xf32>
    %cst_52 = arith.constant 1.000000e-01 : f32
    %61 = vector.broadcast %cst_52 : f32 to vector<8x256xf32>
    %62 = arith.mulf %61, %58 : vector<8x256xf32>
    %63 = arith.select %60, %58, %62 : vector<8x256xi1>, vector<8x256xf32>
    %c0_53 = arith.constant 0 : index
    %c0_54 = arith.constant 0 : index
    %64 = vector.load %arg9[%c0_53, %c0_54] : memref<24x8xbf16, #tpu.memory_space<vmem>>, vector<24x8xbf16>
    %65 = arith.truncf %63 : vector<8x256xf32> to vector<8x256xbf16>
    %cst_55 = arith.constant dense<0.000000e+00> : vector<24x256xf32>
    %66 = tpu.matmul %64, %65, %cst_55 {dimension_numbers = #tpu.dot_dimension_numbers<[1], [0], [0], [1], [0, 0, 1, 1], [], []>} : vector<24x8xbf16>, vector<8x256xbf16>, vector<24x256xf32> -> vector<24x256xf32>
    %c0_56 = arith.constant 0 : index
    %c0_57 = arith.constant 0 : index
    %67 = vector.load %arg10[%c0_56, %c0_57] : memref<24x1xf32, #tpu.memory_space<vmem>>, vector<24x1xf32>
    %68 = vector.broadcast %67 : vector<24x1xf32> to vector<24x256xf32>
    %69 = arith.addf %66, %68 : vector<24x256xf32>
    %c0_58 = arith.constant 0 : index
    %c0_59 = arith.constant 0 : index
    %c0_60 = arith.constant 0 : index
    %70 = vector.load %arg11[%c0_58, %c0_59, %c0_60] : memref<2x24x256xf32, #tpu.memory_space<vmem>>, vector<1x24x256xf32>
    %71 = vector.shape_cast %70 : vector<1x24x256xf32> to vector<24x256xf32>
    %72 = vector.shape_cast %69 : vector<24x256xf32> to vector<1x24x256xf32>
    tpu.vector_store %arg11[%c0_58, %c0_59, %c0_60], %72 {strides = array<i32>} : memref<2x24x256xf32, #tpu.memory_space<vmem>>, vector<1x24x256xf32>,
    %c0_61 = arith.constant 0 : index
    %c0_62 = arith.constant 0 : index
    %73 = vector.load %arg3[%c0_61, %c0_62] : memref<16x8xbf16, #tpu.memory_space<vmem>>, vector<16x8xbf16>
    %c1_63 = arith.constant 1 : index
    %c0_64 = arith.constant 0 : index
    %c0_65 = arith.constant 0 : index
    %74 = vector.load %arg1[%c1_63, %c0_64, %c0_65] : memref<2x8x256xbf16, #tpu.memory_space<vmem>>, vector<1x8x256xbf16>
    %75 = vector.shape_cast %74 : vector<1x8x256xbf16> to vector<8x256xbf16>
    %cst_66 = arith.constant dense<0.000000e+00> : vector<16x256xf32>
    %76 = tpu.matmul %73, %75, %cst_66 {dimension_numbers = #tpu.dot_dimension_numbers<[1], [0], [0], [1], [0, 0, 1, 1], [], []>} : vector<16x8xbf16>, vector<8x256xbf16>, vector<16x256xf32> -> vector<16x256xf32>
    %c0_67 = arith.constant 0 : index
    %c0_68 = arith.constant 0 : index
    %77 = vector.load %arg4[%c0_67, %c0_68] : memref<16x1xf32, #tpu.memory_space<vmem>>, vector<16x1xf32>
    %78 = vector.broadcast %77 : vector<16x1xf32> to vector<16x256xf32>
    %79 = arith.mulf %76, %78 : vector<16x256xf32>
    %c0_69 = arith.constant 0 : index
    %c0_70 = arith.constant 0 : index
    %80 = vector.load %arg5[%c0_69, %c0_70] : memref<16x1xf32, #tpu.memory_space<vmem>>, vector<16x1xf32>
    %81 = vector.broadcast %80 : vector<16x1xf32> to vector<16x256xf32>
    %82 = arith.addf %79, %81 : vector<16x256xf32>
    %cst_71 = arith.constant 0.000000e+00 : f32
    %83 = vector.broadcast %cst_71 : f32 to vector<16x256xf32>
    %84 = arith.cmpf ogt, %82, %83 : vector<16x256xf32>
    %cst_72 = arith.constant 1.000000e-01 : f32
    %85 = vector.broadcast %cst_72 : f32 to vector<16x256xf32>
    %86 = arith.mulf %85, %82 : vector<16x256xf32>
    %87 = arith.select %84, %82, %86 : vector<16x256xi1>, vector<16x256xf32>
    %88 = arith.truncf %87 : vector<16x256xf32> to vector<16x256xbf16>
    %c0_73 = arith.constant 0 : index
    %c17_74 = arith.constant 17 : index
    %89 = vector.load %arg12[%c0_73, %c17_74] : memref<16x290xbf16, #tpu.memory_space<vmem>>, vector<16x256xbf16>
    tpu.vector_store %arg12[%c0_73, %c17_74], %88 {strides = array<i32>} : memref<16x290xbf16, #tpu.memory_space<vmem>>, vector<16x256xbf16>,
    %c0_75 = arith.constant 0 : index
    %c0_76 = arith.constant 0 : index
    %90 = vector.load %arg12[%c0_75, %c0_76] : memref<16x290xbf16, #tpu.memory_space<vmem>>, vector<16x256xbf16>
    %91 = arith.mulf %90, %5 : vector<16x256xbf16>
    %c0_77 = arith.constant 0 : index
    %c0_78 = arith.constant 0 : index
    %92 = vector.load %arg13[%c0_77, %c0_78] : memref<144x256xbf16, #tpu.memory_space<vmem>>, vector<16x256xbf16>
    tpu.vector_store %arg13[%c0_77, %c0_78], %91 {strides = array<i32>} : memref<144x256xbf16, #tpu.memory_space<vmem>>, vector<16x256xbf16>,
    %c0_79 = arith.constant 0 : index
    %c1_80 = arith.constant 1 : index
    %93 = vector.load %arg12[%c0_79, %c1_80] : memref<16x290xbf16, #tpu.memory_space<vmem>>, vector<16x256xbf16>
    %c16_81 = arith.constant 16 : index
    %c0_82 = arith.constant 0 : index
    %94 = vector.load %arg13[%c16_81, %c0_82] : memref<144x256xbf16, #tpu.memory_space<vmem>>, vector<16x256xbf16>
    tpu.vector_store %arg13[%c16_81, %c0_82], %93 {strides = array<i32>} : memref<144x256xbf16, #tpu.memory_space<vmem>>, vector<16x256xbf16>,
    %c0_83 = arith.constant 0 : index
    %c2_84 = arith.constant 2 : index
    %95 = vector.load %arg12[%c0_83, %c2_84] : memref<16x290xbf16, #tpu.memory_space<vmem>>, vector<16x256xbf16>
    %96 = arith.mulf %95, %8 : vector<16x256xbf16>
    %c32_85 = arith.constant 32 : index
    %c0_86 = arith.constant 0 : index
    %97 = vector.load %arg13[%c32_85, %c0_86] : memref<144x256xbf16, #tpu.memory_space<vmem>>, vector<16x256xbf16>
    tpu.vector_store %arg13[%c32_85, %c0_86], %96 {strides = array<i32>} : memref<144x256xbf16, #tpu.memory_space<vmem>>, vector<16x256xbf16>,
    %c0_87 = arith.constant 0 : index
    %c16_88 = arith.constant 16 : index
    %98 = vector.load %arg12[%c0_87, %c16_88] : memref<16x290xbf16, #tpu.memory_space<vmem>>, vector<16x256xbf16>
    %99 = arith.mulf %98, %5 : vector<16x256xbf16>
    %c48_89 = arith.constant 48 : index
    %c0_90 = arith.constant 0 : index
    %100 = vector.load %arg13[%c48_89, %c0_90] : memref<144x256xbf16, #tpu.memory_space<vmem>>, vector<16x256xbf16>
    tpu.vector_store %arg13[%c48_89, %c0_90], %99 {strides = array<i32>} : memref<144x256xbf16, #tpu.memory_space<vmem>>, vector<16x256xbf16>,
    %c0_91 = arith.constant 0 : index
    %c17_92 = arith.constant 17 : index
    %101 = vector.load %arg12[%c0_91, %c17_92] : memref<16x290xbf16, #tpu.memory_space<vmem>>, vector<16x256xbf16>
    %c64_93 = arith.constant 64 : index
    %c0_94 = arith.constant 0 : index
    %102 = vector.load %arg13[%c64_93, %c0_94] : memref<144x256xbf16, #tpu.memory_space<vmem>>, vector<16x256xbf16>
    tpu.vector_store %arg13[%c64_93, %c0_94], %101 {strides = array<i32>} : memref<144x256xbf16, #tpu.memory_space<vmem>>, vector<16x256xbf16>,
    %c0_95 = arith.constant 0 : index
    %c18_96 = arith.constant 18 : index
    %103 = vector.load %arg12[%c0_95, %c18_96] : memref<16x290xbf16, #tpu.memory_space<vmem>>, vector<16x256xbf16>
    %104 = arith.mulf %103, %8 : vector<16x256xbf16>
    %c80_97 = arith.constant 80 : index
    %c0_98 = arith.constant 0 : index
    %105 = vector.load %arg13[%c80_97, %c0_98] : memref<144x256xbf16, #tpu.memory_space<vmem>>, vector<16x256xbf16>
    tpu.vector_store %arg13[%c80_97, %c0_98], %104 {strides = array<i32>} : memref<144x256xbf16, #tpu.memory_space<vmem>>, vector<16x256xbf16>,
    %c0_99 = arith.constant 0 : index
    %c32_100 = arith.constant 32 : index
    %106 = vector.load %arg12[%c0_99, %c32_100] : memref<16x290xbf16, #tpu.memory_space<vmem>>, vector<16x256xbf16>
    %107 = arith.mulf %106, %5 : vector<16x256xbf16>
    %c96_101 = arith.constant 96 : index
    %c0_102 = arith.constant 0 : index
    %108 = vector.load %arg13[%c96_101, %c0_102] : memref<144x256xbf16, #tpu.memory_space<vmem>>, vector<16x256xbf16>
    tpu.vector_store %arg13[%c96_101, %c0_102], %107 {strides = array<i32>} : memref<144x256xbf16, #tpu.memory_space<vmem>>, vector<16x256xbf16>,
    %c0_103 = arith.constant 0 : index
    %c33_104 = arith.constant 33 : index
    %109 = vector.load %arg12[%c0_103, %c33_104] : memref<16x290xbf16, #tpu.memory_space<vmem>>, vector<16x256xbf16>
    %c112_105 = arith.constant 112 : index
    %c0_106 = arith.constant 0 : index
    %110 = vector.load %arg13[%c112_105, %c0_106] : memref<144x256xbf16, #tpu.memory_space<vmem>>, vector<16x256xbf16>
    tpu.vector_store %arg13[%c112_105, %c0_106], %109 {strides = array<i32>} : memref<144x256xbf16, #tpu.memory_space<vmem>>, vector<16x256xbf16>,
    %c0_107 = arith.constant 0 : index
    %c34_108 = arith.constant 34 : index
    %111 = vector.load %arg12[%c0_107, %c34_108] : memref<16x290xbf16, #tpu.memory_space<vmem>>, vector<16x256xbf16>
    %112 = arith.mulf %111, %8 : vector<16x256xbf16>
    %c128_109 = arith.constant 128 : index
    %c0_110 = arith.constant 0 : index
    %113 = vector.load %arg13[%c128_109, %c0_110] : memref<144x256xbf16, #tpu.memory_space<vmem>>, vector<16x256xbf16>
    tpu.vector_store %arg13[%c128_109, %c0_110], %112 {strides = array<i32>} : memref<144x256xbf16, #tpu.memory_space<vmem>>, vector<16x256xbf16>,
    %c0_111 = arith.constant 0 : index
    %c0_112 = arith.constant 0 : index
    %114 = vector.load %arg6[%c0_111, %c0_112] : memref<8x144xbf16, #tpu.memory_space<vmem>>, vector<8x144xbf16>
    %c0_113 = arith.constant 0 : index
    %c0_114 = arith.constant 0 : index
    %115 = vector.load %arg13[%c0_113, %c0_114] : memref<144x256xbf16, #tpu.memory_space<vmem>>, vector<144x256xbf16>
    %cst_115 = arith.constant dense<0.000000e+00> : vector<8x256xf32>
    %116 = tpu.matmul %114, %115, %cst_115 {dimension_numbers = #tpu.dot_dimension_numbers<[1], [0], [0], [1], [0, 0, 1, 1], [], []>} : vector<8x144xbf16>, vector<144x256xbf16>, vector<8x256xf32> -> vector<8x256xf32>
    %c0_116 = arith.constant 0 : index
    %c0_117 = arith.constant 0 : index
    %117 = vector.load %arg7[%c0_116, %c0_117] : memref<8x1xf32, #tpu.memory_space<vmem>>, vector<8x1xf32>
    %118 = vector.broadcast %117 : vector<8x1xf32> to vector<8x256xf32>
    %119 = arith.mulf %116, %118 : vector<8x256xf32>
    %c0_118 = arith.constant 0 : index
    %c0_119 = arith.constant 0 : index
    %120 = vector.load %arg8[%c0_118, %c0_119] : memref<8x1xf32, #tpu.memory_space<vmem>>, vector<8x1xf32>
    %121 = vector.broadcast %120 : vector<8x1xf32> to vector<8x256xf32>
    %122 = arith.addf %119, %121 : vector<8x256xf32>
    %cst_120 = arith.constant 0.000000e+00 : f32
    %123 = vector.broadcast %cst_120 : f32 to vector<8x256xf32>
    %124 = arith.cmpf ogt, %122, %123 : vector<8x256xf32>
    %cst_121 = arith.constant 1.000000e-01 : f32
    %125 = vector.broadcast %cst_121 : f32 to vector<8x256xf32>
    %126 = arith.mulf %125, %122 : vector<8x256xf32>
    %127 = arith.select %124, %122, %126 : vector<8x256xi1>, vector<8x256xf32>
    %c0_122 = arith.constant 0 : index
    %c0_123 = arith.constant 0 : index
    %128 = vector.load %arg9[%c0_122, %c0_123] : memref<24x8xbf16, #tpu.memory_space<vmem>>, vector<24x8xbf16>
    %129 = arith.truncf %127 : vector<8x256xf32> to vector<8x256xbf16>
    %cst_124 = arith.constant dense<0.000000e+00> : vector<24x256xf32>
    %130 = tpu.matmul %128, %129, %cst_124 {dimension_numbers = #tpu.dot_dimension_numbers<[1], [0], [0], [1], [0, 0, 1, 1], [], []>} : vector<24x8xbf16>, vector<8x256xbf16>, vector<24x256xf32> -> vector<24x256xf32>
    %c0_125 = arith.constant 0 : index
    %c0_126 = arith.constant 0 : index
    %131 = vector.load %arg10[%c0_125, %c0_126] : memref<24x1xf32, #tpu.memory_space<vmem>>, vector<24x1xf32>
    %132 = vector.broadcast %131 : vector<24x1xf32> to vector<24x256xf32>
    %133 = arith.addf %130, %132 : vector<24x256xf32>
    %c1_127 = arith.constant 1 : index
    %c0_128 = arith.constant 0 : index
    %c0_129 = arith.constant 0 : index
    %134 = vector.load %arg11[%c1_127, %c0_128, %c0_129] : memref<2x24x256xf32, #tpu.memory_space<vmem>>, vector<1x24x256xf32>
    %135 = vector.shape_cast %134 : vector<1x24x256xf32> to vector<24x256xf32>
    %136 = vector.shape_cast %133 : vector<24x256xf32> to vector<1x24x256xf32>
    tpu.vector_store %arg11[%c1_127, %c0_128, %c0_129], %136 {strides = array<i32>} : memref<2x24x256xf32, #tpu.memory_space<vmem>>, vector<1x24x256xf32>,
    return
  }
  func.func @transform_0(%arg0: i32) -> (i32, i32, i32) {
    %c0_i32 = arith.constant 0 : i32
    %c0_i32_0 = arith.constant 0 : i32
    %c0_i32_1 = arith.constant 0 : i32
    return %arg0, %c0_i32, %c0_i32_0 : i32, i32, i32
  }
  func.func @transform_1(%arg0: i32) -> (i32, i32) {
    %c0_i32 = arith.constant 0 : i32
    %c0_i32_0 = arith.constant 0 : i32
    %c0_i32_1 = arith.constant 0 : i32
    return %c0_i32, %c0_i32_0 : i32, i32
  }
  func.func @transform_2(%arg0: i32) -> (i32, i32) {
    %c0_i32 = arith.constant 0 : i32
    %c0_i32_0 = arith.constant 0 : i32
    %c0_i32_1 = arith.constant 0 : i32
    return %c0_i32, %c0_i32_0 : i32, i32
  }
  func.func @transform_3(%arg0: i32) -> (i32, i32) {
    %c0_i32 = arith.constant 0 : i32
    %c0_i32_0 = arith.constant 0 : i32
    %c0_i32_1 = arith.constant 0 : i32
    return %c0_i32, %c0_i32_0 : i32, i32
  }
  func.func @transform_4(%arg0: i32) -> (i32, i32) {
    %c0_i32 = arith.constant 0 : i32
    %c0_i32_0 = arith.constant 0 : i32
    %c0_i32_1 = arith.constant 0 : i32
    return %c0_i32, %c0_i32_0 : i32, i32
  }
  func.func @transform_5(%arg0: i32) -> (i32, i32) {
    %c0_i32 = arith.constant 0 : i32
    %c0_i32_0 = arith.constant 0 : i32
    %c0_i32_1 = arith.constant 0 : i32
    return %c0_i32, %c0_i32_0 : i32, i32
  }
  func.func @transform_6(%arg0: i32) -> (i32, i32) {
    %c0_i32 = arith.constant 0 : i32
    %c0_i32_0 = arith.constant 0 : i32
    %c0_i32_1 = arith.constant 0 : i32
    return %c0_i32, %c0_i32_0 : i32, i32
  }
  func.func @transform_7(%arg0: i32) -> (i32, i32) {
    %c0_i32 = arith.constant 0 : i32
    %c0_i32_0 = arith.constant 0 : i32
    %c0_i32_1 = arith.constant 0 : i32
    return %c0_i32, %c0_i32_0 : i32, i32
  }
  func.func @transform_8(%arg0: i32) -> (i32, i32) {
    %c0_i32 = arith.constant 0 : i32
    %c0_i32_0 = arith.constant 0 : i32
    %c0_i32_1 = arith.constant 0 : i32
    return %c0_i32, %c0_i32_0 : i32, i32
  }
  func.func @transform_9(%arg0: i32) -> (i32, i32) {
    %c0_i32 = arith.constant 0 : i32
    %c0_i32_0 = arith.constant 0 : i32
    %c0_i32_1 = arith.constant 0 : i32
    return %c0_i32, %c0_i32_0 : i32, i32
  }
  func.func @transform_10(%arg0: i32) -> (i32, i32, i32) {
    %c0_i32 = arith.constant 0 : i32
    %c0_i32_0 = arith.constant 0 : i32
    %c0_i32_1 = arith.constant 0 : i32
    return %arg0, %c0_i32, %c0_i32_0 : i32, i32, i32
  }
}

</mosaic_0001>

<bundles_post_ra>
// kernel: tpu_custom_call.1
= control target key start
LH: loop header
LB: loop body
LE: loop exit
PB: predicated region body
PF: predicated region fallthrough
CT: control target
= control target key end

     0   :  { %vm98_vm0 = vcmask 1043456   ;;  %v1620_v3 = vmov 0   ;;  %vm2171_vm1 = vcmask 64512   ;;  %s2160_s0 = inlined_call_operand.vmem [shape: bf16[2,8,256], index: 0, kind: input, shape index: {}]   ;;  %s2161_s1 = inlined_call_operand.vmem [shape: bf16[3,256], index: 1, kind: input, shape index: {}]   ;;  %s2162_s2 = inlined_call_operand.vmem [shape: bf16[16,8], index: 2, kind: input, shape index: {}]   ;;  %s2163_s3 = inlined_call_operand.vmem [shape: f32[16,1], index: 3, kind: input, shape index: {}]   ;;  %s2164_s4 = inlined_call_operand.vmem [shape: f32[16,1], index: 4, kind: input, shape index: {}]   ;;  %s2165_s5 = inlined_call_operand.vmem [shape: bf16[8,144], index: 5, kind: input, shape index: {}]   ;;  %s2166_s6 = inlined_call_operand.vmem [shape: f32[8,1], index: 6, kind: input, shape index: {}]   ;;  %s2167_s7 = inlined_call_operand.vmem [shape: f32[8,1], index: 7, kind: input, shape index: {}]   ;;  %s2168_s8 = inlined_call_operand.vmem [shape: bf16[24,8], index: 8, kind: input, shape index: {}]   ;;  %s2169_s9 = inlined_call_operand.vmem [shape: f32[24,1], index: 9, kind: input, shape index: {}]   ;;  %s2170_s10 = inlined_call_operand.hbm [shape: f32[2,24,256], index: 10, kind: output, shape index: {}]  }
   0x1   :  { %v83_v0 = vld [vmem:[%s2160_s0] sm:$0xff]  ;;  %137 = vmatprep.mubr.bf16.mxu1 %v1620_v3  ;;  %1584 = vset.pattern.permute.xlu0 %v1620_v3  ;;  %v1715_v7 = vld [vmem:[%s2163_s3 + $0x8] sm:$0xff] }
   0x2   :  { %v1496_v1 = vcombine.high %v83_v0, %v83_v0  ;;  %v1495_v2 = vcombine.low %v83_v0, %v83_v0  ;;  %v1700_v4 = vld [vmem:[%s2163_s3] sm:$0xff]  ;;  %1585 = vset.pattern.permute.xlu1 %v1620_v3  ;;  %v1723_v9 = vld [vmem:[%s2164_s4 + $0x8] sm:$0xff]  ;;  %784 = vmatprep.mubr.bf16.mxu0 %v1620_v3 }
   0x3   :  { %v1705_v5 = vld [vmem:[%s2164_s4] sm:$0xff]  ;;  %152 = vperm.xlu0 %1584, %v1700_v4  }
   0x4   :  { %v1588_v6 = vld [vmem:[%s2162_s2] sm:$0xff]   ;;  %1497 = vmatprep.subr.msk.bf16.mxu1 %vm98_vm0, %v1496_v1  ;;  %v100_v8 = vsel %vm98_vm0, %v1495_v2, 0  ;;  %168 = vperm.xlu1 %1585, %v1705_v5  }
   0x5   :  { %120 = vmatpush1.bf16.msra.mxu1 %v100_v8 }
   0x6   :  { %15 = vsyncpa [#allocation5], 0  ;;  %vm40_vm2 = vcmask 273544   ;;  %v56_v10 = vlaneseq  ;;  %vm37_vm3 = vcmask 134144   ;;  %s1622_s4 = smov 32   ;;  %s1623_s26 = smov 16  }
   0x7   :  { %157 = vperm.xlu0 %1584, %v1715_v7   ;;  %41 = vst.msk [vmem:[#allocation2 + $0x8] sm:$0xf] %vm40_vm2, %v1620_v3  ;;  %42 = vst.msk [vmem:[#allocation2 + $0x14] sm:$0xf] %vm40_vm2, %v1620_v3  ;;  %s1624_s27 = smov 18   ;;  %s1625_s28 = smov 34  }
   0x8   :  { %1498 = vmatmul.mubr.msk.bf16.vlgmr.msra.gmra.mxu1 %vm2171_vm1, %v1588_v6  ;;  %173 = vperm.xlu1 %1585, %v1723_v9   ;;  %v1493_v11 = vld.sshfl [vmem:[%s2161_s1] sm:$0x11 pattern:$0x76325410]  ;;  %38 = vst.msk [vmem:[#allocation2] sm:$0xf] %vm37_vm3, %v1620_v3 }
   0x9   :  { %39 = vst.msk [vmem:[#allocation2 + $0xc] sm:$0xf] %vm37_vm3, %v1620_v3  ;;  %v52_v15 = vcombine.high %v1493_v11, %v1493_v11  ;;  %v57_v16 = vshrl.u32 %v56_v10, 7  ;;  %v54_v21 = vpack.i.b16 %v1493_v11, %v1493_v11  ;;  %v67_v26 = vshrl.u32 %v1493_v11, 16  ;;  %s1621_s1 = smov 17   ;;  %s1626_s29 = smov 2  }
   0xa   :  { %vm215_vm8 = vcmask 1043592   ;;  %vm216_vm9 = vcmask 1047556   ;;  %vm208_vm10 = vcmask 138240   ;;  %s1627_s30 = smov 95   ;;  %vm425_vm12 = vcmask 261120   ;;  %s1628_s11 = smov 111  }
   0xb   :  { %v58_v24 = vsub.s32 0, %v57_v16  ;;  %v61_v25 = vpack.i.b16 %v52_v15, %v52_v15  ;;  %v74_v27 = vshrl.u32 %v52_v15, 16  ;;  %v68_v38 = vpack.i.b16 %v67_v26, %v67_v26  ;;  %vm1745_vm11 = vmor %vm216_vm9, %vm215_vm8  ;;  %s1629_s12 = smov 96   ;;  %s1630_s13 = smov 110  }
   0xc   :  { %vm385_vm13 = vcmask 146432   ;;  %vm316_vm14 = vcmask 130048   ;;  %vm276_vm15 = vcmask 15360   ;;  %s1631_s14 = smov 112   ;;  %s1632_s15 = smov 126   ;;  %vm494_vm2 = vcmask 277504  }
   0xd   :  { %v59_v36 = vrot.slane %v54_v21, %v58_v24  ;;  %v66_v37 = vrot.slane %v61_v25, %v58_v24  ;;  %v75_v39 = vpack.i.b16 %v74_v27, %v74_v27  ;;  %v73_v47 = vrot.slane %v68_v38, %v58_v24  ;;  %s1633_s16 = smov 127   ;;  %s1634_s19 = smov 94  }
   0xe   :  { %vm341_vm8 = vcmask 916480   ;;  %vm301_vm9 = vcmask 1031168  }
   0xf   :  { %v1739_v46 = vcombine.low %v59_v36, %v66_v37  ;;  %v80_v48 = vrot.slane %v75_v39, %v58_v24 }
  0x11   :  { %v1502_v52 = vcombine.low %v73_v47, %v80_v48 }
  0x7e   :  { %v153_v12 = vpop.permute.xlu0 %152 }
  0x7f   :  { %v169_v13 = vpop.permute.xlu1 %168 }
  0x82   :  { %v158_v22 = vpop.permute.xlu0 %157 }
  0x83   :  { %v174_v31 = vpop.permute.xlu1 %173 }
  0xc8   :  { %v139_v14 = vpop.f32.mrf.mxu1 }
  0xc9   :  { %v160_v17 = vmul.f32 %v153_v12, %v139_v14 }
  0xca   :  { %v141_v18 = vpop.f32.mrf.mxu1 }
  0xcb   :  { %v176_v19 = vadd.f32 %v169_v13, %v160_v17  ;;  %v161_v20 = vmul.f32 %v153_v12, %v141_v18 }
  0xcc   :  { %v143_v23 = vpop.f32.mrf.mxu1 }
  0xcd   :  { %v184_v28 = vmul.f32 0.1, %v176_v19  ;;  %v177_v29 = vadd.f32 %v169_v13, %v161_v20  ;;  %v162_v30 = vmul.f32 %v158_v22, %v143_v23  ;;  %vm180_vm4 = vcmp.gt.f32.partialorder %v176_v19, 0.0 }
  0xce   :  { %v145_v32 = vpop.f32.mrf.mxu1 }
  0xcf   :  { %vm181_vm5 = vcmp.gt.f32.partialorder %v177_v29, 0.0  ;;  %v185_v33 = vmul.f32 0.1, %v177_v29  ;;  %v178_v34 = vadd.f32 %v174_v31, %v162_v30  ;;  %v163_v35 = vmul.f32 %v158_v22, %v145_v32 }
  0xd0   :  { %v188_v42 = vsel %vm180_vm4, %v176_v19, %v184_v28  ;;  %vm479_vm4 = vcmask 777216  }
  0xd1   :  { %v186_v40 = vmul.f32 0.1, %v178_v34  ;;  %v179_v41 = vadd.f32 %v174_v31, %v163_v35  ;;  %v189_v43 = vsel %vm181_vm5, %v177_v29, %v185_v33  ;;  %vm182_vm6 = vcmp.gt.f32.partialorder %v178_v34, 0.0 }
  0xd2   :  { %v1563_v44 = vpack.c.bf16 %v189_v43, %v188_v42  ;;  %vm450_vm5 = vcmask 785408  }
  0xd3   :  { %vm183_vm7 = vcmp.gt.f32.partialorder %v179_v41, 0.0  ;;  %v187_v45 = vmul.f32 0.1, %v179_v41  ;;  %v190_v49 = vsel %vm182_vm6, %v178_v34, %v186_v40  ;;  %vm410_vm6 = vcmask 900096  }
  0xd4   :  { %202 = vrot.lane.b32.xlu0 %v1563_v44, %s1621_s1 }
  0xd5   :  { %v191_v50 = vsel %vm183_vm7, %v179_v41, %v187_v45  ;;  %vm370_vm7 = vcmask 908288  }
  0xd6   :  { %v1564_v51 = vpack.c.bf16 %v191_v50, %v190_v49 }
  0xd8   :  { %422 = vrot.lane.b32.xlu0 %v1739_v46, %s1622_s4  ;;  %204 = vrot.lane.b32.xlu1 %v1564_v51, %s1621_s1 }
  0xdc   :  { %313 = vrot.lane.b32.xlu0 %v1739_v46, %s1623_s26  ;;  %382 = vrot.lane.b32.xlu1 %v1502_v52, %s1624_s27 }
  0xe0   :  { %491 = vrot.lane.b32.xlu0 %v1502_v52, %s1625_s28  ;;  %273 = vrot.lane.b32.xlu1 %v1502_v52, %s1626_s29 }
 0x146   :  { %v203_v53 = vpop.permute.xlu0 %202 }
 0x147   :  { %v206_v55 = vrot.slane %v203_v53, 4 }
 0x149   :  { %v209_v56 = vsel %vm208_vm10, %v206_v55, %v203_v53  ;;  %219 = vst.msk [vmem:[#allocation2 + $0x8] sm:$0xf] %vm37_vm3, %v206_v55  ;;  %v1851_v53 = vld [vmem:[%s2165_s5] sm:$0xff] }
 0x14a   :  { %218 = vst.msk [vmem:[#allocation2] sm:$0xff] %vm1745_vm11, %v209_v56  ;;  %v205_v57 = vpop.permute.xlu1 %204  ;;  %v423_v60 = vpop.permute.xlu0 %422  ;;  %v1856_v55 = vcombine.high %v1851_v53, %v1851_v53 }
 0x14b   :  { %v207_v58 = vrot.slane %v205_v57, 4  ;;  %v1757_v62 = vrot.slane %v423_v60, 4 }
 0x14c   :  { %1523 = vmatprep.mubr.msk.bf16.mxu1 %vm316_vm14, %v1856_v55 }
 0x14d   :  { %v210_v59 = vsel %vm208_vm10, %v207_v58, %v205_v57  ;;  %221 = vst.msk [vmem:[#allocation2 + $0x14] sm:$0xf] %vm37_vm3, %v207_v58  ;;  %v1765_v6 = vsel %vm425_vm12, %v1757_v62, %v423_v60  ;;  %v1869_v58 = vld [vmem:[%s2167_s7] sm:$0xff]  ;;  %vm256_vm12 = vcmask 1039360  }
 0x14e   :  { %220 = vst.msk [vmem:[#allocation2 + $0xc] sm:$0xff] %vm1745_vm11, %v210_v59  ;;  %v383_v0 = vpop.permute.xlu1 %382  ;;  %v314_v10 = vpop.permute.xlu0 %313  ;;  %v1874_v59 = vld [vmem:[%s2166_s6] sm:$0xff] }
 0x14f   :  { %v1767_v8 = vrot.slane %v383_v0, 4  ;;  %v1775_v14 = vrot.slane %v314_v10, 4 }
 0x150   :  { %v459_v61 = vld [vmem:[#allocation2 + $0x8] sm:$0xf] }
 0x151   :  { %468 = vrot.lane.b32.xlu0 %v459_v61, %s1627_s30  ;;  %v1760_v63 = vld [vmem:[#allocation2] sm:$0xff]  ;;  %v350_v1 = vld [vmem:[#allocation2 + $0x8] sm:$0xf]  ;;  %v1778_v15 = vsel %vm385_vm13, %v1767_v8, %v383_v0  ;;  %v1787_v20 = vsel %vm316_vm14, %v1775_v14, %v314_v10  ;;  %vm519_vm13 = vcmask 769024  }
 0x152   :  { %466 = vrot.lane.b32.xlu1 %v1760_v63, %s1627_s30  ;;  %v419_v2 = vld [vmem:[#allocation2 + $0x8] sm:$0xf]  ;;  %v429_v12 = vmul.bf16 %v1760_v63, %v1765_v6  ;;  %v274_v16 = vpop.permute.xlu1 %273  ;;  %v389_v18 = vmul.bf16 %v1760_v63, %v1778_v15  ;;  %v320_v23 = vmul.bf16 %v1760_v63, %v1787_v20  ;;  %v492_v42 = vpop.permute.xlu0 %491 }
 0x153   :  { %v430_v11 = vmul.bf16 %v1757_v62, %v419_v2  ;;  %v379_v13 = vld [vmem:[#allocation2 + $0x8] sm:$0xf]  ;;  %v1789_v21 = vrot.slane %v274_v16, 4  ;;  %v1835_v45 = vrot.slane %v492_v42, 4 }
 0x154   :  { %v390_v17 = vmul.bf16 %v1767_v8, %v379_v13  ;;  %v310_v19 = vld [vmem:[#allocation2 + $0x8] sm:$0xf]  ;;  %v461_v28 = vld [vmem:[#allocation2 + $0x14] sm:$0xf] }
 0x155   :  { %359 = vrot.lane.b32.xlu0 %v350_v1, %s1628_s11  ;;  %v321_v22 = vmul.bf16 %v1775_v14, %v310_v19  ;;  %v1797_v24 = vsel %vm276_vm15, %v1789_v21, %v274_v16  ;;  %v265_v25 = vld [vmem:[#allocation2 + $0x8] sm:$0xf]  ;;  %v1807_v29 = vld [vmem:[#allocation2 + $0xc] sm:$0xff]  ;;  %v352_v30 = vld [vmem:[#allocation2 + $0x14] sm:$0xf]  ;;  %v1840_v48 = vsel %vm494_vm2, %v1835_v45, %v492_v42 }
 0x156   :  { %357 = vrot.lane.b32.xlu1 %v1760_v63, %s1628_s11  ;;  %v281_v26 = vmul.bf16 %v1789_v21, %v265_v25  ;;  %v280_v27 = vmul.bf16 %v1760_v63, %v1797_v24  ;;  %v421_v31 = vld [vmem:[#allocation2 + $0x14] sm:$0xf]  ;;  %v431_v33 = vmul.bf16 %v1807_v29, %v1765_v6  ;;  %v391_v36 = vmul.bf16 %v1807_v29, %v1778_v15  ;;  %v235_v43 = vld [vmem:[#allocation2 + $0x8] sm:$0xf] }
 0x157   :  { %v432_v32 = vmul.bf16 %v1757_v62, %v421_v31  ;;  %v381_v34 = vld [vmem:[#allocation2 + $0x14] sm:$0xf]  ;;  %v322_v41 = vmul.bf16 %v1807_v29, %v1787_v20  ;;  %v282_v44 = vmul.bf16 %v1807_v29, %v1797_v24  ;;  %v488_v49 = vld [vmem:[#allocation2 + $0x8] sm:$0xf]  ;;  %v498_v51 = vmul.bf16 %v1840_v48, %v1760_v63 }
 0x158   :  { %v392_v35 = vmul.bf16 %v1767_v8, %v381_v34  ;;  %v312_v37 = vld [vmem:[#allocation2 + $0x14] sm:$0xf]  ;;  %v499_v50 = vmul.bf16 %v1835_v45, %v488_v49  ;;  %v500_v57 = vmul.bf16 %v1840_v48, %v1807_v29 }
 0x159   :  { %439 = vrot.lane.b32.xlu0 %v430_v11, %s1629_s12  ;;  %v323_v38 = vmul.bf16 %v1775_v14, %v312_v37  ;;  %v267_v39 = vld [vmem:[#allocation2 + $0x14] sm:$0xf] }
 0x15a   :  { %437 = vrot.lane.b32.xlu1 %v429_v12, %s1629_s12  ;;  %v283_v40 = vmul.bf16 %v1789_v21, %v267_v39  ;;  %v237_v47 = vld [vmem:[#allocation2 + $0x14] sm:$0xf] }
 0x15b   :  { %v490_v52 = vld [vmem:[#allocation2 + $0x14] sm:$0xf] }
 0x15c   :  { %v501_v56 = vmul.bf16 %v1835_v45, %v490_v52 }
 0x15d   :  { %399 = vrot.lane.b32.xlu0 %v390_v17, %s1630_s13 }
 0x15e   :  { %397 = vrot.lane.b32.xlu1 %v389_v18, %s1630_s13 }
 0x161   :  { %330 = vrot.lane.b32.xlu0 %v321_v22, %s1631_s14 }
 0x162   :  { %328 = vrot.lane.b32.xlu1 %v320_v23, %s1631_s14 }
 0x165   :  { %290 = vrot.lane.b32.xlu0 %v281_v26, %s1632_s15 }
 0x166   :  { %288 = vrot.lane.b32.xlu1 %v280_v27, %s1632_s15 }
 0x169   :  { %472 = vrot.lane.b32.xlu0 %v461_v28, %s1627_s30 }
 0x16a   :  { %470 = vrot.lane.b32.xlu1 %v1807_v29, %s1627_s30 }
 0x16d   :  { %363 = vrot.lane.b32.xlu0 %v352_v30, %s1628_s11 }
 0x16e   :  { %361 = vrot.lane.b32.xlu1 %v1807_v29, %s1628_s11 }
 0x171   :  { %443 = vrot.lane.b32.xlu0 %v432_v32, %s1629_s12 }
 0x172   :  { %441 = vrot.lane.b32.xlu1 %v431_v33, %s1629_s12 }
 0x175   :  { %403 = vrot.lane.b32.xlu0 %v392_v35, %s1630_s13 }
 0x176   :  { %401 = vrot.lane.b32.xlu1 %v391_v36, %s1630_s13 }
 0x179   :  { %334 = vrot.lane.b32.xlu0 %v323_v38, %s1631_s14 }
 0x17a   :  { %242 = vrot.lane.b32.xlu1 %v1760_v63, %s1633_s16 }
 0x17d   :  { %294 = vrot.lane.b32.xlu0 %v283_v40, %s1632_s15 }
 0x17e   :  { %332 = vrot.lane.b32.xlu1 %v322_v41, %s1631_s14 }
 0x181   :  { %244 = vrot.lane.b32.xlu0 %v235_v43, %s1633_s16 }
 0x182   :  { %292 = vrot.lane.b32.xlu1 %v282_v44, %s1632_s15 }
 0x185   :  { %248 = vrot.lane.b32.xlu0 %v237_v47, %s1633_s16 }
 0x186   :  { %246 = vrot.lane.b32.xlu1 %v1807_v29, %s1633_s16 }
 0x189   :  { %508 = vrot.lane.b32.xlu0 %v499_v50, %s1634_s19 }
 0x18a   :  { %506 = vrot.lane.b32.xlu1 %v498_v51, %s1634_s19 }
 0x18d   :  { %512 = vrot.lane.b32.xlu0 %v501_v56, %s1634_s19 }
 0x18e   :  { %510 = vrot.lane.b32.xlu1 %v500_v57, %s1634_s19 }
 0x191   :  { %698 = vperm.xlu0 %1584, %v1869_v58  }
 0x192   :  { %690 = vperm.xlu1 %1585, %v1874_v59  }
 0x195   :  { %884 = vperm.xlu0 %1584, %v1715_v7  }
 0x196   :  { %879 = vperm.xlu1 %1585, %v1700_v4  }
 0x199   :  { %900 = vperm.xlu0 %1584, %v1723_v9  }
 0x19a   :  { %895 = vperm.xlu1 %1585, %v1705_v5  }
 0x1c3   :  { %v469_v60 = vpop.permute.xlu0 %468 }
 0x1c4   :  { %v467_v61 = vpop.permute.xlu1 %466  ;;  %v475_v9 = vrot.slane %v469_v60, 4 }
 0x1c5   :  { %v474_v17 = vrot.slane %v467_v61, 4 }
 0x1c7   :  { %v360_v0 = vpop.permute.xlu0 %359  ;;  %v478_v22 = vsel %vm98_vm0, %v474_v17, %v475_v9 }
 0x1c8   :  { %v1882_v1 = vpop.permute.xlu1 %357  ;;  %v480_v27 = vsel %vm479_vm4, %v467_v61, %v478_v22  ;;  %v366_v44 = vrot.slane %v360_v0, 4 }
 0x1c9   :  { %v365_v47 = vrot.slane %v1882_v1, 4 }
 0x1cb   :  { %v440_v2 = vpop.permute.xlu0 %439  ;;  %v369_v0 = vsel %vm98_vm0, %v365_v47, %v366_v44 }
 0x1cc   :  { %v438_v10 = vpop.permute.xlu1 %437  ;;  %v446_v31 = vrot.slane %v440_v2, 4 }
 0x1cd   :  { %v445_v32 = vrot.slane %v438_v10, 4 }
 0x1cf   :  { %v400_v11 = vpop.permute.xlu0 %399  ;;  %v449_v40 = vsel %vm98_vm0, %v445_v32, %v446_v31 }
 0x1d0   :  { %v398_v12 = vpop.permute.xlu1 %397  ;;  %v406_v36 = vrot.slane %v400_v11, 4  ;;  %v451_v51 = vsel %vm450_vm5, %v438_v10, %v449_v40 }
 0x1d1   :  { %v405_v37 = vrot.slane %v398_v12, 4 }
 0x1d3   :  { %v1884_v13 = vpop.permute.xlu0 %330  ;;  %v409_v52 = vsel %vm98_vm0, %v405_v37, %v406_v36 }
 0x1d4   :  { %v1886_v16 = vpop.permute.xlu1 %328  ;;  %v411_v10 = vsel %vm410_vm6, %v398_v12, %v409_v52 }
 0x1d7   :  { %v1888_v7 = vpop.permute.xlu0 %290 }
 0x1d8   :  { %v1890_v4 = vpop.permute.xlu1 %288  ;;  %v297_v12 = vrot.slane %v1888_v7, 4 }
 0x1db   :  { %v473_v5 = vpop.permute.xlu0 %472 }
 0x1dc   :  { %v477_v18 = vrot.slane %v473_v5, 4  ;;  %v471_v19 = vpop.permute.xlu1 %470 }
 0x1dd   :  { %v476_v23 = vrot.slane %v471_v19, 4 }
 0x1df   :  { %v481_v25 = vsel %vm98_vm0, %v476_v23, %v477_v18  ;;  %v364_v26 = vpop.permute.xlu0 %363  ;;  %v337_v23 = vrot.slane %v1884_v13, 4 }
 0x1e0   :  { %v482_v28 = vsel %vm479_vm4, %v471_v19, %v481_v25  ;;  %v362_v30 = vpop.permute.xlu1 %361  ;;  %v368_v41 = vrot.slane %v364_v26, 4  ;;  %v336_v25 = vrot.slane %v1886_v16, 4 }
 0x1e1   :  { %v1519_v33 = vcombine.low %v480_v27, %v482_v28  ;;  %v1520_v34 = vcombine.high %v480_v27, %v482_v28  ;;  %v367_v42 = vrot.slane %v362_v30, 4  ;;  %v371_v28 = vsel %vm370_vm7, %v1882_v1, %v369_v0 }
 0x1e3   :  { %v444_v35 = vpop.permute.xlu0 %443  ;;  %646 = vmatprep.subr.bf16.mxu1 %v1520_v34  ;;  %v372_v61 = vsel %vm98_vm0, %v367_v42, %v368_v41  ;;  %v340_v34 = vsel %vm98_vm0, %v336_v25, %v337_v23 }
 0x1e4   :  { %v448_v38 = vrot.slane %v444_v35, 4  ;;  %647 = vmatpush1.bf16.msra.mxu1 %v1519_v33  ;;  %v442_v39 = vpop.permute.xlu1 %441  ;;  %v373_v18 = vsel %vm370_vm7, %v362_v30, %v372_v61  ;;  %v296_v30 = vrot.slane %v1890_v4, 4 }
 0x1e5   :  { %v447_v43 = vrot.slane %v442_v39, 4  ;;  %v1514_v31 = vcombine.high %v371_v28, %v373_v18  ;;  %v1513_v36 = vcombine.low %v371_v28, %v373_v18  ;;  %v230_v18 = vmul.bf16 %v1739_v46, %v1760_v63 }
 0x1e6   :  { %v300_v7 = vsel %vm98_vm0, %v296_v30, %v297_v12 }
 0x1e7   :  { %v452_v49 = vsel %vm98_vm0, %v447_v43, %v448_v38  ;;  %v404_v50 = vpop.permute.xlu0 %403  ;;  %v342_v38 = vsel %vm341_vm8, %v1886_v16, %v340_v34  ;;  %v302_v52 = vsel %vm301_vm9, %v1890_v4, %v300_v7 }
 0x1e8   :  { %v453_v56 = vsel %vm450_vm5, %v442_v39, %v452_v49  ;;  %v408_v57 = vrot.slane %v404_v50, 4  ;;  %v402_v60 = vpop.permute.xlu1 %401 }
 0x1e9   :  { %v1517_v2 = vcombine.low %v451_v51, %v453_v56  ;;  %v1518_v11 = vcombine.high %v451_v51, %v453_v56  ;;  %v407_v9 = vrot.slane %v402_v60, 4 }
 0x1eb   :  { %v412_v17 = vsel %vm98_vm0, %v407_v9, %v408_v57  ;;  %v335_v5 = vpop.permute.xlu0 %334  ;;  %648 = vmatprep.subr.bf16.mxu1 %v1518_v11 }
 0x1ec   :  { %v413_v19 = vsel %vm410_vm6, %v402_v60, %v412_v17  ;;  %649 = vmatpush1.bf16.msra.mxu1 %v1517_v2  ;;  %v243_v22 = vpop.permute.xlu1 %242  ;;  %v339_v13 = vrot.slane %v335_v5, 4  ;;  %v231_v17 = vmul.bf16 %v1739_v46, %v1807_v29 }
 0x1ed   :  { %v1515_v26 = vcombine.low %v411_v10, %v413_v19  ;;  %v1516_v27 = vcombine.high %v411_v10, %v413_v19  ;;  %v250_v49 = vrot.slane %v243_v22, 4 }
 0x1ee   :  { %v1506_v28 = vcombine.high %v230_v18, %v231_v17  ;;  %v1505_v12 = vcombine.low %v230_v18, %v231_v17 }
 0x1ef   :  { %v295_v32 = vpop.permute.xlu0 %294  ;;  %650 = vmatprep.subr.bf16.mxu1 %v1516_v27 }
 0x1f0   :  { %651 = vmatpush1.bf16.msra.mxu1 %v1515_v26  ;;  %v333_v33 = vpop.permute.xlu1 %332  ;;  %v299_v39 = vrot.slane %v295_v32, 4 }
 0x1f1   :  { %v338_v35 = vrot.slane %v333_v33, 4  ;;  %652 = vmatprep.subr.bf16.mxu1 %v1514_v31 }
 0x1f3   :  { %v343_v37 = vsel %vm98_vm0, %v338_v35, %v339_v13  ;;  %v245_v1 = vpop.permute.xlu0 %244  ;;  %v1938_v35 = vcombine.low %v1851_v53, %v1851_v53 }
 0x1f4   :  { %v344_v40 = vsel %vm341_vm8, %v333_v33, %v343_v37  ;;  %653 = vmatpush1.bf16.msra.mxu1 %v1513_v36  ;;  %v293_v41 = vpop.permute.xlu1 %292  ;;  %v251_v44 = vrot.slane %v245_v1, 4 }
 0x1f5   :  { %v1511_v42 = vcombine.low %v342_v38, %v344_v40  ;;  %v1512_v43 = vcombine.high %v342_v38, %v344_v40  ;;  %v298_v47 = vrot.slane %v293_v41, 4 }
 0x1f6   :  { %v255_v60 = vsel %vm98_vm0, %v250_v49, %v251_v44  ;;  %v1529_v49 = vld [vmem:[%s2160_s0 + $0x8] sm:$0xff] }
 0x1f7   :  { %v303_v50 = vsel %vm98_vm0, %v298_v47, %v299_v39  ;;  %v249_v51 = vpop.permute.xlu0 %248  ;;  %654 = vmatprep.subr.bf16.mxu1 %v1512_v43  ;;  %v257_v4 = vsel %vm256_vm12, %v243_v22, %v255_v60  ;;  %v1591_v60 = vld [vmem:[%s2168_s8] sm:$0xff]  }
 0x1f8   :  { %v304_v16 = vsel %vm301_vm9, %v293_v41, %v303_v50  ;;  %v253_v56 = vrot.slane %v249_v51, 4  ;;  %655 = vmatpush1.bf16.msra.mxu1 %v1511_v42  ;;  %v247_v57 = vpop.permute.xlu1 %246 }
 0x1f9   :  { %v1509_v61 = vcombine.low %v302_v52, %v304_v16  ;;  %v1510_v2 = vcombine.high %v302_v52, %v304_v16  ;;  %v252_v11 = vrot.slane %v247_v57, 4  ;;  %v1532_v16 = vcombine.high %v1529_v49, %v1529_v49 }
 0x1fb   :  { %v258_v9 = vsel %vm98_vm0, %v252_v11, %v253_v56  ;;  %v509_v0 = vpop.permute.xlu0 %508  ;;  %656 = vmatprep.subr.bf16.mxu1 %v1510_v2  ;;  %v1531_v56 = vcombine.low %v1529_v49, %v1529_v49  ;;  %v1594_v2 = vld [vmem:[%s2168_s8 + $0x8] ss:$0 sps:$4 sm:$0xff]   ;;  %v1595_v11 = vld [vmem:[%s2162_s2] sm:$0xff]  }
 0x1fc   :  { %v259_v5 = vsel %vm256_vm12, %v247_v57, %v258_v9  ;;  %657 = vmatpush1.bf16.msra.mxu1 %v1509_v61  ;;  %v507_v10 = vpop.permute.xlu1 %506  ;;  %v515_v25 = vrot.slane %v509_v0, 4 }
 0x1fd   :  { %v1507_v19 = vcombine.low %v257_v4, %v259_v5  ;;  %v1508_v23 = vcombine.high %v257_v4, %v259_v5  ;;  %v514_v26 = vrot.slane %v507_v10, 4  ;;  %v827_v61 = vsel %vm98_vm0, %v1531_v56, 0 }
 0x1ff   :  { %v513_v27 = vpop.permute.xlu0 %512  ;;  %658 = vmatprep.subr.bf16.mxu1 %v1508_v23  ;;  %v518_v29 = vsel %vm98_vm0, %v514_v26, %v515_v25 }
 0x200   :  { %v517_v31 = vrot.slane %v513_v27, 4  ;;  %659 = vmatpush1.bf16.msra.mxu1 %v1507_v19  ;;  %v511_v32 = vpop.permute.xlu1 %510  ;;  %v520_v63 = vsel %vm519_vm13, %v507_v10, %v518_v29 }
 0x201   :  { %v516_v22 = vrot.slane %v511_v32, 4  ;;  %660 = vmatprep.subr.bf16.mxu1 %v1506_v28 }
 0x203   :  { %v521_v30 = vsel %vm98_vm0, %v516_v22, %v517_v31 }
 0x204   :  { %v522_v33 = vsel %vm519_vm13, %v511_v32, %v521_v30  ;;  %661 = vmatpush1.bf16.msra.mxu1 %v1505_v12 }
 0x205   :  { %v1521_v34 = vcombine.low %v520_v63, %v522_v33  ;;  %v1522_v13 = vcombine.high %v520_v63, %v522_v33 }
 0x207   :  { %676 = vmatprep.subr.bf16.mxu1 %v1522_v13 }
 0x208   :  { %677 = vmatpush2.bf16.msra.mxu1 %v1521_v34 }
 0x20b   :  { %679 = vmatmul.mubr.bf16.vlgmr.msra.gmra.mxu1 %v1938_v35 }
 0x20c   :  { %1451 = vmatprep.mubr.bf16.mxu1 %v1620_v3  ;;  %v699_v38 = vpop.permute.xlu0 %698 }
 0x20d   :  { %v691_v36 = vpop.permute.xlu1 %690 }
 0x210   :  { %v885_v25 = vpop.permute.xlu0 %884 }
 0x211   :  { %v880_v18 = vpop.permute.xlu1 %879 }
 0x214   :  { %v901_v63 = vpop.permute.xlu0 %900 }
 0x215   :  { %v896_v28 = vpop.permute.xlu1 %895 }
 0x2cb   :  { %v680_v37 = vpop.f32.mrf.mxu1 }
 0x2cc   :  { %v693_v1 = vmul.f32 %v691_v36, %v680_v37 }
 0x2cd   :  { %v682_v7 = vpop.f32.mrf.mxu1 }
 0x2ce   :  { %v701_v39 = vadd.f32 %v699_v38, %v693_v1  ;;  %v694_v40 = vmul.f32 %v691_v36, %v682_v7 }
 0x2cf   :  { %v684_v41 = vpop.f32.mrf.mxu1 }
 0x2d0   :  { %v705_v42 = vmul.f32 0.1, %v701_v39  ;;  %v702_v43 = vadd.f32 %v699_v38, %v694_v40  ;;  %vm703_vm15 = vcmp.gt.f32.partialorder %v701_v39, 0.0 }
 0x2d1   :  { %v685_v44 = vpop.f32.mrf.mxu1 }
 0x2d2   :  { %vm704_vm2 = vcmp.gt.f32.partialorder %v702_v43, 0.0  ;;  %v706_v53 = vmul.f32 0.1, %v702_v43  ;;  %v707_v47 = vsel %vm703_vm15, %v701_v39, %v705_v42 }
 0x2d3   :  { %v712_v50 = vpack.c.bf16 %v707_v47, %v707_v47 }
 0x2d4   :  { %v708_v51 = vsel %vm704_vm2, %v702_v43, %v706_v53 }
 0x2d5   :  { %v713_v52 = vpack.c.bf16 %v708_v51, %v708_v51  ;;  %v747_v57 = vsel %vm98_vm0, %v712_v50, 0 }
 0x2d7   :  { %1526 = vmatprep.subr.msk.bf16.mxu0 %vm98_vm0, %v713_v52 }
 0x2d8   :  { %767 = vmatpush1.bf16.msra.mxu0 %v747_v57 }
 0x2d9   :  { %1533 = vmatprep.subr.msk.bf16.mxu0 %vm98_vm0, %v1532_v16 }
 0x2db   :  { %1527 = vmatmul.mubr.msk.bf16.vlgmr.msra.gmra.mxu0 %vm2171_vm1, %v1591_v60 }
 0x2dc   :  { %847 = vmatpush1.bf16.msra.mxu0 %v827_v61  ;;  %794 = vmatprep.mubr.bf16.mxu0 %v1620_v3 }
 0x2e3   :  { %1528 = vmatmul.mubr.msk.bf16.gmra.mxu0 %vm2171_vm1, %v1594_v2 }
 0x2e4   :  { %864 = vmatprep.mubr.bf16.mxu0 %v1620_v3 }
 0x2eb   :  { %1534 = vmatmul.mubr.msk.bf16.vlgmr.msra.gmra.mxu0 %vm2171_vm1, %v1595_v11 }
 0x2ec   :  { %1557 = vmatprep.mubr.msk.bf16.mxu0 %vm316_vm14, %v1856_v55 }
 0x39b   :  { %v1965_v9 = vpop.f32.mrf.mxu0 }
 0x39d   :  { %v1967_v0 = vpop.f32.mrf.mxu0 }
 0x39f   :  { %v1969_v17 = vpop.f32.mrf.mxu0 }
 0x3a1   :  { %v1971_v4 = vpop.f32.mrf.mxu0 }
 0x3a3   :  { %v1973_v5 = vpop.f32.mrf.mxu0 }
 0x3a5   :  { %v1975_v10 = vpop.f32.mrf.mxu0 }
 0x3a7   :  { %v800_v19 = vpop.f32.mrf.mxu0 }
 0x3a9   :  { %v801_v23 = vpop.f32.mrf.mxu0 }
 0x3ab   :  { %v866_v26 = vpop.f32.mrf.mxu0 }
 0x3ac   :  { %v887_v27 = vmul.f32 %v880_v18, %v866_v26 }
 0x3ad   :  { %v868_v55 = vpop.f32.mrf.mxu0 }
 0x3ae   :  { %v903_v31 = vadd.f32 %v896_v28, %v887_v27  ;;  %v888_v32 = vmul.f32 %v880_v18, %v868_v55 }
 0x3af   :  { %v870_v29 = vpop.f32.mrf.mxu0 }
 0x3b0   :  { %v911_v22 = vmul.f32 0.1, %v903_v31  ;;  %v904_v12 = vadd.f32 %v896_v28, %v888_v32  ;;  %v889_v30 = vmul.f32 %v885_v25, %v870_v29  ;;  %vm907_vm14 = vcmp.gt.f32.partialorder %v903_v31, 0.0 }
 0x3b1   :  { %v872_v33 = vpop.f32.mrf.mxu0 }
 0x3b2   :  { %vm908_vm15 = vcmp.gt.f32.partialorder %v904_v12, 0.0  ;;  %v912_v34 = vmul.f32 0.1, %v904_v12  ;;  %v905_v13 = vadd.f32 %v901_v63, %v889_v30  ;;  %v890_v36 = vmul.f32 %v885_v25, %v872_v33 }
 0x3b3   :  { %v915_v38 = vsel %vm907_vm14, %v903_v31, %v911_v22 }
 0x3b4   :  { %v913_v37 = vmul.f32 0.1, %v905_v13  ;;  %v906_v1 = vadd.f32 %v901_v63, %v890_v36  ;;  %v916_v7 = vsel %vm908_vm15, %v904_v12, %v912_v34  ;;  %vm909_vm2 = vcmp.gt.f32.partialorder %v905_v13, 0.0 }
 0x3b5   :  { %v1565_v39 = vpack.c.bf16 %v916_v7, %v915_v38 }
 0x3b6   :  { %vm910_vm1 = vcmp.gt.f32.partialorder %v906_v1, 0.0  ;;  %v914_v40 = vmul.f32 0.1, %v906_v1  ;;  %v917_v41 = vsel %vm909_vm2, %v905_v13, %v913_v37 }
 0x3b7   :  { %929 = vrot.lane.b32.xlu1 %v1565_v39, %s1621_s1 }
 0x3b8   :  { %v918_v42 = vsel %vm910_vm1, %v906_v1, %v914_v40  ;;  %v715_v40 = vld [vmem:[%s2169_s9 + $0x8] sm:$0xff] }
 0x3b9   :  { %v1566_v43 = vpack.c.bf16 %v918_v42, %v917_v41  ;;  %v714_v41 = vld [vmem:[%s2169_s9] sm:$0xff] }
 0x3bb   :  { %931 = vrot.lane.b32.xlu0 %v1566_v43, %s1621_s1 }
 0x429   :  { %v930_v44 = vpop.permute.xlu1 %929 }
 0x42a   :  { %v933_v53 = vrot.slane %v930_v44, 4 }
 0x42c   :  { %v935_v47 = vsel %vm208_vm10, %v933_v53, %v930_v44  ;;  %942 = vst.msk [vmem:[#allocation2 + $0x8] sm:$0xf] %vm37_vm3, %v933_v53 }
 0x42d   :  { %941 = vst.msk [vmem:[#allocation2] sm:$0xff] %vm1745_vm11, %v935_v47  ;;  %v932_v49 = vpop.permute.xlu0 %931 }
 0x42e   :  { %v934_v50 = vrot.slane %v932_v49, 4 }
 0x430   :  { %v936_v51 = vsel %vm208_vm10, %v934_v50, %v932_v49  ;;  %944 = vst.msk [vmem:[#allocation2 + $0x14] sm:$0xf] %vm37_vm3, %v934_v50  ;;  %vm2174_vm10 = vcmask 64512  }
 0x431   :  { %943 = vst.msk [vmem:[#allocation2 + $0xc] sm:$0xff] %vm1745_vm11, %v936_v51  ;;  %vm2175_vm11 = vmmov %vm2174_vm10 }
 0x433   :  { %v1136_v52 = vld [vmem:[#allocation2 + $0x8] sm:$0xf] }
 0x434   :  { %1145 = vrot.lane.b32.xlu0 %v1136_v52, %s1627_s30  ;;  %v1988_v16 = vld [vmem:[#allocation2] sm:$0xff]  ;;  %v1044_v56 = vld [vmem:[#allocation2 + $0x8] sm:$0xf] }
 0x435   :  { %1143 = vrot.lane.b32.xlu1 %v1988_v16, %s1627_s30  ;;  %v1104_v57 = vld [vmem:[#allocation2 + $0x8] sm:$0xf]  ;;  %v1107_v61 = vmul.bf16 %v1988_v16, %v1765_v6  ;;  %v2002_v11 = vmul.bf16 %v1739_v46, %v1988_v16  ;;  %v1075_v26 = vmul.bf16 %v1988_v16, %v1778_v15  ;;  %v1015_v28 = vmul.bf16 %v1988_v16, %v1787_v20 }
 0x436   :  { %v1108_v54 = vmul.bf16 %v1104_v57, %v1757_v62  ;;  %v1072_v2 = vld [vmem:[#allocation2 + $0x8] sm:$0xf]  ;;  %v983_v32 = vmul.bf16 %v1988_v16, %v1797_v24 }
 0x437   :  { %v1076_v25 = vmul.bf16 %v1072_v2, %v1767_v8  ;;  %v1012_v27 = vld [vmem:[#allocation2 + $0x8] sm:$0xf]  ;;  %v1138_v29 = vld [vmem:[#allocation2 + $0x14] sm:$0xf] }
 0x438   :  { %1053 = vrot.lane.b32.xlu0 %v1044_v56, %s1628_s11  ;;  %v1993_v60 = vld [vmem:[#allocation2 + $0xc] sm:$0xff]  ;;  %v980_v55 = vld [vmem:[#allocation2 + $0x8] sm:$0xf]  ;;  %v1046_v22 = vld [vmem:[#allocation2 + $0x14] sm:$0xf] }
 0x439   :  { %1051 = vrot.lane.b32.xlu1 %v1988_v16, %s1628_s11  ;;  %v2006_v18 = vmul.bf16 %v1739_v46, %v1993_v60  ;;  %v1016_v46 = vmul.bf16 %v1012_v27, %v1775_v14  ;;  %v984_v31 = vmul.bf16 %v980_v55, %v1789_v21  ;;  %v1106_v12 = vld [vmem:[#allocation2 + $0x14] sm:$0xf]  ;;  %v1109_v63 = vmul.bf16 %v1993_v60, %v1765_v6  ;;  %v1164_v38 = vld [vmem:[#allocation2 + $0x8] sm:$0xf] }
 0x43a   :  { %v1110_v30 = vmul.bf16 %v1106_v12, %v1757_v62  ;;  %v1074_v33 = vld [vmem:[#allocation2 + $0x14] sm:$0xf]  ;;  %v1077_v13 = vmul.bf16 %v1993_v60, %v1778_v15  ;;  %v952_v15 = vld [vmem:[#allocation2 + $0x8] sm:$0xf]  ;;  %v985_v1 = vmul.bf16 %v1993_v60, %v1797_v24  ;;  %v1169_v39 = vmul.bf16 %v1993_v60, %v1840_v48 }
 0x43b   :  { %v1540_v19 = vcombine.high %v2002_v11, %v2006_v18  ;;  %v1539_v23 = vcombine.low %v2002_v11, %v2006_v18  ;;  %v1078_v34 = vmul.bf16 %v1074_v33, %v1767_v8  ;;  %v1014_v36 = vld [vmem:[#allocation2 + $0x14] sm:$0xf]  ;;  %v1017_v8 = vmul.bf16 %v1993_v60, %v1787_v20 }
 0x43c   :  { %1117 = vrot.lane.b32.xlu0 %v1108_v54, %s1629_s12  ;;  %v1018_v62 = vmul.bf16 %v1014_v36, %v1775_v14  ;;  %v982_v37 = vld [vmem:[#allocation2 + $0x14] sm:$0xf]  ;;  %v1168_v20 = vmul.bf16 %v1164_v38, %v1835_v45 }
 0x43d   :  { %1115 = vrot.lane.b32.xlu1 %v1107_v61, %s1629_s12  ;;  %v986_v6 = vmul.bf16 %v982_v37, %v1789_v21  ;;  %v954_v14 = vld [vmem:[#allocation2 + $0x14] sm:$0xf]  ;;  %v1167_v21 = vmul.bf16 %v1988_v16, %v1840_v48 }
 0x43e   :  { %v1166_v7 = vld [vmem:[#allocation2 + $0x14] sm:$0xf] }
 0x43f   :  { %v1170_v24 = vmul.bf16 %v1166_v7, %v1835_v45  ;;  %v716_v45 = vld [vmem:[%s2169_s9 + $0x10] sm:$0xff] }
 0x440   :  { %1085 = vrot.lane.b32.xlu0 %v1076_v25, %s1630_s13 }
 0x441   :  { %1083 = vrot.lane.b32.xlu1 %v1075_v26, %s1630_s13 }
 0x444   :  { %1025 = vrot.lane.b32.xlu0 %v1016_v46, %s1631_s14 }
 0x445   :  { %1023 = vrot.lane.b32.xlu1 %v1015_v28, %s1631_s14 }
 0x448   :  { %993 = vrot.lane.b32.xlu0 %v984_v31, %s1632_s15 }
 0x449   :  { %991 = vrot.lane.b32.xlu1 %v983_v32, %s1632_s15 }
 0x44c   :  { %1149 = vrot.lane.b32.xlu0 %v1138_v29, %s1627_s30 }
 0x44d   :  { %1147 = vrot.lane.b32.xlu1 %v1993_v60, %s1627_s30 }
 0x450   :  { %1057 = vrot.lane.b32.xlu0 %v1046_v22, %s1628_s11 }
 0x451   :  { %1055 = vrot.lane.b32.xlu1 %v1993_v60, %s1628_s11 }
 0x454   :  { %1121 = vrot.lane.b32.xlu0 %v1110_v30, %s1629_s12 }
 0x455   :  { %1119 = vrot.lane.b32.xlu1 %v1109_v63, %s1629_s12 }
 0x458   :  { %1089 = vrot.lane.b32.xlu0 %v1078_v34, %s1630_s13 }
 0x459   :  { %1087 = vrot.lane.b32.xlu1 %v1077_v13, %s1630_s13 }
 0x45c   :  { %1029 = vrot.lane.b32.xlu0 %v1018_v62, %s1631_s14 }
 0x45d   :  { %959 = vrot.lane.b32.xlu1 %v1988_v16, %s1633_s16 }
 0x460   :  { %997 = vrot.lane.b32.xlu0 %v986_v6, %s1632_s15 }
 0x461   :  { %1027 = vrot.lane.b32.xlu1 %v1017_v8, %s1631_s14  ;;  %s1635_s14 = smov [#allocation4]  }
 0x464   :  { %961 = vrot.lane.b32.xlu0 %v952_v15, %s1633_s16 }
 0x465   :  { %995 = vrot.lane.b32.xlu1 %v985_v1, %s1632_s15  ;;  %s1482_s15 = sshll.u32 %s1635_s14, 4  ;;  %s1483_s15 = int_to_ptr.vmem [resolvable:$true] %s1482_s15 }
 0x466   :  { %p1603_p1 = scmp.lt.s32.totalorder %s1483_s15, %s1483_s15 }
 0x468   :  { %965 = vrot.lane.b32.xlu0 %v954_v14, %s1633_s16 }
 0x469   :  { %963 = vrot.lane.b32.xlu1 %v1993_v60, %s1633_s16 }
 0x46c   :  { %1177 = vrot.lane.b32.xlu0 %v1168_v20, %s1634_s19 }
 0x46d   :  { %1175 = vrot.lane.b32.xlu1 %v1167_v21, %s1634_s19 }
 0x470   :  { %1181 = vrot.lane.b32.xlu0 %v1170_v24, %s1634_s19 }
 0x471   :  { %1179 = vrot.lane.b32.xlu1 %v1169_v39, %s1634_s19 }
 0x474   :  { %1365 = vperm.xlu0 %1584, %v1869_v58  }
 0x475   :  { %1357 = vperm.xlu1 %1585, %v1874_v59  }
 0x478   :  { %724 = vperm.xlu0 %1584, %v715_v40  }
 0x479   :  { %719 = vperm.xlu1 %1585, %v714_v41  }
 0x47c   :  { %1386 = vperm.xlu0 %1584, %v714_v41  }
 0x47d   :  { %729 = vperm.xlu1 %1585, %v716_v45  }
 0x480   :  { %1396 = vperm.xlu0 %1584, %v716_v45  }
 0x481   :  { %1391 = vperm.xlu1 %1585, %v715_v40  }
 0x4a6   :  { %v1146_v48 = vpop.permute.xlu0 %1145 }
 0x4a7   :  { %v1144_v58 = vpop.permute.xlu1 %1143  ;;  %v1152_v16 = vrot.slane %v1146_v48, 4 }
 0x4a8   :  { %v1151_v56 = vrot.slane %v1144_v58, 4 }
 0x4aa   :  { %v1054_v59 = vpop.permute.xlu0 %1053  ;;  %v1155_v61 = vsel %vm98_vm0, %v1151_v56, %v1152_v16 }
 0x4ab   :  { %v2082_v42 = vpop.permute.xlu1 %1051  ;;  %v1156_v27 = vsel %vm479_vm4, %v1144_v58, %v1155_v61  ;;  %v1060_v37 = vrot.slane %v1054_v59, 4 }
 0x4ac   :  { %v1059_v6 = vrot.slane %v2082_v42, 4 }
 0x4ae   :  { %v1118_v43 = vpop.permute.xlu0 %1117  ;;  %v1063_v41 = vsel %vm98_vm0, %v1059_v6, %v1060_v37 }
 0x4af   :  { %v1116_v44 = vpop.permute.xlu1 %1115  ;;  %v1124_v55 = vrot.slane %v1118_v43, 4 }
 0x4b0   :  { %v1123_v31 = vrot.slane %v1116_v44, 4 }
 0x4b2   :  { %v1086_v53 = vpop.permute.xlu0 %1085  ;;  %v1127_v34 = vsel %vm98_vm0, %v1123_v31, %v1124_v55 }
 0x4b3   :  { %v1084_v47 = vpop.permute.xlu1 %1083  ;;  %v1092_v12 = vrot.slane %v1086_v53, 4  ;;  %v1128_v1 = vsel %vm450_vm5, %v1116_v44, %v1127_v34 }
 0x4b4   :  { %v1091_v30 = vrot.slane %v1084_v47, 4 }
 0x4b6   :  { %v2084_v49 = vpop.permute.xlu0 %1025  ;;  %v1095_v14 = vsel %vm98_vm0, %v1091_v30, %v1092_v12 }
 0x4b7   :  { %v2086_v50 = vpop.permute.xlu1 %1023  ;;  %v1096_v58 = vsel %vm410_vm6, %v1084_v47, %v1095_v14  ;;  %v1032_v53 = vrot.slane %v2084_v49, 4 }
 0x4b8   :  { %v1031_v16 = vrot.slane %v2086_v50, 4 }
 0x4ba   :  { %v2088_v51 = vpop.permute.xlu0 %993 }
 0x4bb   :  { %v2090_v52 = vpop.permute.xlu1 %991  ;;  %v1000_v47 = vrot.slane %v2088_v51, 4 }
 0x4be   :  { %v1150_v57 = vpop.permute.xlu0 %1149 }
 0x4bf   :  { %v1154_v60 = vrot.slane %v1150_v57, 4  ;;  %v1148_v54 = vpop.permute.xlu1 %1147 }
 0x4c0   :  { %v1153_v2 = vrot.slane %v1148_v54, 4 }
 0x4c2   :  { %v1157_v25 = vsel %vm98_vm0, %v1153_v2, %v1154_v60  ;;  %v1058_v26 = vpop.permute.xlu0 %1057  ;;  %v1064_v60 = vsel %vm370_vm7, %v2082_v42, %v1063_v41  ;;  %v999_v2 = vrot.slane %v2090_v52, 4 }
 0x4c3   :  { %v1158_v46 = vsel %vm479_vm4, %v1148_v54, %v1157_v25  ;;  %v1056_v28 = vpop.permute.xlu1 %1055  ;;  %v1062_v13 = vrot.slane %v1058_v26, 4  ;;  %v1035_v26 = vsel %vm98_vm0, %v1031_v16, %v1032_v53 }
 0x4c4   :  { %v1553_v32 = vcombine.low %v1156_v27, %v1158_v46  ;;  %v1554_v29 = vcombine.high %v1156_v27, %v1158_v46  ;;  %v1061_v36 = vrot.slane %v1056_v28, 4  ;;  %v1036_v42 = vsel %vm341_vm8, %v2086_v50, %v1035_v26 }
 0x4c5   :  { %v1003_v31 = vsel %vm98_vm0, %v999_v2, %v1000_v47 }
 0x4c6   :  { %1313 = vmatprep.subr.bf16.mxu0 %v1554_v29  ;;  %v1122_v22 = vpop.permute.xlu0 %1121  ;;  %v1065_v7 = vsel %vm98_vm0, %v1061_v36, %v1062_v13  ;;  %v1004_v36 = vsel %vm301_vm9, %v2090_v52, %v1003_v31 }
 0x4c7   :  { %v1126_v63 = vrot.slane %v1122_v22, 4  ;;  %v1120_v33 = vpop.permute.xlu1 %1119  ;;  %1314 = vmatpush1.bf16.msra.mxu0 %v1553_v32  ;;  %v1066_v59 = vsel %vm370_vm7, %v1056_v28, %v1065_v7 }
 0x4c8   :  { %v1125_v62 = vrot.slane %v1120_v33, 4  ;;  %v1548_v54 = vcombine.high %v1064_v60, %v1066_v59  ;;  %v1547_v46 = vcombine.low %v1064_v60, %v1066_v59 }
 0x4ca   :  { %v1129_v8 = vsel %vm98_vm0, %v1125_v62, %v1126_v63  ;;  %v1090_v15 = vpop.permute.xlu0 %1089 }
 0x4cb   :  { %v1130_v38 = vsel %vm450_vm5, %v1120_v33, %v1129_v8  ;;  %v1094_v20 = vrot.slane %v1090_v15, 4  ;;  %v1088_v21 = vpop.permute.xlu1 %1087 }
 0x4cc   :  { %v1551_v24 = vcombine.low %v1128_v1, %v1130_v38  ;;  %v1552_v39 = vcombine.high %v1128_v1, %v1130_v38  ;;  %v1093_v40 = vrot.slane %v1088_v21, 4 }
 0x4ce   :  { %v1097_v45 = vsel %vm98_vm0, %v1093_v40, %v1094_v20  ;;  %1315 = vmatprep.subr.bf16.mxu0 %v1552_v39  ;;  %v1030_v48 = vpop.permute.xlu0 %1029 }
 0x4cf   :  { %v1098_v43 = vsel %vm410_vm6, %v1088_v21, %v1097_v45  ;;  %v960_v44 = vpop.permute.xlu1 %959  ;;  %1316 = vmatpush1.bf16.msra.mxu0 %v1551_v24  ;;  %v1034_v27 = vrot.slane %v1030_v48, 4 }
 0x4d0   :  { %v1549_v56 = vcombine.low %v1096_v58, %v1098_v43  ;;  %v1550_v57 = vcombine.high %v1096_v58, %v1098_v43  ;;  %v967_v33 = vrot.slane %v960_v44, 4 }
 0x4d2   :  { %1317 = vmatprep.subr.bf16.mxu0 %v1550_v57  ;;  %v998_v61 = vpop.permute.xlu0 %997 }
 0x4d3   :  { %v1028_v25 = vpop.permute.xlu1 %1027  ;;  %1318 = vmatpush1.bf16.msra.mxu0 %v1549_v56  ;;  %v1002_v32 = vrot.slane %v998_v61, 4 }
 0x4d4   :  { %v1033_v49 = vrot.slane %v1028_v25, 4  ;;  %1319 = vmatprep.subr.bf16.mxu0 %v1548_v54 }
 0x4d6   :  { %v1037_v28 = vsel %vm98_vm0, %v1033_v49, %v1034_v27  ;;  %v962_v55 = vpop.permute.xlu0 %961 }
 0x4d7   :  { %v1038_v51 = vsel %vm341_vm8, %v1028_v25, %v1037_v28  ;;  %v996_v29 = vpop.permute.xlu1 %995  ;;  %1320 = vmatpush1.bf16.msra.mxu0 %v1547_v46  ;;  %v968_v30 = vrot.slane %v962_v55, 4 }
 0x4d8   :  { %v1545_v22 = vcombine.low %v1036_v42, %v1038_v51  ;;  %v1546_v12 = vcombine.high %v1036_v42, %v1038_v51  ;;  %v1001_v63 = vrot.slane %v996_v29, 4  ;;  %v1597_v51 = vld [vmem:[%s2168_s8 + $0x8] ss:$0 sps:$4 sm:$0xff]  }
 0x4d9   :  { %v971_v6 = vsel %vm98_vm0, %v967_v33, %v968_v30 }
 0x4da   :  { %v1005_v34 = vsel %vm98_vm0, %v1001_v63, %v1002_v32  ;;  %1321 = vmatprep.subr.bf16.mxu0 %v1546_v12  ;;  %v966_v13 = vpop.permute.xlu0 %965  ;;  %v972_v20 = vsel %vm256_vm12, %v960_v44, %v971_v6  ;;  %v1596_v32 = vld [vmem:[%s2168_s8] sm:$0xff]   ;;  %s1598_s8 = scalar_lea.vmem %s1483_s15, 1536 }
 0x4db   :  { %v1006_v50 = vsel %vm301_vm9, %v996_v29, %v1005_v34  ;;  %v970_v62 = vrot.slane %v966_v13, 4  ;;  %v964_v37 = vpop.permute.xlu1 %963  ;;  %1322 = vmatpush1.bf16.msra.mxu0 %v1545_v22  ;;  %p1599_p0 = scmp.ne.s32.totalorder %s1483_s15, %s1598_s8  ;;  %p1604_p2 = scmp.lt.s32.totalorder %s1598_s8, %s1598_s8 }
 0x4dc   :  { %v1543_v8 = vcombine.low %v1004_v36, %v1006_v50  ;;  %v1544_v15 = vcombine.high %v1004_v36, %v1006_v50  ;;  %v969_v1 = vrot.slane %v964_v37, 4 }
 0x4dd   :  { %p1605_p3 = por %p1604_p2, %p1603_p1 }
 0x4de   :  { %v973_v14 = vsel %vm98_vm0, %v969_v1, %v970_v62  ;;  %1323 = vmatprep.subr.bf16.mxu0 %v1544_v15  ;;  %v1178_v38 = vpop.permute.xlu0 %1177 }
 0x4df   :  { %v974_v21 = vsel %vm256_vm12, %v964_v37, %v973_v14  ;;  %v1176_v7 = vpop.permute.xlu1 %1175  ;;  %1324 = vmatpush1.bf16.msra.mxu0 %v1543_v8  ;;  %v1184_v39 = vrot.slane %v1178_v38, 4  ;;  %p1606_p4 = pnand %p1605_p3, %p1599_p0 }
 0x4e0   :  { %v1541_v52 = vcombine.low %v972_v20, %v974_v21  ;;  %v1542_v24 = vcombine.high %v972_v20, %v974_v21  ;;  %v1183_v40 = vrot.slane %v1176_v7, 4 }
 0x4e2   :  { %1325 = vmatprep.subr.bf16.mxu0 %v1542_v24  ;;  %v1182_v41 = vpop.permute.xlu0 %1181  ;;  %v1187_v58 = vsel %vm98_vm0, %v1183_v40, %v1184_v39 }
 0x4e3   :  { %v1186_v45 = vrot.slane %v1182_v41, 4  ;;  %v1180_v48 = vpop.permute.xlu1 %1179  ;;  %1326 = vmatpush1.bf16.msra.mxu0 %v1541_v52  ;;  %v1188_v44 = vsel %vm519_vm13, %v1176_v7, %v1187_v58 }
 0x4e4   :  { %v1185_v59 = vrot.slane %v1180_v48, 4  ;;  %1327 = vmatprep.subr.bf16.mxu0 %v1540_v19 }
 0x4e6   :  { %v1189_v43 = vsel %vm98_vm0, %v1185_v59, %v1186_v45 }
 0x4e7   :  { %v1190_v53 = vsel %vm519_vm13, %v1180_v48, %v1189_v43  ;;  %1328 = vmatpush1.bf16.msra.mxu0 %v1539_v23 }
 0x4e8   :  { %v1555_v16 = vcombine.low %v1188_v44, %v1190_v53  ;;  %v1556_v56 = vcombine.high %v1188_v44, %v1190_v53 }
 0x4ea   :  { %1343 = vmatprep.subr.bf16.mxu0 %v1556_v56 }
 0x4eb   :  { %1344 = vmatpush2.bf16.msra.mxu0 %v1555_v16 }
 0x4ee   :  { %1346 = vmatmul.mubr.bf16.vlgmr.msra.gmra.mxu0 %v1938_v35 }
 0x4ef   :  { %v1366_v57 = vpop.permute.xlu0 %1365 }
 0x4f0   :  { %v1358_v60 = vpop.permute.xlu1 %1357 }
 0x4f3   :  { %v725_v54 = vpop.permute.xlu0 %724 }
 0x4f4   :  { %v791_v19 = vadd.f32 %v1969_v17, %v725_v54  ;;  %v793_v61 = vadd.f32 %v1971_v4, %v725_v54  ;;  %v720_v47 = vpop.permute.xlu1 %719 }
 0x4f5   :  { %v787_v2 = vadd.f32 %v1965_v9, %v720_v47  ;;  %v789_v25 = vadd.f32 %v1967_v0, %v720_v47 }
 0x4f6   :  { %805 = vst [vmem:[#allocation4 + $0x10] sm:$0xff] %v791_v19  ;;  %806 = vst [vmem:[#allocation4 + $0x18] sm:$0xff] %v793_v61 }
 0x4f7   :  { %803 = vst [vmem:[#allocation4] sm:$0xff] %v787_v2  ;;  %804 = vst [vmem:[#allocation4 + $0x8] sm:$0xff] %v789_v25  ;;  %v1387_v29 = vpop.permute.xlu0 %1386 }
 0x4f8   :  { %v730_v11 = vpop.permute.xlu1 %729 }
 0x4f9   :  { %v797_v18 = vadd.f32 %v1973_v5, %v730_v11  ;;  %v799_v35 = vadd.f32 %v1975_v10, %v730_v11 }
 0x4fb   :  { %807 = vst [vmem:[#allocation4 + $0x20] sm:$0xff] %v797_v18  ;;  %808 = vst [vmem:[#allocation4 + $0x28] sm:$0xff] %v799_v35 }
 0x4fc   :  { %v1392_v33 = vpop.permute.xlu1 %1391 }
 0x5ae   :  { %v1347_v23 = vpop.f32.mrf.mxu0 }
 0x5af   :  { %v1360_v17 = vmul.f32 %v1358_v60, %v1347_v23 }
 0x5b0   :  { %v1349_v26 = vpop.f32.mrf.mxu0 }
 0x5b1   :  { %v1368_v4 = vadd.f32 %v1366_v57, %v1360_v17  ;;  %v1361_v27 = vmul.f32 %v1358_v60, %v1349_v26 }
 0x5b2   :  { %v1351_v49 = vpop.f32.mrf.mxu0 }
 0x5b3   :  { %vm1370_vm1 = vcmp.gt.f32.partialorder %v1368_v4, 0.0  ;;  %v1372_v9 = vmul.f32 0.1, %v1368_v4  ;;  %v1369_v0 = vadd.f32 %v1366_v57, %v1361_v27 }
 0x5b4   :  { %v1352_v46 = vpop.f32.mrf.mxu0 }
 0x5b5   :  { %vm1371_vm3 = vcmp.gt.f32.partialorder %v1369_v0, 0.0  ;;  %v1373_v28 = vmul.f32 0.1, %v1369_v0  ;;  %v1374_v55 = vsel %vm1370_vm1, %v1368_v4, %v1372_v9 }
 0x5b6   :  { %v1379_v42 = vpack.c.bf16 %v1374_v55, %v1374_v55 }
 0x5b7   :  { %v1375_v31 = vsel %vm1371_vm3, %v1369_v0, %v1373_v28 }
 0x5b8   :  { %v1380_v5 = vpack.c.bf16 %v1375_v31, %v1375_v31  ;;  %v1414_v10 = vsel %vm98_vm0, %v1379_v42, 0 }
 0x5ba   :  { %1560 = vmatprep.subr.msk.bf16.mxu1 %vm98_vm0, %v1380_v5 }
 0x5bb   :  { %1434 = vmatpush1.bf16.msra.mxu1 %v1414_v10 }
 0x5be   :  { %1561 = vmatmul.mubr.msk.bf16.vlgmr.msra.gmra.mxu1 %vm2174_vm10, %v1596_v32 }
 0x5bf   :  { %1461 = vmatprep.mubr.bf16.mxu1 %v1620_v3  ;;  %v1397_v3 = vpop.permute.xlu0 %1396 }
 0x5c6   :  { %1562 = vmatmul.mubr.msk.bf16.gmra.mxu1 %vm2175_vm11, %v1597_v51 }
 0x67e   :  { %v1453_v22 = vpop.f32.mrf.mxu1 }
 0x67f   :  { %v1454_v12 = vadd.f32 %v1453_v22, %v1387_v29 }
 0x680   :  { %v1455_v30 = vpop.f32.mrf.mxu1 }
 0x681   :  { %1471 = vst [vmem:[#allocation4 + $0x30] sm:$0xff] %v1454_v12  ;;  %v1456_v63 = vadd.f32 %v1455_v30, %v1387_v29 }
 0x682   :  { %v1457_v34 = vpop.f32.mrf.mxu1 }
 0x683   :  { %1472 = vst [vmem:[#allocation4 + $0x38] sm:$0xff] %v1456_v63  ;;  %v1458_v13 = vadd.f32 %v1457_v34, %v1392_v33 }
 0x684   :  { %v1459_v36 = vpop.f32.mrf.mxu1 }
 0x685   :  { %1473 = vst [vmem:[#allocation4 + $0x40] sm:$0xff] %v1458_v13  ;;  %v1460_v50 = vadd.f32 %v1459_v36, %v1392_v33 }
 0x686   :  { %v1463_v62 = vpop.f32.mrf.mxu1 }
 0x687   :  { %1474 = vst [vmem:[#allocation4 + $0x48] sm:$0xff] %v1460_v50  ;;  %v1464_v37 = vadd.f32 %v1463_v62, %v1397_v3 }
 0x688   :  { %v1465_v6 = vpop.f32.mrf.mxu1 }
 0x689   :  { %1475 = vst [vmem:[#allocation4 + $0x50] sm:$0xff] %v1464_v37  ;;  %v1466_v8 = vadd.f32 %v1465_v6, %v1397_v3 }
 0x68a   :  { %v1467_v15 = vpop.f32.mrf.mxu1 }
 0x68b   :  { %1476 = vst [vmem:[#allocation4 + $0x58] sm:$0xff] %v1466_v8 }
 0x68c   :  { %v1468_v1 = vpop.f32.mrf.mxu1 }
 0x68d   :  { %1609 = shalt.err (!%p1606_p4)
}
 0x68e   :  { %s1636_s16 = smov 256  }
 0x68f   :  { %1488 = dma.vmem_to_hbm [thread:$0]  %s1483_s15, 1536, %s2170_s10, [#allocation5], %s1636_s16, %s1636_s16, %s1623_s26  }
 0x690   :  { %1618 = dma.done.wait [#allocation5], 1536  }
 0x691   :  { %1619 = vsyncadd [#allocation5], 4294965760 }
 0x692   :  { %1492 = vsyncpa [#allocation5], 1 }

// kernel: tpu_custom_call.1
= control target key start
LH: loop header
LB: loop body
LE: loop exit
PB: predicated region body
PF: predicated region fallthrough
CT: control target
= control target key end

     0   :  { %vm98_vm0 = vcmask 1043456   ;;  %v1620_v3 = vmov 0   ;;  %vm2171_vm1 = vcmask 64512   ;;  %s2160_s0 = inlined_call_operand.vmem [shape: bf16[2,8,256], index: 0, kind: input, shape index: {}]   ;;  %s2161_s1 = inlined_call_operand.vmem [shape: bf16[3,256], index: 1, kind: input, shape index: {}]   ;;  %s2162_s2 = inlined_call_operand.vmem [shape: bf16[16,8], index: 2, kind: input, shape index: {}]   ;;  %s2163_s3 = inlined_call_operand.vmem [shape: f32[16,1], index: 3, kind: input, shape index: {}]   ;;  %s2164_s4 = inlined_call_operand.vmem [shape: f32[16,1], index: 4, kind: input, shape index: {}]   ;;  %s2165_s5 = inlined_call_operand.vmem [shape: bf16[8,144], index: 5, kind: input, shape index: {}]   ;;  %s2166_s6 = inlined_call_operand.vmem [shape: f32[8,1], index: 6, kind: input, shape index: {}]   ;;  %s2167_s7 = inlined_call_operand.vmem [shape: f32[8,1], index: 7, kind: input, shape index: {}]   ;;  %s2168_s8 = inlined_call_operand.vmem [shape: bf16[24,8], index: 8, kind: input, shape index: {}]   ;;  %s2169_s9 = inlined_call_operand.vmem [shape: f32[24,1], index: 9, kind: input, shape index: {}]   ;;  %s2170_s10 = inlined_call_operand.hbm [shape: f32[2,24,256], index: 10, kind: output, shape index: {}]  }
   0x1   :  { %v83_v0 = vld [vmem:[%s2160_s0] sm:$0xff]  ;;  %137 = vmatprep.mubr.bf16.mxu1 %v1620_v3  ;;  %1584 = vset.pattern.permute.xlu0 %v1620_v3  ;;  %v1715_v7 = vld [vmem:[%s2163_s3 + $0x8] sm:$0xff] }
   0x2   :  { %v1496_v1 = vcombine.high %v83_v0, %v83_v0  ;;  %v1495_v2 = vcombine.low %v83_v0, %v83_v0  ;;  %v1700_v4 = vld [vmem:[%s2163_s3] sm:$0xff]  ;;  %1585 = vset.pattern.permute.xlu1 %v1620_v3  ;;  %v1723_v9 = vld [vmem:[%s2164_s4 + $0x8] sm:$0xff]  ;;  %784 = vmatprep.mubr.bf16.mxu0 %v1620_v3 }
   0x3   :  { %v1705_v5 = vld [vmem:[%s2164_s4] sm:$0xff]  ;;  %152 = vperm.xlu0 %1584, %v1700_v4  }
   0x4   :  { %v1588_v6 = vld [vmem:[%s2162_s2] sm:$0xff]   ;;  %1497 = vmatprep.subr.msk.bf16.mxu1 %vm98_vm0, %v1496_v1  ;;  %v100_v8 = vsel %vm98_vm0, %v1495_v2, 0  ;;  %168 = vperm.xlu1 %1585, %v1705_v5  }
   0x5   :  { %120 = vmatpush1.bf16.msra.mxu1 %v100_v8 }
   0x6   :  { %15 = vsyncpa [#allocation5], 0  ;;  %vm40_vm2 = vcmask 273544   ;;  %v56_v10 = vlaneseq  ;;  %vm37_vm3 = vcmask 134144   ;;  %s1622_s4 = smov 32   ;;  %s1623_s26 = smov 16  }
   0x7   :  { %157 = vperm.xlu0 %1584, %v1715_v7   ;;  %41 = vst.msk [vmem:[#allocation2 + $0x8] sm:$0xf] %vm40_vm2, %v1620_v3  ;;  %42 = vst.msk [vmem:[#allocation2 + $0x14] sm:$0xf] %vm40_vm2, %v1620_v3  ;;  %s1624_s27 = smov 18   ;;  %s1625_s28 = smov 34  }
   0x8   :  { %1498 = vmatmul.mubr.msk.bf16.vlgmr.msra.gmra.mxu1 %vm2171_vm1, %v1588_v6  ;;  %173 = vperm.xlu1 %1585, %v1723_v9   ;;  %v1493_v11 = vld.sshfl [vmem:[%s2161_s1] sm:$0x11 pattern:$0x76325410]  ;;  %38 = vst.msk [vmem:[#allocation2] sm:$0xf] %vm37_vm3, %v1620_v3 }
   0x9   :  { %39 = vst.msk [vmem:[#allocation2 + $0xc] sm:$0xf] %vm37_vm3, %v1620_v3  ;;  %v52_v15 = vcombine.high %v1493_v11, %v1493_v11  ;;  %v57_v16 = vshrl.u32 %v56_v10, 7  ;;  %v54_v21 = vpack.i.b16 %v1493_v11, %v1493_v11  ;;  %v67_v26 = vshrl.u32 %v1493_v11, 16  ;;  %s1621_s1 = smov 17   ;;  %s1626_s29 = smov 2  }
   0xa   :  { %vm215_vm8 = vcmask 1043592   ;;  %vm216_vm9 = vcmask 1047556   ;;  %vm208_vm10 = vcmask 138240   ;;  %s1627_s30 = smov 95   ;;  %vm425_vm12 = vcmask 261120   ;;  %s1628_s11 = smov 111  }
   0xb   :  { %v58_v24 = vsub.s32 0, %v57_v16  ;;  %v61_v25 = vpack.i.b16 %v52_v15, %v52_v15  ;;  %v74_v27 = vshrl.u32 %v52_v15, 16  ;;  %v68_v38 = vpack.i.b16 %v67_v26, %v67_v26  ;;  %vm1745_vm11 = vmor %vm216_vm9, %vm215_vm8  ;;  %s1629_s12 = smov 96   ;;  %s1630_s13 = smov 110  }
   0xc   :  { %vm385_vm13 = vcmask 146432   ;;  %vm316_vm14 = vcmask 130048   ;;  %vm276_vm15 = vcmask 15360   ;;  %s1631_s14 = smov 112   ;;  %s1632_s15 = smov 126   ;;  %vm494_vm2 = vcmask 277504  }
   0xd   :  { %v59_v36 = vrot.slane %v54_v21, %v58_v24  ;;  %v66_v37 = vrot.slane %v61_v25, %v58_v24  ;;  %v75_v39 = vpack.i.b16 %v74_v27, %v74_v27  ;;  %v73_v47 = vrot.slane %v68_v38, %v58_v24  ;;  %s1633_s16 = smov 127   ;;  %s1634_s19 = smov 94  }
   0xe   :  { %vm341_vm8 = vcmask 916480   ;;  %vm301_vm9 = vcmask 1031168  }
   0xf   :  { %v1739_v46 = vcombine.low %v59_v36, %v66_v37  ;;  %v80_v48 = vrot.slane %v75_v39, %v58_v24 }
  0x11   :  { %v1502_v52 = vcombine.low %v73_v47, %v80_v48 }
  0x7e   :  { %v153_v12 = vpop.permute.xlu0 %152 }
  0x7f   :  { %v169_v13 = vpop.permute.xlu1 %168 }
  0x82   :  { %v158_v22 = vpop.permute.xlu0 %157 }
  0x83   :  { %v174_v31 = vpop.permute.xlu1 %173 }
  0xc8   :  { %v139_v14 = vpop.f32.mrf.mxu1 }
  0xc9   :  { %v160_v17 = vmul.f32 %v153_v12, %v139_v14 }
  0xca   :  { %v141_v18 = vpop.f32.mrf.mxu1 }
  0xcb   :  { %v176_v19 = vadd.f32 %v169_v13, %v160_v17  ;;  %v161_v20 = vmul.f32 %v153_v12, %v141_v18 }
  0xcc   :  { %v143_v23 = vpop.f32.mrf.mxu1 }
  0xcd   :  { %v184_v28 = vmul.f32 0.1, %v176_v19  ;;  %v177_v29 = vadd.f32 %v169_v13, %v161_v20  ;;  %v162_v30 = vmul.f32 %v158_v22, %v143_v23  ;;  %vm180_vm4 = vcmp.gt.f32.partialorder %v176_v19, 0.0 }
  0xce   :  { %v145_v32 = vpop.f32.mrf.mxu1 }
  0xcf   :  { %vm181_vm5 = vcmp.gt.f32.partialorder %v177_v29, 0.0  ;;  %v185_v33 = vmul.f32 0.1, %v177_v29  ;;  %v178_v34 = vadd.f32 %v174_v31, %v162_v30  ;;  %v163_v35 = vmul.f32 %v158_v22, %v145_v32 }
  0xd0   :  { %v188_v42 = vsel %vm180_vm4, %v176_v19, %v184_v28  ;;  %vm479_vm4 = vcmask 777216  }
  0xd1   :  { %v186_v40 = vmul.f32 0.1, %v178_v34  ;;  %v179_v41 = vadd.f32 %v174_v31, %v163_v35  ;;  %v189_v43 = vsel %vm181_vm5, %v177_v29, %v185_v33  ;;  %vm182_vm6 = vcmp.gt.f32.partialorder %v178_v34, 0.0 }
  0xd2   :  { %v1563_v44 = vpack.c.bf16 %v189_v43, %v188_v42  ;;  %vm450_vm5 = vcmask 785408  }
  0xd3   :  { %vm183_vm7 = vcmp.gt.f32.partialorder %v179_v41, 0.0  ;;  %v187_v45 = vmul.f32 0.1, %v179_v41  ;;  %v190_v49 = vsel %vm182_vm6, %v178_v34, %v186_v40  ;;  %vm410_vm6 = vcmask 900096  }
  0xd4   :  { %202 = vrot.lane.b32.xlu0 %v1563_v44, %s1621_s1 }
  0xd5   :  { %v191_v50 = vsel %vm183_vm7, %v179_v41, %v187_v45  ;;  %vm370_vm7 = vcmask 908288  }
  0xd6   :  { %v1564_v51 = vpack.c.bf16 %v191_v50, %v190_v49 }
  0xd8   :  { %422 = vrot.lane.b32.xlu0 %v1739_v46, %s1622_s4  ;;  %204 = vrot.lane.b32.xlu1 %v1564_v51, %s1621_s1 }
  0xdc   :  { %313 = vrot.lane.b32.xlu0 %v1739_v46, %s1623_s26  ;;  %382 = vrot.lane.b32.xlu1 %v1502_v52, %s1624_s27 }
  0xe0   :  { %491 = vrot.lane.b32.xlu0 %v1502_v52, %s1625_s28  ;;  %273 = vrot.lane.b32.xlu1 %v1502_v52, %s1626_s29 }
 0x146   :  { %v203_v53 = vpop.permute.xlu0 %202 }
 0x147   :  { %v206_v55 = vrot.slane %v203_v53, 4 }
 0x149   :  { %v209_v56 = vsel %vm208_vm10, %v206_v55, %v203_v53  ;;  %219 = vst.msk [vmem:[#allocation2 + $0x8] sm:$0xf] %vm37_vm3, %v206_v55  ;;  %v1851_v53 = vld [vmem:[%s2165_s5] sm:$0xff] }
 0x14a   :  { %218 = vst.msk [vmem:[#allocation2] sm:$0xff] %vm1745_vm11, %v209_v56  ;;  %v205_v57 = vpop.permute.xlu1 %204  ;;  %v423_v60 = vpop.permute.xlu0 %422  ;;  %v1856_v55 = vcombine.high %v1851_v53, %v1851_v53 }
 0x14b   :  { %v207_v58 = vrot.slane %v205_v57, 4  ;;  %v1757_v62 = vrot.slane %v423_v60, 4 }
 0x14c   :  { %1523 = vmatprep.mubr.msk.bf16.mxu1 %vm316_vm14, %v1856_v55 }
 0x14d   :  { %v210_v59 = vsel %vm208_vm10, %v207_v58, %v205_v57  ;;  %221 = vst.msk [vmem:[#allocation2 + $0x14] sm:$0xf] %vm37_vm3, %v207_v58  ;;  %v1765_v6 = vsel %vm425_vm12, %v1757_v62, %v423_v60  ;;  %v1869_v58 = vld [vmem:[%s2167_s7] sm:$0xff]  ;;  %vm256_vm12 = vcmask 1039360  }
 0x14e   :  { %220 = vst.msk [vmem:[#allocation2 + $0xc] sm:$0xff] %vm1745_vm11, %v210_v59  ;;  %v383_v0 = vpop.permute.xlu1 %382  ;;  %v314_v10 = vpop.permute.xlu0 %313  ;;  %v1874_v59 = vld [vmem:[%s2166_s6] sm:$0xff] }
 0x14f   :  { %v1767_v8 = vrot.slane %v383_v0, 4  ;;  %v1775_v14 = vrot.slane %v314_v10, 4 }
 0x150   :  { %v459_v61 = vld [vmem:[#allocation2 + $0x8] sm:$0xf] }
 0x151   :  { %468 = vrot.lane.b32.xlu0 %v459_v61, %s1627_s30  ;;  %v1760_v63 = vld [vmem:[#allocation2] sm:$0xff]  ;;  %v350_v1 = vld [vmem:[#allocation2 + $0x8] sm:$0xf]  ;;  %v1778_v15 = vsel %vm385_vm13, %v1767_v8, %v383_v0  ;;  %v1787_v20 = vsel %vm316_vm14, %v1775_v14, %v314_v10  ;;  %vm519_vm13 = vcmask 769024  }
 0x152   :  { %466 = vrot.lane.b32.xlu1 %v1760_v63, %s1627_s30  ;;  %v419_v2 = vld [vmem:[#allocation2 + $0x8] sm:$0xf]  ;;  %v429_v12 = vmul.bf16 %v1760_v63, %v1765_v6  ;;  %v274_v16 = vpop.permute.xlu1 %273  ;;  %v389_v18 = vmul.bf16 %v1760_v63, %v1778_v15  ;;  %v320_v23 = vmul.bf16 %v1760_v63, %v1787_v20  ;;  %v492_v42 = vpop.permute.xlu0 %491 }
 0x153   :  { %v430_v11 = vmul.bf16 %v1757_v62, %v419_v2  ;;  %v379_v13 = vld [vmem:[#allocation2 + $0x8] sm:$0xf]  ;;  %v1789_v21 = vrot.slane %v274_v16, 4  ;;  %v1835_v45 = vrot.slane %v492_v42, 4 }
 0x154   :  { %v390_v17 = vmul.bf16 %v1767_v8, %v379_v13  ;;  %v310_v19 = vld [vmem:[#allocation2 + $0x8] sm:$0xf]  ;;  %v461_v28 = vld [vmem:[#allocation2 + $0x14] sm:$0xf] }
 0x155   :  { %359 = vrot.lane.b32.xlu0 %v350_v1, %s1628_s11  ;;  %v321_v22 = vmul.bf16 %v1775_v14, %v310_v19  ;;  %v1797_v24 = vsel %vm276_vm15, %v1789_v21, %v274_v16  ;;  %v265_v25 = vld [vmem:[#allocation2 + $0x8] sm:$0xf]  ;;  %v1807_v29 = vld [vmem:[#allocation2 + $0xc] sm:$0xff]  ;;  %v352_v30 = vld [vmem:[#allocation2 + $0x14] sm:$0xf]  ;;  %v1840_v48 = vsel %vm494_vm2, %v1835_v45, %v492_v42 }
 0x156   :  { %357 = vrot.lane.b32.xlu1 %v1760_v63, %s1628_s11  ;;  %v281_v26 = vmul.bf16 %v1789_v21, %v265_v25  ;;  %v280_v27 = vmul.bf16 %v1760_v63, %v1797_v24  ;;  %v421_v31 = vld [vmem:[#allocation2 + $0x14] sm:$0xf]  ;;  %v431_v33 = vmul.bf16 %v1807_v29, %v1765_v6  ;;  %v391_v36 = vmul.bf16 %v1807_v29, %v1778_v15  ;;  %v235_v43 = vld [vmem:[#allocation2 + $0x8] sm:$0xf] }
 0x157   :  { %v432_v32 = vmul.bf16 %v1757_v62, %v421_v31  ;;  %v381_v34 = vld [vmem:[#allocation2 + $0x14] sm:$0xf]  ;;  %v322_v41 = vmul.bf16 %v1807_v29, %v1787_v20  ;;  %v282_v44 = vmul.bf16 %v1807_v29, %v1797_v24  ;;  %v488_v49 = vld [vmem:[#allocation2 + $0x8] sm:$0xf]  ;;  %v498_v51 = vmul.bf16 %v1840_v48, %v1760_v63 }
 0x158   :  { %v392_v35 = vmul.bf16 %v1767_v8, %v381_v34  ;;  %v312_v37 = vld [vmem:[#allocation2 + $0x14] sm:$0xf]  ;;  %v499_v50 = vmul.bf16 %v1835_v45, %v488_v49  ;;  %v500_v57 = vmul.bf16 %v1840_v48, %v1807_v29 }
 0x159   :  { %439 = vrot.lane.b32.xlu0 %v430_v11, %s1629_s12  ;;  %v323_v38 = vmul.bf16 %v1775_v14, %v312_v37  ;;  %v267_v39 = vld [vmem:[#allocation2 + $0x14] sm:$0xf] }
 0x15a   :  { %437 = vrot.lane.b32.xlu1 %v429_v12, %s1629_s12  ;;  %v283_v40 = vmul.bf16 %v1789_v21, %v267_v39  ;;  %v237_v47 = vld [vmem:[#allocation2 + $0x14] sm:$0xf] }
 0x15b   :  { %v490_v52 = vld [vmem:[#allocation2 + $0x14] sm:$0xf] }
 0x15c   :  { %v501_v56 = vmul.bf16 %v1835_v45, %v490_v52 }
 0x15d   :  { %399 = vrot.lane.b32.xlu0 %v390_v17, %s1630_s13 }
 0x15e   :  { %397 = vrot.lane.b32.xlu1 %v389_v18, %s1630_s13 }
 0x161   :  { %330 = vrot.lane.b32.xlu0 %v321_v22, %s1631_s14 }
 0x162   :  { %328 = vrot.lane.b32.xlu1 %v320_v23, %s1631_s14 }
 0x165   :  { %290 = vrot.lane.b32.xlu0 %v281_v26, %s1632_s15 }
 0x166   :  { %288 = vrot.lane.b32.xlu1 %v280_v27, %s1632_s15 }
 0x169   :  { %472 = vrot.lane.b32.xlu0 %v461_v28, %s1627_s30 }
 0x16a   :  { %470 = vrot.lane.b32.xlu1 %v1807_v29, %s1627_s30 }
 0x16d   :  { %363 = vrot.lane.b32.xlu0 %v352_v30, %s1628_s11 }
 0x16e   :  { %361 = vrot.lane.b32.xlu1 %v1807_v29, %s1628_s11 }
 0x171   :  { %443 = vrot.lane.b32.xlu0 %v432_v32, %s1629_s12 }
 0x172   :  { %441 = vrot.lane.b32.xlu1 %v431_v33, %s1629_s12 }
 0x175   :  { %403 = vrot.lane.b32.xlu0 %v392_v35, %s1630_s13 }
 0x176   :  { %401 = vrot.lane.b32.xlu1 %v391_v36, %s1630_s13 }
 0x179   :  { %334 = vrot.lane.b32.xlu0 %v323_v38, %s1631_s14 }
 0x17a   :  { %242 = vrot.lane.b32.xlu1 %v1760_v63, %s1633_s16 }
 0x17d   :  { %294 = vrot.lane.b32.xlu0 %v283_v40, %s1632_s15 }
 0x17e   :  { %332 = vrot.lane.b32.xlu1 %v322_v41, %s1631_s14 }
 0x181   :  { %244 = vrot.lane.b32.xlu0 %v235_v43, %s1633_s16 }
 0x182   :  { %292 = vrot.lane.b32.xlu1 %v282_v44, %s1632_s15 }
 0x185   :  { %248 = vrot.lane.b32.xlu0 %v237_v47, %s1633_s16 }
 0x186   :  { %246 = vrot.lane.b32.xlu1 %v1807_v29, %s1633_s16 }
 0x189   :  { %508 = vrot.lane.b32.xlu0 %v499_v50, %s1634_s19 }
 0x18a   :  { %506 = vrot.lane.b32.xlu1 %v498_v51, %s1634_s19 }
 0x18d   :  { %512 = vrot.lane.b32.xlu0 %v501_v56, %s1634_s19 }
 0x18e   :  { %510 = vrot.lane.b32.xlu1 %v500_v57, %s1634_s19 }
 0x191   :  { %698 = vperm.xlu0 %1584, %v1869_v58  }
 0x192   :  { %690 = vperm.xlu1 %1585, %v1874_v59  }
 0x195   :  { %884 = vperm.xlu0 %1584, %v1715_v7  }
 0x196   :  { %879 = vperm.xlu1 %1585, %v1700_v4  }
 0x199   :  { %900 = vperm.xlu0 %1584, %v1723_v9  }
 0x19a   :  { %895 = vperm.xlu1 %1585, %v1705_v5  }
 0x1c3   :  { %v469_v60 = vpop.permute.xlu0 %468 }
 0x1c4   :  { %v467_v61 = vpop.permute.xlu1 %466  ;;  %v475_v9 = vrot.slane %v469_v60, 4 }
 0x1c5   :  { %v474_v17 = vrot.slane %v467_v61, 4 }
 0x1c7   :  { %v360_v0 = vpop.permute.xlu0 %359  ;;  %v478_v22 = vsel %vm98_vm0, %v474_v17, %v475_v9 }
 0x1c8   :  { %v1882_v1 = vpop.permute.xlu1 %357  ;;  %v480_v27 = vsel %vm479_vm4, %v467_v61, %v478_v22  ;;  %v366_v44 = vrot.slane %v360_v0, 4 }
 0x1c9   :  { %v365_v47 = vrot.slane %v1882_v1, 4 }
 0x1cb   :  { %v440_v2 = vpop.permute.xlu0 %439  ;;  %v369_v0 = vsel %vm98_vm0, %v365_v47, %v366_v44 }
 0x1cc   :  { %v438_v10 = vpop.permute.xlu1 %437  ;;  %v446_v31 = vrot.slane %v440_v2, 4 }
 0x1cd   :  { %v445_v32 = vrot.slane %v438_v10, 4 }
 0x1cf   :  { %v400_v11 = vpop.permute.xlu0 %399  ;;  %v449_v40 = vsel %vm98_vm0, %v445_v32, %v446_v31 }
 0x1d0   :  { %v398_v12 = vpop.permute.xlu1 %397  ;;  %v406_v36 = vrot.slane %v400_v11, 4  ;;  %v451_v51 = vsel %vm450_vm5, %v438_v10, %v449_v40 }
 0x1d1   :  { %v405_v37 = vrot.slane %v398_v12, 4 }
 0x1d3   :  { %v1884_v13 = vpop.permute.xlu0 %330  ;;  %v409_v52 = vsel %vm98_vm0, %v405_v37, %v406_v36 }
 0x1d4   :  { %v1886_v16 = vpop.permute.xlu1 %328  ;;  %v411_v10 = vsel %vm410_vm6, %v398_v12, %v409_v52 }
 0x1d7   :  { %v1888_v7 = vpop.permute.xlu0 %290 }
 0x1d8   :  { %v1890_v4 = vpop.permute.xlu1 %288  ;;  %v297_v12 = vrot.slane %v1888_v7, 4 }
 0x1db   :  { %v473_v5 = vpop.permute.xlu0 %472 }
 0x1dc   :  { %v477_v18 = vrot.slane %v473_v5, 4  ;;  %v471_v19 = vpop.permute.xlu1 %470 }
 0x1dd   :  { %v476_v23 = vrot.slane %v471_v19, 4 }
 0x1df   :  { %v481_v25 = vsel %vm98_vm0, %v476_v23, %v477_v18  ;;  %v364_v26 = vpop.permute.xlu0 %363  ;;  %v337_v23 = vrot.slane %v1884_v13, 4 }
 0x1e0   :  { %v482_v28 = vsel %vm479_vm4, %v471_v19, %v481_v25  ;;  %v362_v30 = vpop.permute.xlu1 %361  ;;  %v368_v41 = vrot.slane %v364_v26, 4  ;;  %v336_v25 = vrot.slane %v1886_v16, 4 }
 0x1e1   :  { %v1519_v33 = vcombine.low %v480_v27, %v482_v28  ;;  %v1520_v34 = vcombine.high %v480_v27, %v482_v28  ;;  %v367_v42 = vrot.slane %v362_v30, 4  ;;  %v371_v28 = vsel %vm370_vm7, %v1882_v1, %v369_v0 }
 0x1e3   :  { %v444_v35 = vpop.permute.xlu0 %443  ;;  %646 = vmatprep.subr.bf16.mxu1 %v1520_v34  ;;  %v372_v61 = vsel %vm98_vm0, %v367_v42, %v368_v41  ;;  %v340_v34 = vsel %vm98_vm0, %v336_v25, %v337_v23 }
 0x1e4   :  { %v448_v38 = vrot.slane %v444_v35, 4  ;;  %647 = vmatpush1.bf16.msra.mxu1 %v1519_v33  ;;  %v442_v39 = vpop.permute.xlu1 %441  ;;  %v373_v18 = vsel %vm370_vm7, %v362_v30, %v372_v61  ;;  %v296_v30 = vrot.slane %v1890_v4, 4 }
 0x1e5   :  { %v447_v43 = vrot.slane %v442_v39, 4  ;;  %v1514_v31 = vcombine.high %v371_v28, %v373_v18  ;;  %v1513_v36 = vcombine.low %v371_v28, %v373_v18  ;;  %v230_v18 = vmul.bf16 %v1739_v46, %v1760_v63 }
 0x1e6   :  { %v300_v7 = vsel %vm98_vm0, %v296_v30, %v297_v12 }
 0x1e7   :  { %v452_v49 = vsel %vm98_vm0, %v447_v43, %v448_v38  ;;  %v404_v50 = vpop.permute.xlu0 %403  ;;  %v342_v38 = vsel %vm341_vm8, %v1886_v16, %v340_v34  ;;  %v302_v52 = vsel %vm301_vm9, %v1890_v4, %v300_v7 }
 0x1e8   :  { %v453_v56 = vsel %vm450_vm5, %v442_v39, %v452_v49  ;;  %v408_v57 = vrot.slane %v404_v50, 4  ;;  %v402_v60 = vpop.permute.xlu1 %401 }
 0x1e9   :  { %v1517_v2 = vcombine.low %v451_v51, %v453_v56  ;;  %v1518_v11 = vcombine.high %v451_v51, %v453_v56  ;;  %v407_v9 = vrot.slane %v402_v60, 4 }
 0x1eb   :  { %v412_v17 = vsel %vm98_vm0, %v407_v9, %v408_v57  ;;  %v335_v5 = vpop.permute.xlu0 %334  ;;  %648 = vmatprep.subr.bf16.mxu1 %v1518_v11 }
 0x1ec   :  { %v413_v19 = vsel %vm410_vm6, %v402_v60, %v412_v17  ;;  %649 = vmatpush1.bf16.msra.mxu1 %v1517_v2  ;;  %v243_v22 = vpop.permute.xlu1 %242  ;;  %v339_v13 = vrot.slane %v335_v5, 4  ;;  %v231_v17 = vmul.bf16 %v1739_v46, %v1807_v29 }
 0x1ed   :  { %v1515_v26 = vcombine.low %v411_v10, %v413_v19  ;;  %v1516_v27 = vcombine.high %v411_v10, %v413_v19  ;;  %v250_v49 = vrot.slane %v243_v22, 4 }
 0x1ee   :  { %v1506_v28 = vcombine.high %v230_v18, %v231_v17  ;;  %v1505_v12 = vcombine.low %v230_v18, %v231_v17 }
 0x1ef   :  { %v295_v32 = vpop.permute.xlu0 %294  ;;  %650 = vmatprep.subr.bf16.mxu1 %v1516_v27 }
 0x1f0   :  { %651 = vmatpush1.bf16.msra.mxu1 %v1515_v26  ;;  %v333_v33 = vpop.permute.xlu1 %332  ;;  %v299_v39 = vrot.slane %v295_v32, 4 }
 0x1f1   :  { %v338_v35 = vrot.slane %v333_v33, 4  ;;  %652 = vmatprep.subr.bf16.mxu1 %v1514_v31 }
 0x1f3   :  { %v343_v37 = vsel %vm98_vm0, %v338_v35, %v339_v13  ;;  %v245_v1 = vpop.permute.xlu0 %244  ;;  %v1938_v35 = vcombine.low %v1851_v53, %v1851_v53 }
 0x1f4   :  { %v344_v40 = vsel %vm341_vm8, %v333_v33, %v343_v37  ;;  %653 = vmatpush1.bf16.msra.mxu1 %v1513_v36  ;;  %v293_v41 = vpop.permute.xlu1 %292  ;;  %v251_v44 = vrot.slane %v245_v1, 4 }
 0x1f5   :  { %v1511_v42 = vcombine.low %v342_v38, %v344_v40  ;;  %v1512_v43 = vcombine.high %v342_v38, %v344_v40  ;;  %v298_v47 = vrot.slane %v293_v41, 4 }
 0x1f6   :  { %v255_v60 = vsel %vm98_vm0, %v250_v49, %v251_v44  ;;  %v1529_v49 = vld [vmem:[%s2160_s0 + $0x8] sm:$0xff] }
 0x1f7   :  { %v303_v50 = vsel %vm98_vm0, %v298_v47, %v299_v39  ;;  %v249_v51 = vpop.permute.xlu0 %248  ;;  %654 = vmatprep.subr.bf16.mxu1 %v1512_v43  ;;  %v257_v4 = vsel %vm256_vm12, %v243_v22, %v255_v60  ;;  %v1591_v60 = vld [vmem:[%s2168_s8] sm:$0xff]  }
 0x1f8   :  { %v304_v16 = vsel %vm301_vm9, %v293_v41, %v303_v50  ;;  %v253_v56 = vrot.slane %v249_v51, 4  ;;  %655 = vmatpush1.bf16.msra.mxu1 %v1511_v42  ;;  %v247_v57 = vpop.permute.xlu1 %246 }
 0x1f9   :  { %v1509_v61 = vcombine.low %v302_v52, %v304_v16  ;;  %v1510_v2 = vcombine.high %v302_v52, %v304_v16  ;;  %v252_v11 = vrot.slane %v247_v57, 4  ;;  %v1532_v16 = vcombine.high %v1529_v49, %v1529_v49 }
 0x1fb   :  { %v258_v9 = vsel %vm98_vm0, %v252_v11, %v253_v56  ;;  %v509_v0 = vpop.permute.xlu0 %508  ;;  %656 = vmatprep.subr.bf16.mxu1 %v1510_v2  ;;  %v1531_v56 = vcombine.low %v1529_v49, %v1529_v49  ;;  %v1594_v2 = vld [vmem:[%s2168_s8 + $0x8] ss:$0 sps:$4 sm:$0xff]   ;;  %v1595_v11 = vld [vmem:[%s2162_s2] sm:$0xff]  }
 0x1fc   :  { %v259_v5 = vsel %vm256_vm12, %v247_v57, %v258_v9  ;;  %657 = vmatpush1.bf16.msra.mxu1 %v1509_v61  ;;  %v507_v10 = vpop.permute.xlu1 %506  ;;  %v515_v25 = vrot.slane %v509_v0, 4 }
 0x1fd   :  { %v1507_v19 = vcombine.low %v257_v4, %v259_v5  ;;  %v1508_v23 = vcombine.high %v257_v4, %v259_v5  ;;  %v514_v26 = vrot.slane %v507_v10, 4  ;;  %v827_v61 = vsel %vm98_vm0, %v1531_v56, 0 }
 0x1ff   :  { %v513_v27 = vpop.permute.xlu0 %512  ;;  %658 = vmatprep.subr.bf16.mxu1 %v1508_v23  ;;  %v518_v29 = vsel %vm98_vm0, %v514_v26, %v515_v25 }
 0x200   :  { %v517_v31 = vrot.slane %v513_v27, 4  ;;  %659 = vmatpush1.bf16.msra.mxu1 %v1507_v19  ;;  %v511_v32 = vpop.permute.xlu1 %510  ;;  %v520_v63 = vsel %vm519_vm13, %v507_v10, %v518_v29 }
 0x201   :  { %v516_v22 = vrot.slane %v511_v32, 4  ;;  %660 = vmatprep.subr.bf16.mxu1 %v1506_v28 }
 0x203   :  { %v521_v30 = vsel %vm98_vm0, %v516_v22, %v517_v31 }
 0x204   :  { %v522_v33 = vsel %vm519_vm13, %v511_v32, %v521_v30  ;;  %661 = vmatpush1.bf16.msra.mxu1 %v1505_v12 }
 0x205   :  { %v1521_v34 = vcombine.low %v520_v63, %v522_v33  ;;  %v1522_v13 = vcombine.high %v520_v63, %v522_v33 }
 0x207   :  { %676 = vmatprep.subr.bf16.mxu1 %v1522_v13 }
 0x208   :  { %677 = vmatpush2.bf16.msra.mxu1 %v1521_v34 }
 0x20b   :  { %679 = vmatmul.mubr.bf16.vlgmr.msra.gmra.mxu1 %v1938_v35 }
 0x20c   :  { %1451 = vmatprep.mubr.bf16.mxu1 %v1620_v3  ;;  %v699_v38 = vpop.permute.xlu0 %698 }
 0x20d   :  { %v691_v36 = vpop.permute.xlu1 %690 }
 0x210   :  { %v885_v25 = vpop.permute.xlu0 %884 }
 0x211   :  { %v880_v18 = vpop.permute.xlu1 %879 }
 0x214   :  { %v901_v63 = vpop.permute.xlu0 %900 }
 0x215   :  { %v896_v28 = vpop.permute.xlu1 %895 }
 0x2cb   :  { %v680_v37 = vpop.f32.mrf.mxu1 }
 0x2cc   :  { %v693_v1 = vmul.f32 %v691_v36, %v680_v37 }
 0x2cd   :  { %v682_v7 = vpop.f32.mrf.mxu1 }
 0x2ce   :  { %v701_v39 = vadd.f32 %v699_v38, %v693_v1  ;;  %v694_v40 = vmul.f32 %v691_v36, %v682_v7 }
 0x2cf   :  { %v684_v41 = vpop.f32.mrf.mxu1 }
 0x2d0   :  { %v705_v42 = vmul.f32 0.1, %v701_v39  ;;  %v702_v43 = vadd.f32 %v699_v38, %v694_v40  ;;  %vm703_vm15 = vcmp.gt.f32.partialorder %v701_v39, 0.0 }
 0x2d1   :  { %v685_v44 = vpop.f32.mrf.mxu1 }
 0x2d2   :  { %vm704_vm2 = vcmp.gt.f32.partialorder %v702_v43, 0.0  ;;  %v706_v53 = vmul.f32 0.1, %v702_v43  ;;  %v707_v47 = vsel %vm703_vm15, %v701_v39, %v705_v42 }
 0x2d3   :  { %v712_v50 = vpack.c.bf16 %v707_v47, %v707_v47 }
 0x2d4   :  { %v708_v51 = vsel %vm704_vm2, %v702_v43, %v706_v53 }
 0x2d5   :  { %v713_v52 = vpack.c.bf16 %v708_v51, %v708_v51  ;;  %v747_v57 = vsel %vm98_vm0, %v712_v50, 0 }
 0x2d7   :  { %1526 = vmatprep.subr.msk.bf16.mxu0 %vm98_vm0, %v713_v52 }
 0x2d8   :  { %767 = vmatpush1.bf16.msra.mxu0 %v747_v57 }
 0x2d9   :  { %1533 = vmatprep.subr.msk.bf16.mxu0 %vm98_vm0, %v1532_v16 }
 0x2db   :  { %1527 = vmatmul.mubr.msk.bf16.vlgmr.msra.gmra.mxu0 %vm2171_vm1, %v1591_v60 }
 0x2dc   :  { %847 = vmatpush1.bf16.msra.mxu0 %v827_v61  ;;  %794 = vmatprep.mubr.bf16.mxu0 %v1620_v3 }
 0x2e3   :  { %1528 = vmatmul.mubr.msk.bf16.gmra.mxu0 %vm2171_vm1, %v1594_v2 }
 0x2e4   :  { %864 = vmatprep.mubr.bf16.mxu0 %v1620_v3 }
 0x2eb   :  { %1534 = vmatmul.mubr.msk.bf16.vlgmr.msra.gmra.mxu0 %vm2171_vm1, %v1595_v11 }
 0x2ec   :  { %1557 = vmatprep.mubr.msk.bf16.mxu0 %vm316_vm14, %v1856_v55 }
 0x39b   :  { %v1965_v9 = vpop.f32.mrf.mxu0 }
 0x39d   :  { %v1967_v0 = vpop.f32.mrf.mxu0 }
 0x39f   :  { %v1969_v17 = vpop.f32.mrf.mxu0 }
 0x3a1   :  { %v1971_v4 = vpop.f32.mrf.mxu0 }
 0x3a3   :  { %v1973_v5 = vpop.f32.mrf.mxu0 }
 0x3a5   :  { %v1975_v10 = vpop.f32.mrf.mxu0 }
 0x3a7   :  { %v800_v19 = vpop.f32.mrf.mxu0 }
 0x3a9   :  { %v801_v23 = vpop.f32.mrf.mxu0 }
 0x3ab   :  { %v866_v26 = vpop.f32.mrf.mxu0 }
 0x3ac   :  { %v887_v27 = vmul.f32 %v880_v18, %v866_v26 }
 0x3ad   :  { %v868_v55 = vpop.f32.mrf.mxu0 }
 0x3ae   :  { %v903_v31 = vadd.f32 %v896_v28, %v887_v27  ;;  %v888_v32 = vmul.f32 %v880_v18, %v868_v55 }
 0x3af   :  { %v870_v29 = vpop.f32.mrf.mxu0 }
 0x3b0   :  { %v911_v22 = vmul.f32 0.1, %v903_v31  ;;  %v904_v12 = vadd.f32 %v896_v28, %v888_v32  ;;  %v889_v30 = vmul.f32 %v885_v25, %v870_v29  ;;  %vm907_vm14 = vcmp.gt.f32.partialorder %v903_v31, 0.0 }
 0x3b1   :  { %v872_v33 = vpop.f32.mrf.mxu0 }
 0x3b2   :  { %vm908_vm15 = vcmp.gt.f32.partialorder %v904_v12, 0.0  ;;  %v912_v34 = vmul.f32 0.1, %v904_v12  ;;  %v905_v13 = vadd.f32 %v901_v63, %v889_v30  ;;  %v890_v36 = vmul.f32 %v885_v25, %v872_v33 }
 0x3b3   :  { %v915_v38 = vsel %vm907_vm14, %v903_v31, %v911_v22 }
 0x3b4   :  { %v913_v37 = vmul.f32 0.1, %v905_v13  ;;  %v906_v1 = vadd.f32 %v901_v63, %v890_v36  ;;  %v916_v7 = vsel %vm908_vm15, %v904_v12, %v912_v34  ;;  %vm909_vm2 = vcmp.gt.f32.partialorder %v905_v13, 0.0 }
 0x3b5   :  { %v1565_v39 = vpack.c.bf16 %v916_v7, %v915_v38 }
 0x3b6   :  { %vm910_vm1 = vcmp.gt.f32.partialorder %v906_v1, 0.0  ;;  %v914_v40 = vmul.f32 0.1, %v906_v1  ;;  %v917_v41 = vsel %vm909_vm2, %v905_v13, %v913_v37 }
 0x3b7   :  { %929 = vrot.lane.b32.xlu1 %v1565_v39, %s1621_s1 }
 0x3b8   :  { %v918_v42 = vsel %vm910_vm1, %v906_v1, %v914_v40  ;;  %v715_v40 = vld [vmem:[%s2169_s9 + $0x8] sm:$0xff] }
 0x3b9   :  { %v1566_v43 = vpack.c.bf16 %v918_v42, %v917_v41  ;;  %v714_v41 = vld [vmem:[%s2169_s9] sm:$0xff] }
 0x3bb   :  { %931 = vrot.lane.b32.xlu0 %v1566_v43, %s1621_s1 }
 0x429   :  { %v930_v44 = vpop.permute.xlu1 %929 }
 0x42a   :  { %v933_v53 = vrot.slane %v930_v44, 4 }
 0x42c   :  { %v935_v47 = vsel %vm208_vm10, %v933_v53, %v930_v44  ;;  %942 = vst.msk [vmem:[#allocation2 + $0x8] sm:$0xf] %vm37_vm3, %v933_v53 }
 0x42d   :  { %941 = vst.msk [vmem:[#allocation2] sm:$0xff] %vm1745_vm11, %v935_v47  ;;  %v932_v49 = vpop.permute.xlu0 %931 }
 0x42e   :  { %v934_v50 = vrot.slane %v932_v49, 4 }
 0x430   :  { %v936_v51 = vsel %vm208_vm10, %v934_v50, %v932_v49  ;;  %944 = vst.msk [vmem:[#allocation2 + $0x14] sm:$0xf] %vm37_vm3, %v934_v50  ;;  %vm2174_vm10 = vcmask 64512  }
 0x431   :  { %943 = vst.msk [vmem:[#allocation2 + $0xc] sm:$0xff] %vm1745_vm11, %v936_v51  ;;  %vm2175_vm11 = vmmov %vm2174_vm10 }
 0x433   :  { %v1136_v52 = vld [vmem:[#allocation2 + $0x8] sm:$0xf] }
 0x434   :  { %1145 = vrot.lane.b32.xlu0 %v1136_v52, %s1627_s30  ;;  %v1988_v16 = vld [vmem:[#allocation2] sm:$0xff]  ;;  %v1044_v56 = vld [vmem:[#allocation2 + $0x8] sm:$0xf] }
 0x435   :  { %1143 = vrot.lane.b32.xlu1 %v1988_v16, %s1627_s30  ;;  %v1104_v57 = vld [vmem:[#allocation2 + $0x8] sm:$0xf]  ;;  %v1107_v61 = vmul.bf16 %v1988_v16, %v1765_v6  ;;  %v2002_v11 = vmul.bf16 %v1739_v46, %v1988_v16  ;;  %v1075_v26 = vmul.bf16 %v1988_v16, %v1778_v15  ;;  %v1015_v28 = vmul.bf16 %v1988_v16, %v1787_v20 }
 0x436   :  { %v1108_v54 = vmul.bf16 %v1104_v57, %v1757_v62  ;;  %v1072_v2 = vld [vmem:[#allocation2 + $0x8] sm:$0xf]  ;;  %v983_v32 = vmul.bf16 %v1988_v16, %v1797_v24 }
 0x437   :  { %v1076_v25 = vmul.bf16 %v1072_v2, %v1767_v8  ;;  %v1012_v27 = vld [vmem:[#allocation2 + $0x8] sm:$0xf]  ;;  %v1138_v29 = vld [vmem:[#allocation2 + $0x14] sm:$0xf] }
 0x438   :  { %1053 = vrot.lane.b32.xlu0 %v1044_v56, %s1628_s11  ;;  %v1993_v60 = vld [vmem:[#allocation2 + $0xc] sm:$0xff]  ;;  %v980_v55 = vld [vmem:[#allocation2 + $0x8] sm:$0xf]  ;;  %v1046_v22 = vld [vmem:[#allocation2 + $0x14] sm:$0xf] }
 0x439   :  { %1051 = vrot.lane.b32.xlu1 %v1988_v16, %s1628_s11  ;;  %v2006_v18 = vmul.bf16 %v1739_v46, %v1993_v60  ;;  %v1016_v46 = vmul.bf16 %v1012_v27, %v1775_v14  ;;  %v984_v31 = vmul.bf16 %v980_v55, %v1789_v21  ;;  %v1106_v12 = vld [vmem:[#allocation2 + $0x14] sm:$0xf]  ;;  %v1109_v63 = vmul.bf16 %v1993_v60, %v1765_v6  ;;  %v1164_v38 = vld [vmem:[#allocation2 + $0x8] sm:$0xf] }
 0x43a   :  { %v1110_v30 = vmul.bf16 %v1106_v12, %v1757_v62  ;;  %v1074_v33 = vld [vmem:[#allocation2 + $0x14] sm:$0xf]  ;;  %v1077_v13 = vmul.bf16 %v1993_v60, %v1778_v15  ;;  %v952_v15 = vld [vmem:[#allocation2 + $0x8] sm:$0xf]  ;;  %v985_v1 = vmul.bf16 %v1993_v60, %v1797_v24  ;;  %v1169_v39 = vmul.bf16 %v1993_v60, %v1840_v48 }
 0x43b   :  { %v1540_v19 = vcombine.high %v2002_v11, %v2006_v18  ;;  %v1539_v23 = vcombine.low %v2002_v11, %v2006_v18  ;;  %v1078_v34 = vmul.bf16 %v1074_v33, %v1767_v8  ;;  %v1014_v36 = vld [vmem:[#allocation2 + $0x14] sm:$0xf]  ;;  %v1017_v8 = vmul.bf16 %v1993_v60, %v1787_v20 }
 0x43c   :  { %1117 = vrot.lane.b32.xlu0 %v1108_v54, %s1629_s12  ;;  %v1018_v62 = vmul.bf16 %v1014_v36, %v1775_v14  ;;  %v982_v37 = vld [vmem:[#allocation2 + $0x14] sm:$0xf]  ;;  %v1168_v20 = vmul.bf16 %v1164_v38, %v1835_v45 }
 0x43d   :  { %1115 = vrot.lane.b32.xlu1 %v1107_v61, %s1629_s12  ;;  %v986_v6 = vmul.bf16 %v982_v37, %v1789_v21  ;;  %v954_v14 = vld [vmem:[#allocation2 + $0x14] sm:$0xf]  ;;  %v1167_v21 = vmul.bf16 %v1988_v16, %v1840_v48 }
 0x43e   :  { %v1166_v7 = vld [vmem:[#allocation2 + $0x14] sm:$0xf] }
 0x43f   :  { %v1170_v24 = vmul.bf16 %v1166_v7, %v1835_v45  ;;  %v716_v45 = vld [vmem:[%s2169_s9 + $0x10] sm:$0xff] }
 0x440   :  { %1085 = vrot.lane.b32.xlu0 %v1076_v25, %s1630_s13 }
 0x441   :  { %1083 = vrot.lane.b32.xlu1 %v1075_v26, %s1630_s13 }
 0x444   :  { %1025 = vrot.lane.b32.xlu0 %v1016_v46, %s1631_s14 }
 0x445   :  { %1023 = vrot.lane.b32.xlu1 %v1015_v28, %s1631_s14 }
 0x448   :  { %993 = vrot.lane.b32.xlu0 %v984_v31, %s1632_s15 }
 0x449   :  { %991 = vrot.lane.b32.xlu1 %v983_v32, %s1632_s15 }
 0x44c   :  { %1149 = vrot.lane.b32.xlu0 %v1138_v29, %s1627_s30 }
 0x44d   :  { %1147 = vrot.lane.b32.xlu1 %v1993_v60, %s1627_s30 }
 0x450   :  { %1057 = vrot.lane.b32.xlu0 %v1046_v22, %s1628_s11 }
 0x451   :  { %1055 = vrot.lane.b32.xlu1 %v1993_v60, %s1628_s11 }
 0x454   :  { %1121 = vrot.lane.b32.xlu0 %v1110_v30, %s1629_s12 }
 0x455   :  { %1119 = vrot.lane.b32.xlu1 %v1109_v63, %s1629_s12 }
 0x458   :  { %1089 = vrot.lane.b32.xlu0 %v1078_v34, %s1630_s13 }
 0x459   :  { %1087 = vrot.lane.b32.xlu1 %v1077_v13, %s1630_s13 }
 0x45c   :  { %1029 = vrot.lane.b32.xlu0 %v1018_v62, %s1631_s14 }
 0x45d   :  { %959 = vrot.lane.b32.xlu1 %v1988_v16, %s1633_s16 }
 0x460   :  { %997 = vrot.lane.b32.xlu0 %v986_v6, %s1632_s15 }
 0x461   :  { %1027 = vrot.lane.b32.xlu1 %v1017_v8, %s1631_s14  ;;  %s1635_s14 = smov [#allocation4]  }
 0x464   :  { %961 = vrot.lane.b32.xlu0 %v952_v15, %s1633_s16 }
 0x465   :  { %995 = vrot.lane.b32.xlu1 %v985_v1, %s1632_s15  ;;  %s1482_s15 = sshll.u32 %s1635_s14, 4  ;;  %s1483_s15 = int_to_ptr.vmem [resolvable:$true] %s1482_s15 }
 0x466   :  { %p1603_p1 = scmp.lt.s32.totalorder %s1483_s15, %s1483_s15 }
 0x468   :  { %965 = vrot.lane.b32.xlu0 %v954_v14, %s1633_s16 }
 0x469   :  { %963 = vrot.lane.b32.xlu1 %v1993_v60, %s1633_s16 }
 0x46c   :  { %1177 = vrot.lane.b32.xlu0 %v1168_v20, %s1634_s19 }
 0x46d   :  { %1175 = vrot.lane.b32.xlu1 %v1167_v21, %s1634_s19 }
 0x470   :  { %1181 = vrot.lane.b32.xlu0 %v1170_v24, %s1634_s19 }
 0x471   :  { %1179 = vrot.lane.b32.xlu1 %v1169_v39, %s1634_s19 }
 0x474   :  { %1365 = vperm.xlu0 %1584, %v1869_v58  }
 0x475   :  { %1357 = vperm.xlu1 %1585, %v1874_v59  }
 0x478   :  { %724 = vperm.xlu0 %1584, %v715_v40  }
 0x479   :  { %719 = vperm.xlu1 %1585, %v714_v41  }
 0x47c   :  { %1386 = vperm.xlu0 %1584, %v714_v41  }
 0x47d   :  { %729 = vperm.xlu1 %1585, %v716_v45  }
 0x480   :  { %1396 = vperm.xlu0 %1584, %v716_v45  }
 0x481   :  { %1391 = vperm.xlu1 %1585, %v715_v40  }
 0x4a6   :  { %v1146_v48 = vpop.permute.xlu0 %1145 }
 0x4a7   :  { %v1144_v58 = vpop.permute.xlu1 %1143  ;;  %v1152_v16 = vrot.slane %v1146_v48, 4 }
 0x4a8   :  { %v1151_v56 = vrot.slane %v1144_v58, 4 }
 0x4aa   :  { %v1054_v59 = vpop.permute.xlu0 %1053  ;;  %v1155_v61 = vsel %vm98_vm0, %v1151_v56, %v1152_v16 }
 0x4ab   :  { %v2082_v42 = vpop.permute.xlu1 %1051  ;;  %v1156_v27 = vsel %vm479_vm4, %v1144_v58, %v1155_v61  ;;  %v1060_v37 = vrot.slane %v1054_v59, 4 }
 0x4ac   :  { %v1059_v6 = vrot.slane %v2082_v42, 4 }
 0x4ae   :  { %v1118_v43 = vpop.permute.xlu0 %1117  ;;  %v1063_v41 = vsel %vm98_vm0, %v1059_v6, %v1060_v37 }
 0x4af   :  { %v1116_v44 = vpop.permute.xlu1 %1115  ;;  %v1124_v55 = vrot.slane %v1118_v43, 4 }
 0x4b0   :  { %v1123_v31 = vrot.slane %v1116_v44, 4 }
 0x4b2   :  { %v1086_v53 = vpop.permute.xlu0 %1085  ;;  %v1127_v34 = vsel %vm98_vm0, %v1123_v31, %v1124_v55 }
 0x4b3   :  { %v1084_v47 = vpop.permute.xlu1 %1083  ;;  %v1092_v12 = vrot.slane %v1086_v53, 4  ;;  %v1128_v1 = vsel %vm450_vm5, %v1116_v44, %v1127_v34 }
 0x4b4   :  { %v1091_v30 = vrot.slane %v1084_v47, 4 }
 0x4b6   :  { %v2084_v49 = vpop.permute.xlu0 %1025  ;;  %v1095_v14 = vsel %vm98_vm0, %v1091_v30, %v1092_v12 }
 0x4b7   :  { %v2086_v50 = vpop.permute.xlu1 %1023  ;;  %v1096_v58 = vsel %vm410_vm6, %v1084_v47, %v1095_v14  ;;  %v1032_v53 = vrot.slane %v2084_v49, 4 }
 0x4b8   :  { %v1031_v16 = vrot.slane %v2086_v50, 4 }
 0x4ba   :  { %v2088_v51 = vpop.permute.xlu0 %993 }
 0x4bb   :  { %v2090_v52 = vpop.permute.xlu1 %991  ;;  %v1000_v47 = vrot.slane %v2088_v51, 4 }
 0x4be   :  { %v1150_v57 = vpop.permute.xlu0 %1149 }
 0x4bf   :  { %v1154_v60 = vrot.slane %v1150_v57, 4  ;;  %v1148_v54 = vpop.permute.xlu1 %1147 }
 0x4c0   :  { %v1153_v2 = vrot.slane %v1148_v54, 4 }
 0x4c2   :  { %v1157_v25 = vsel %vm98_vm0, %v1153_v2, %v1154_v60  ;;  %v1058_v26 = vpop.permute.xlu0 %1057  ;;  %v1064_v60 = vsel %vm370_vm7, %v2082_v42, %v1063_v41  ;;  %v999_v2 = vrot.slane %v2090_v52, 4 }
 0x4c3   :  { %v1158_v46 = vsel %vm479_vm4, %v1148_v54, %v1157_v25  ;;  %v1056_v28 = vpop.permute.xlu1 %1055  ;;  %v1062_v13 = vrot.slane %v1058_v26, 4  ;;  %v1035_v26 = vsel %vm98_vm0, %v1031_v16, %v1032_v53 }
 0x4c4   :  { %v1553_v32 = vcombine.low %v1156_v27, %v1158_v46  ;;  %v1554_v29 = vcombine.high %v1156_v27, %v1158_v46  ;;  %v1061_v36 = vrot.slane %v1056_v28, 4  ;;  %v1036_v42 = vsel %vm341_vm8, %v2086_v50, %v1035_v26 }
 0x4c5   :  { %v1003_v31 = vsel %vm98_vm0, %v999_v2, %v1000_v47 }
 0x4c6   :  { %1313 = vmatprep.subr.bf16.mxu0 %v1554_v29  ;;  %v1122_v22 = vpop.permute.xlu0 %1121  ;;  %v1065_v7 = vsel %vm98_vm0, %v1061_v36, %v1062_v13  ;;  %v1004_v36 = vsel %vm301_vm9, %v2090_v52, %v1003_v31 }
 0x4c7   :  { %v1126_v63 = vrot.slane %v1122_v22, 4  ;;  %v1120_v33 = vpop.permute.xlu1 %1119  ;;  %1314 = vmatpush1.bf16.msra.mxu0 %v1553_v32  ;;  %v1066_v59 = vsel %vm370_vm7, %v1056_v28, %v1065_v7 }
 0x4c8   :  { %v1125_v62 = vrot.slane %v1120_v33, 4  ;;  %v1548_v54 = vcombine.high %v1064_v60, %v1066_v59  ;;  %v1547_v46 = vcombine.low %v1064_v60, %v1066_v59 }
 0x4ca   :  { %v1129_v8 = vsel %vm98_vm0, %v1125_v62, %v1126_v63  ;;  %v1090_v15 = vpop.permute.xlu0 %1089 }
 0x4cb   :  { %v1130_v38 = vsel %vm450_vm5, %v1120_v33, %v1129_v8  ;;  %v1094_v20 = vrot.slane %v1090_v15, 4  ;;  %v1088_v21 = vpop.permute.xlu1 %1087 }
 0x4cc   :  { %v1551_v24 = vcombine.low %v1128_v1, %v1130_v38  ;;  %v1552_v39 = vcombine.high %v1128_v1, %v1130_v38  ;;  %v1093_v40 = vrot.slane %v1088_v21, 4 }
 0x4ce   :  { %v1097_v45 = vsel %vm98_vm0, %v1093_v40, %v1094_v20  ;;  %1315 = vmatprep.subr.bf16.mxu0 %v1552_v39  ;;  %v1030_v48 = vpop.permute.xlu0 %1029 }
 0x4cf   :  { %v1098_v43 = vsel %vm410_vm6, %v1088_v21, %v1097_v45  ;;  %v960_v44 = vpop.permute.xlu1 %959  ;;  %1316 = vmatpush1.bf16.msra.mxu0 %v1551_v24  ;;  %v1034_v27 = vrot.slane %v1030_v48, 4 }
 0x4d0   :  { %v1549_v56 = vcombine.low %v1096_v58, %v1098_v43  ;;  %v1550_v57 = vcombine.high %v1096_v58, %v1098_v43  ;;  %v967_v33 = vrot.slane %v960_v44, 4 }
 0x4d2   :  { %1317 = vmatprep.subr.bf16.mxu0 %v1550_v57  ;;  %v998_v61 = vpop.permute.xlu0 %997 }
 0x4d3   :  { %v1028_v25 = vpop.permute.xlu1 %1027  ;;  %1318 = vmatpush1.bf16.msra.mxu0 %v1549_v56  ;;  %v1002_v32 = vrot.slane %v998_v61, 4 }
 0x4d4   :  { %v1033_v49 = vrot.slane %v1028_v25, 4  ;;  %1319 = vmatprep.subr.bf16.mxu0 %v1548_v54 }
 0x4d6   :  { %v1037_v28 = vsel %vm98_vm0, %v1033_v49, %v1034_v27  ;;  %v962_v55 = vpop.permute.xlu0 %961 }
 0x4d7   :  { %v1038_v51 = vsel %vm341_vm8, %v1028_v25, %v1037_v28  ;;  %v996_v29 = vpop.permute.xlu1 %995  ;;  %1320 = vmatpush1.bf16.msra.mxu0 %v1547_v46  ;;  %v968_v30 = vrot.slane %v962_v55, 4 }
 0x4d8   :  { %v1545_v22 = vcombine.low %v1036_v42, %v1038_v51  ;;  %v1546_v12 = vcombine.high %v1036_v42, %v1038_v51  ;;  %v1001_v63 = vrot.slane %v996_v29, 4  ;;  %v1597_v51 = vld [vmem:[%s2168_s8 + $0x8] ss:$0 sps:$4 sm:$0xff]  }
 0x4d9   :  { %v971_v6 = vsel %vm98_vm0, %v967_v33, %v968_v30 }
 0x4da   :  { %v1005_v34 = vsel %vm98_vm0, %v1001_v63, %v1002_v32  ;;  %1321 = vmatprep.subr.bf16.mxu0 %v1546_v12  ;;  %v966_v13 = vpop.permute.xlu0 %965  ;;  %v972_v20 = vsel %vm256_vm12, %v960_v44, %v971_v6  ;;  %v1596_v32 = vld [vmem:[%s2168_s8] sm:$0xff]   ;;  %s1598_s8 = scalar_lea.vmem %s1483_s15, 1536 }
 0x4db   :  { %v1006_v50 = vsel %vm301_vm9, %v996_v29, %v1005_v34  ;;  %v970_v62 = vrot.slane %v966_v13, 4  ;;  %v964_v37 = vpop.permute.xlu1 %963  ;;  %1322 = vmatpush1.bf16.msra.mxu0 %v1545_v22  ;;  %p1599_p0 = scmp.ne.s32.totalorder %s1483_s15, %s1598_s8  ;;  %p1604_p2 = scmp.lt.s32.totalorder %s1598_s8, %s1598_s8 }
 0x4dc   :  { %v1543_v8 = vcombine.low %v1004_v36, %v1006_v50  ;;  %v1544_v15 = vcombine.high %v1004_v36, %v1006_v50  ;;  %v969_v1 = vrot.slane %v964_v37, 4 }
 0x4dd   :  { %p1605_p3 = por %p1604_p2, %p1603_p1 }
 0x4de   :  { %v973_v14 = vsel %vm98_vm0, %v969_v1, %v970_v62  ;;  %1323 = vmatprep.subr.bf16.mxu0 %v1544_v15  ;;  %v1178_v38 = vpop.permute.xlu0 %1177 }
 0x4df   :  { %v974_v21 = vsel %vm256_vm12, %v964_v37, %v973_v14  ;;  %v1176_v7 = vpop.permute.xlu1 %1175  ;;  %1324 = vmatpush1.bf16.msra.mxu0 %v1543_v8  ;;  %v1184_v39 = vrot.slane %v1178_v38, 4  ;;  %p1606_p4 = pnand %p1605_p3, %p1599_p0 }
 0x4e0   :  { %v1541_v52 = vcombine.low %v972_v20, %v974_v21  ;;  %v1542_v24 = vcombine.high %v972_v20, %v974_v21  ;;  %v1183_v40 = vrot.slane %v1176_v7, 4 }
 0x4e2   :  { %1325 = vmatprep.subr.bf16.mxu0 %v1542_v24  ;;  %v1182_v41 = vpop.permute.xlu0 %1181  ;;  %v1187_v58 = vsel %vm98_vm0, %v1183_v40, %v1184_v39 }
 0x4e3   :  { %v1186_v45 = vrot.slane %v1182_v41, 4  ;;  %v1180_v48 = vpop.permute.xlu1 %1179  ;;  %1326 = vmatpush1.bf16.msra.mxu0 %v1541_v52  ;;  %v1188_v44 = vsel %vm519_vm13, %v1176_v7, %v1187_v58 }
 0x4e4   :  { %v1185_v59 = vrot.slane %v1180_v48, 4  ;;  %1327 = vmatprep.subr.bf16.mxu0 %v1540_v19 }
 0x4e6   :  { %v1189_v43 = vsel %vm98_vm0, %v1185_v59, %v1186_v45 }
 0x4e7   :  { %v1190_v53 = vsel %vm519_vm13, %v1180_v48, %v1189_v43  ;;  %1328 = vmatpush1.bf16.msra.mxu0 %v1539_v23 }
 0x4e8   :  { %v1555_v16 = vcombine.low %v1188_v44, %v1190_v53  ;;  %v1556_v56 = vcombine.high %v1188_v44, %v1190_v53 }
 0x4ea   :  { %1343 = vmatprep.subr.bf16.mxu0 %v1556_v56 }
 0x4eb   :  { %1344 = vmatpush2.bf16.msra.mxu0 %v1555_v16 }
 0x4ee   :  { %1346 = vmatmul.mubr.bf16.vlgmr.msra.gmra.mxu0 %v1938_v35 }
 0x4ef   :  { %v1366_v57 = vpop.permute.xlu0 %1365 }
 0x4f0   :  { %v1358_v60 = vpop.permute.xlu1 %1357 }
 0x4f3   :  { %v725_v54 = vpop.permute.xlu0 %724 }
 0x4f4   :  { %v791_v19 = vadd.f32 %v1969_v17, %v725_v54  ;;  %v793_v61 = vadd.f32 %v1971_v4, %v725_v54  ;;  %v720_v47 = vpop.permute.xlu1 %719 }
 0x4f5   :  { %v787_v2 = vadd.f32 %v1965_v9, %v720_v47  ;;  %v789_v25 = vadd.f32 %v1967_v0, %v720_v47 }
 0x4f6   :  { %805 = vst [vmem:[#allocation4 + $0x10] sm:$0xff] %v791_v19  ;;  %806 = vst [vmem:[#allocation4 + $0x18] sm:$0xff] %v793_v61 }
 0x4f7   :  { %803 = vst [vmem:[#allocation4] sm:$0xff] %v787_v2  ;;  %804 = vst [vmem:[#allocation4 + $0x8] sm:$0xff] %v789_v25  ;;  %v1387_v29 = vpop.permute.xlu0 %1386 }
 0x4f8   :  { %v730_v11 = vpop.permute.xlu1 %729 }
 0x4f9   :  { %v797_v18 = vadd.f32 %v1973_v5, %v730_v11  ;;  %v799_v35 = vadd.f32 %v1975_v10, %v730_v11 }
 0x4fb   :  { %807 = vst [vmem:[#allocation4 + $0x20] sm:$0xff] %v797_v18  ;;  %808 = vst [vmem:[#allocation4 + $0x28] sm:$0xff] %v799_v35 }
 0x4fc   :  { %v1392_v33 = vpop.permute.xlu1 %1391 }
 0x5ae   :  { %v1347_v23 = vpop.f32.mrf.mxu0 }
 0x5af   :  { %v1360_v17 = vmul.f32 %v1358_v60, %v1347_v23 }
 0x5b0   :  { %v1349_v26 = vpop.f32.mrf.mxu0 }
 0x5b1   :  { %v1368_v4 = vadd.f32 %v1366_v57, %v1360_v17  ;;  %v1361_v27 = vmul.f32 %v1358_v60, %v1349_v26 }
 0x5b2   :  { %v1351_v49 = vpop.f32.mrf.mxu0 }
 0x5b3   :  { %vm1370_vm1 = vcmp.gt.f32.partialorder %v1368_v4, 0.0  ;;  %v1372_v9 = vmul.f32 0.1, %v1368_v4  ;;  %v1369_v0 = vadd.f32 %v1366_v57, %v1361_v27 }
 0x5b4   :  { %v1352_v46 = vpop.f32.mrf.mxu0 }
 0x5b5   :  { %vm1371_vm3 = vcmp.gt.f32.partialorder %v1369_v0, 0.0  ;;  %v1373_v28 = vmul.f32 0.1, %v1369_v0  ;;  %v1374_v55 = vsel %vm1370_vm1, %v1368_v4, %v1372_v9 }
 0x5b6   :  { %v1379_v42 = vpack.c.bf16 %v1374_v55, %v1374_v55 }
 0x5b7   :  { %v1375_v31 = vsel %vm1371_vm3, %v1369_v0, %v1373_v28 }
 0x5b8   :  { %v1380_v5 = vpack.c.bf16 %v1375_v31, %v1375_v31  ;;  %v1414_v10 = vsel %vm98_vm0, %v1379_v42, 0 }
 0x5ba   :  { %1560 = vmatprep.subr.msk.bf16.mxu1 %vm98_vm0, %v1380_v5 }
 0x5bb   :  { %1434 = vmatpush1.bf16.msra.mxu1 %v1414_v10 }
 0x5be   :  { %1561 = vmatmul.mubr.msk.bf16.vlgmr.msra.gmra.mxu1 %vm2174_vm10, %v1596_v32 }
 0x5bf   :  { %1461 = vmatprep.mubr.bf16.mxu1 %v1620_v3  ;;  %v1397_v3 = vpop.permute.xlu0 %1396 }
 0x5c6   :  { %1562 = vmatmul.mubr.msk.bf16.gmra.mxu1 %vm2175_vm11, %v1597_v51 }
 0x67e   :  { %v1453_v22 = vpop.f32.mrf.mxu1 }
 0x67f   :  { %v1454_v12 = vadd.f32 %v1453_v22, %v1387_v29 }
 0x680   :  { %v1455_v30 = vpop.f32.mrf.mxu1 }
 0x681   :  { %1471 = vst [vmem:[#allocation4 + $0x30] sm:$0xff] %v1454_v12  ;;  %v1456_v63 = vadd.f32 %v1455_v30, %v1387_v29 }
 0x682   :  { %v1457_v34 = vpop.f32.mrf.mxu1 }
 0x683   :  { %1472 = vst [vmem:[#allocation4 + $0x38] sm:$0xff] %v1456_v63  ;;  %v1458_v13 = vadd.f32 %v1457_v34, %v1392_v33 }
 0x684   :  { %v1459_v36 = vpop.f32.mrf.mxu1 }
 0x685   :  { %1473 = vst [vmem:[#allocation4 + $0x40] sm:$0xff] %v1458_v13  ;;  %v1460_v50 = vadd.f32 %v1459_v36, %v1392_v33 }
 0x686   :  { %v1463_v62 = vpop.f32.mrf.mxu1 }
 0x687   :  { %1474 = vst [vmem:[#allocation4 + $0x48] sm:$0xff] %v1460_v50  ;;  %v1464_v37 = vadd.f32 %v1463_v62, %v1397_v3 }
 0x688   :  { %v1465_v6 = vpop.f32.mrf.mxu1 }
 0x689   :  { %1475 = vst [vmem:[#allocation4 + $0x50] sm:$0xff] %v1464_v37  ;;  %v1466_v8 = vadd.f32 %v1465_v6, %v1397_v3 }
 0x68a   :  { %v1467_v15 = vpop.f32.mrf.mxu1 }
 0x68b   :  { %1476 = vst [vmem:[#allocation4 + $0x58] sm:$0xff] %v1466_v8 }
 0x68c   :  { %v1468_v1 = vpop.f32.mrf.mxu1 }
 0x68d   :  { %1609 = shalt.err (!%p1606_p4)
}
 0x68e   :  { %s1636_s16 = smov 256  }
 0x68f   :  { %1488 = dma.vmem_to_hbm [thread:$0]  %s1483_s15, 1536, %s2170_s10, [#allocation5], %s1636_s16, %s1636_s16, %s1623_s26  }
 0x690   :  { %1618 = dma.done.wait [#allocation5], 1536  }
 0x691   :  { %1619 = vsyncadd [#allocation5], 4294965760 }
 0x692   :  { %1492 = vsyncpa [#allocation5], 1 }

</bundles_post_ra>
